<compile_context>
chip_gen: v7x
topology: tpu7x:2x2x1
jax: 0.10.0
libtpu: 0.0.40
codegen_flags: <defaults>
</compile_context>

<pallas_src>
import jax
import jax.numpy as jnp
from jax.experimental import pallas as pl
from jax.experimental.pallas import tpu as pltpu

# Deterministic stand-in for `self.rand = random.randint(0, 1)` in the PyTorch module;
# fixed to 1 so the full concat chain is exercised (rand=0 path also tested below).
RAND = 1


def _make_relu_tile_kernel(C, D2, r1, r2, r3):
    """Kernel: o[b, j, i2, i3, d4] = relu(x)[b, j % C, i2 % D2, i3 % D3, d4]."""

    def kernel(x_ref, o_ref):
        # x_ref: (B, C, D2, D3, D4)            -- raw input block
        # o_ref: (B, r1*C, r2*D2, r3*D3, D4)   -- final output block (tile-padded layout)
        r = jnp.maximum(x_ref[...], 0.0)            # pointwise relu, computed once
        if r3 == 2:
            # dim-3 (second-minor) x2 replication: one small in-kernel concatenate
            r = jnp.concatenate([r, r], axis=3)     # (B, C, D2, r3*D3, D4)
        # dim-1 / dim-2 replication realized by unrolled stores of whole
        # (..., r3*D3, D4) tiles into disjoint output slices.
        for k1 in range(r1):
            for k2 in range(r2):
                o_ref[:, C * k1:C * (k1 + 1), D2 * k2:D2 * (k2 + 1), :, :] = r

    return kernel


def model_forward(x, rand=RAND):
    # x: (B, C, D2, D3, D4) float32
    B, C, D2, D3, D4 = x.shape

    # replication factors implied by the concat chain
    r1 = 3 * (8 if rand else 1)   # dim 1: cat([x,x,x]) then three cat([.,.])
    r2 = 2 if rand else 1         # dim 2
    r3 = 2 if rand else 1         # dim 3
    out_shape = (B, r1 * C, r2 * D2, r3 * D3, D4)

    return pl.pallas_call(
        _make_relu_tile_kernel(C, D2, r1, r2, r3),
        out_shape=jax.ShapeDtypeStruct(out_shape, x.dtype),
        grid=(1,),  # single step: whole problem is one block, no per-step overhead
        in_specs=[pl.BlockSpec((B, C, D2, D3, D4), lambda i: (0, 0, 0, 0, 0))],
        out_specs=pl.BlockSpec(out_shape, lambda i: (0, 0, 0, 0, 0)),
        compiler_params=pltpu.CompilerParams(
            dimension_semantics=("arbitrary",),
            vmem_limit_bytes=32 * 1024 * 1024,  # padded 5-D out block ~9.4 MiB/buffer
        ),
    )(x)


def _reference(x, rand=RAND):
    # plain-JAX reference of the PyTorch forward (relu commutes with cat)
    r = jnp.maximum(x, 0.0)
    ref = jnp.concatenate([r, r, r], axis=1)
    if rand:
        for _ in range(3):
            ref = jnp.concatenate([ref, ref], axis=1)
        ref = jnp.concatenate([ref, ref], axis=2)
        ref = jnp.concatenate([ref, ref], axis=3)
    return ref


if __name__ == "__main__":
    key = jax.random.PRNGKey(0)
    # shape matches the module's `torch.randn(2, 3, 4, 5, 6)`
    x = jax.random.normal(key, (2, 3, 4, 5, 6), dtype=jnp.float32)

    # rand = 1 path (full concat chain)
    fwd = jax.jit(model_forward)
    out = jax.block_until_ready(fwd(x))
    ref = _reference(x, rand=RAND)
    assert out.shape == ref.shape, (out.shape, ref.shape)
    assert bool(jnp.allclose(out, ref)), "rand=1 kernel output mismatch vs reference"

    # rand = 0 path (only cat([x,x,x], dim=1)) -- flagged as untested by the review
    fwd0 = jax.jit(lambda v: model_forward(v, rand=0))
    out0 = jax.block_until_ready(fwd0(x))
    ref0 = _reference(x, rand=0)
    assert out0.shape == ref0.shape, (out0.shape, ref0.shape)
    assert bool(jnp.allclose(out0, ref0)), "rand=0 kernel output mismatch vs reference"

    print("KERNEL_OK")
</pallas_src>

<mosaic_0001>
module attributes {stable_mosaic.version = 11 : i64} {
  func.func @kernel(%arg0: i32, %arg1: memref<2x3x4x5x6xf32, #tpu.memory_space<vmem>>, %arg2: memref<2x72x8x10x6xf32, #tpu.memory_space<vmem>>) attributes {dimension_semantics = [#tpu.dimension_semantics<arbitrary>], iteration_bounds = array<i64: 1>, scalar_prefetch = 0 : i64, scratch_operands = 0 : i64, tpu.core_type = #tpu.core_type<tc>, window_params = [{pipeline_mode = #tpu.pipeline_mode<synchronous>, transform_indices = @transform_0, window_bounds = array<i64: 2, 3, 4, 5, 6>}, {pipeline_mode = #tpu.pipeline_mode<synchronous>, transform_indices = @transform_1, window_bounds = array<i64: 2, 72, 8, 10, 6>}]} {
    %c0 = arith.constant 0 : index
    %c0_0 = arith.constant 0 : index
    %c0_1 = arith.constant 0 : index
    %c0_2 = arith.constant 0 : index
    %c0_3 = arith.constant 0 : index
    %0 = vector.load %arg1[%c0, %c0_0, %c0_1, %c0_2, %c0_3] : memref<2x3x4x5x6xf32, #tpu.memory_space<vmem>>, vector<2x3x4x5x6xf32>
    %cst = arith.constant 0.000000e+00 : f32
    %1 = vector.broadcast %cst : f32 to vector<2x3x4x5x6xf32>
    %2 = arith.maximumf %0, %1 : vector<2x3x4x5x6xf32>
    %3 = tpu.concatenate %2, %2 in 3 : vector<2x3x4x5x6xf32>, vector<2x3x4x5x6xf32> -> vector<2x3x4x10x6xf32>
    %c0_4 = arith.constant 0 : index
    %c0_5 = arith.constant 0 : index
    %c0_6 = arith.constant 0 : index
    %c0_7 = arith.constant 0 : index
    %c0_8 = arith.constant 0 : index
    %4 = vector.load %arg2[%c0_4, %c0_5, %c0_6, %c0_7, %c0_8] : memref<2x72x8x10x6xf32, #tpu.memory_space<vmem>>, vector<2x3x4x10x6xf32>
    tpu.vector_store %arg2[%c0_4, %c0_5, %c0_6, %c0_7, %c0_8], %3 {strides = array<i32>} : memref<2x72x8x10x6xf32, #tpu.memory_space<vmem>>, vector<2x3x4x10x6xf32>,
    %c0_9 = arith.constant 0 : index
    %c0_10 = arith.constant 0 : index
    %c4 = arith.constant 4 : index
    %c0_11 = arith.constant 0 : index
    %c0_12 = arith.constant 0 : index
    %5 = vector.load %arg2[%c0_9, %c0_10, %c4, %c0_11, %c0_12] : memref<2x72x8x10x6xf32, #tpu.memory_space<vmem>>, vector<2x3x4x10x6xf32>
    tpu.vector_store %arg2[%c0_9, %c0_10, %c4, %c0_11, %c0_12], %3 {strides = array<i32>} : memref<2x72x8x10x6xf32, #tpu.memory_space<vmem>>, vector<2x3x4x10x6xf32>,
    %c0_13 = arith.constant 0 : index
    %c3 = arith.constant 3 : index
    %c0_14 = arith.constant 0 : index
    %c0_15 = arith.constant 0 : index
    %c0_16 = arith.constant 0 : index
    %6 = vector.load %arg2[%c0_13, %c3, %c0_14, %c0_15, %c0_16] : memref<2x72x8x10x6xf32, #tpu.memory_space<vmem>>, vector<2x3x4x10x6xf32>
    tpu.vector_store %arg2[%c0_13, %c3, %c0_14, %c0_15, %c0_16], %3 {strides = array<i32>} : memref<2x72x8x10x6xf32, #tpu.memory_space<vmem>>, vector<2x3x4x10x6xf32>,
    %c0_17 = arith.constant 0 : index
    %c3_18 = arith.constant 3 : index
    %c4_19 = arith.constant 4 : index
    %c0_20 = arith.constant 0 : index
    %c0_21 = arith.constant 0 : index
    %7 = vector.load %arg2[%c0_17, %c3_18, %c4_19, %c0_20, %c0_21] : memref<2x72x8x10x6xf32, #tpu.memory_space<vmem>>, vector<2x3x4x10x6xf32>
    tpu.vector_store %arg2[%c0_17, %c3_18, %c4_19, %c0_20, %c0_21], %3 {strides = array<i32>} : memref<2x72x8x10x6xf32, #tpu.memory_space<vmem>>, vector<2x3x4x10x6xf32>,
    %c0_22 = arith.constant 0 : index
    %c6 = arith.constant 6 : index
    %c0_23 = arith.constant 0 : index
    %c0_24 = arith.constant 0 : index
    %c0_25 = arith.constant 0 : index
    %8 = vector.load %arg2[%c0_22, %c6, %c0_23, %c0_24, %c0_25] : memref<2x72x8x10x6xf32, #tpu.memory_space<vmem>>, vector<2x3x4x10x6xf32>
    tpu.vector_store %arg2[%c0_22, %c6, %c0_23, %c0_24, %c0_25], %3 {strides = array<i32>} : memref<2x72x8x10x6xf32, #tpu.memory_space<vmem>>, vector<2x3x4x10x6xf32>,
    %c0_26 = arith.constant 0 : index
    %c6_27 = arith.constant 6 : index
    %c4_28 = arith.constant 4 : index
    %c0_29 = arith.constant 0 : index
    %c0_30 = arith.constant 0 : index
    %9 = vector.load %arg2[%c0_26, %c6_27, %c4_28, %c0_29, %c0_30] : memref<2x72x8x10x6xf32, #tpu.memory_space<vmem>>, vector<2x3x4x10x6xf32>
    tpu.vector_store %arg2[%c0_26, %c6_27, %c4_28, %c0_29, %c0_30], %3 {strides = array<i32>} : memref<2x72x8x10x6xf32, #tpu.memory_space<vmem>>, vector<2x3x4x10x6xf32>,
    %c0_31 = arith.constant 0 : index
    %c9 = arith.constant 9 : index
    %c0_32 = arith.constant 0 : index
    %c0_33 = arith.constant 0 : index
    %c0_34 = arith.constant 0 : index
    %10 = vector.load %arg2[%c0_31, %c9, %c0_32, %c0_33, %c0_34] : memref<2x72x8x10x6xf32, #tpu.memory_space<vmem>>, vector<2x3x4x10x6xf32>
    tpu.vector_store %arg2[%c0_31, %c9, %c0_32, %c0_33, %c0_34], %3 {strides = array<i32>} : memref<2x72x8x10x6xf32, #tpu.memory_space<vmem>>, vector<2x3x4x10x6xf32>,
    %c0_35 = arith.constant 0 : index
    %c9_36 = arith.constant 9 : index
    %c4_37 = arith.constant 4 : index
    %c0_38 = arith.constant 0 : index
    %c0_39 = arith.constant 0 : index
    %11 = vector.load %arg2[%c0_35, %c9_36, %c4_37, %c0_38, %c0_39] : memref<2x72x8x10x6xf32, #tpu.memory_space<vmem>>, vector<2x3x4x10x6xf32>
    tpu.vector_store %arg2[%c0_35, %c9_36, %c4_37, %c0_38, %c0_39], %3 {strides = array<i32>} : memref<2x72x8x10x6xf32, #tpu.memory_space<vmem>>, vector<2x3x4x10x6xf32>,
    %c0_40 = arith.constant 0 : index
    %c12 = arith.constant 12 : index
    %c0_41 = arith.constant 0 : index
    %c0_42 = arith.constant 0 : index
    %c0_43 = arith.constant 0 : index
    %12 = vector.load %arg2[%c0_40, %c12, %c0_41, %c0_42, %c0_43] : memref<2x72x8x10x6xf32, #tpu.memory_space<vmem>>, vector<2x3x4x10x6xf32>
    tpu.vector_store %arg2[%c0_40, %c12, %c0_41, %c0_42, %c0_43], %3 {strides = array<i32>} : memref<2x72x8x10x6xf32, #tpu.memory_space<vmem>>, vector<2x3x4x10x6xf32>,
    %c0_44 = arith.constant 0 : index
    %c12_45 = arith.constant 12 : index
    %c4_46 = arith.constant 4 : index
    %c0_47 = arith.constant 0 : index
    %c0_48 = arith.constant 0 : index
    %13 = vector.load %arg2[%c0_44, %c12_45, %c4_46, %c0_47, %c0_48] : memref<2x72x8x10x6xf32, #tpu.memory_space<vmem>>, vector<2x3x4x10x6xf32>
    tpu.vector_store %arg2[%c0_44, %c12_45, %c4_46, %c0_47, %c0_48], %3 {strides = array<i32>} : memref<2x72x8x10x6xf32, #tpu.memory_space<vmem>>, vector<2x3x4x10x6xf32>,
    %c0_49 = arith.constant 0 : index
    %c15 = arith.constant 15 : index
    %c0_50 = arith.constant 0 : index
    %c0_51 = arith.constant 0 : index
    %c0_52 = arith.constant 0 : index
    %14 = vector.load %arg2[%c0_49, %c15, %c0_50, %c0_51, %c0_52] : memref<2x72x8x10x6xf32, #tpu.memory_space<vmem>>, vector<2x3x4x10x6xf32>
    tpu.vector_store %arg2[%c0_49, %c15, %c0_50, %c0_51, %c0_52], %3 {strides = array<i32>} : memref<2x72x8x10x6xf32, #tpu.memory_space<vmem>>, vector<2x3x4x10x6xf32>,
    %c0_53 = arith.constant 0 : index
    %c15_54 = arith.constant 15 : index
    %c4_55 = arith.constant 4 : index
    %c0_56 = arith.constant 0 : index
    %c0_57 = arith.constant 0 : index
    %15 = vector.load %arg2[%c0_53, %c15_54, %c4_55, %c0_56, %c0_57] : memref<2x72x8x10x6xf32, #tpu.memory_space<vmem>>, vector<2x3x4x10x6xf32>
    tpu.vector_store %arg2[%c0_53, %c15_54, %c4_55, %c0_56, %c0_57], %3 {strides = array<i32>} : memref<2x72x8x10x6xf32, #tpu.memory_space<vmem>>, vector<2x3x4x10x6xf32>,
    %c0_58 = arith.constant 0 : index
    %c18 = arith.constant 18 : index
    %c0_59 = arith.constant 0 : index
    %c0_60 = arith.constant 0 : index
    %c0_61 = arith.constant 0 : index
    %16 = vector.load %arg2[%c0_58, %c18, %c0_59, %c0_60, %c0_61] : memref<2x72x8x10x6xf32, #tpu.memory_space<vmem>>, vector<2x3x4x10x6xf32>
    tpu.vector_store %arg2[%c0_58, %c18, %c0_59, %c0_60, %c0_61], %3 {strides = array<i32>} : memref<2x72x8x10x6xf32, #tpu.memory_space<vmem>>, vector<2x3x4x10x6xf32>,
    %c0_62 = arith.constant 0 : index
    %c18_63 = arith.constant 18 : index
    %c4_64 = arith.constant 4 : index
    %c0_65 = arith.constant 0 : index
    %c0_66 = arith.constant 0 : index
    %17 = vector.load %arg2[%c0_62, %c18_63, %c4_64, %c0_65, %c0_66] : memref<2x72x8x10x6xf32, #tpu.memory_space<vmem>>, vector<2x3x4x10x6xf32>
    tpu.vector_store %arg2[%c0_62, %c18_63, %c4_64, %c0_65, %c0_66], %3 {strides = array<i32>} : memref<2x72x8x10x6xf32, #tpu.memory_space<vmem>>, vector<2x3x4x10x6xf32>,
    %c0_67 = arith.constant 0 : index
    %c21 = arith.constant 21 : index
    %c0_68 = arith.constant 0 : index
    %c0_69 = arith.constant 0 : index
    %c0_70 = arith.constant 0 : index
    %18 = vector.load %arg2[%c0_67, %c21, %c0_68, %c0_69, %c0_70] : memref<2x72x8x10x6xf32, #tpu.memory_space<vmem>>, vector<2x3x4x10x6xf32>
    tpu.vector_store %arg2[%c0_67, %c21, %c0_68, %c0_69, %c0_70], %3 {strides = array<i32>} : memref<2x72x8x10x6xf32, #tpu.memory_space<vmem>>, vector<2x3x4x10x6xf32>,
    %c0_71 = arith.constant 0 : index
    %c21_72 = arith.constant 21 : index
    %c4_73 = arith.constant 4 : index
    %c0_74 = arith.constant 0 : index
    %c0_75 = arith.constant 0 : index
    %19 = vector.load %arg2[%c0_71, %c21_72, %c4_73, %c0_74, %c0_75] : memref<2x72x8x10x6xf32, #tpu.memory_space<vmem>>, vector<2x3x4x10x6xf32>
    tpu.vector_store %arg2[%c0_71, %c21_72, %c4_73, %c0_74, %c0_75], %3 {strides = array<i32>} : memref<2x72x8x10x6xf32, #tpu.memory_space<vmem>>, vector<2x3x4x10x6xf32>,
    %c0_76 = arith.constant 0 : index
    %c24 = arith.constant 24 : index
    %c0_77 = arith.constant 0 : index
    %c0_78 = arith.constant 0 : index
    %c0_79 = arith.constant 0 : index
    %20 = vector.load %arg2[%c0_76, %c24, %c0_77, %c0_78, %c0_79] : memref<2x72x8x10x6xf32, #tpu.memory_space<vmem>>, vector<2x3x4x10x6xf32>
    tpu.vector_store %arg2[%c0_76, %c24, %c0_77, %c0_78, %c0_79], %3 {strides = array<i32>} : memref<2x72x8x10x6xf32, #tpu.memory_space<vmem>>, vector<2x3x4x10x6xf32>,
    %c0_80 = arith.constant 0 : index
    %c24_81 = arith.constant 24 : index
    %c4_82 = arith.constant 4 : index
    %c0_83 = arith.constant 0 : index
    %c0_84 = arith.constant 0 : index
    %21 = vector.load %arg2[%c0_80, %c24_81, %c4_82, %c0_83, %c0_84] : memref<2x72x8x10x6xf32, #tpu.memory_space<vmem>>, vector<2x3x4x10x6xf32>
    tpu.vector_store %arg2[%c0_80, %c24_81, %c4_82, %c0_83, %c0_84], %3 {strides = array<i32>} : memref<2x72x8x10x6xf32, #tpu.memory_space<vmem>>, vector<2x3x4x10x6xf32>,
    %c0_85 = arith.constant 0 : index
    %c27 = arith.constant 27 : index
    %c0_86 = arith.constant 0 : index
    %c0_87 = arith.constant 0 : index
    %c0_88 = arith.constant 0 : index
    %22 = vector.load %arg2[%c0_85, %c27, %c0_86, %c0_87, %c0_88] : memref<2x72x8x10x6xf32, #tpu.memory_space<vmem>>, vector<2x3x4x10x6xf32>
    tpu.vector_store %arg2[%c0_85, %c27, %c0_86, %c0_87, %c0_88], %3 {strides = array<i32>} : memref<2x72x8x10x6xf32, #tpu.memory_space<vmem>>, vector<2x3x4x10x6xf32>,
    %c0_89 = arith.constant 0 : index
    %c27_90 = arith.constant 27 : index
    %c4_91 = arith.constant 4 : index
    %c0_92 = arith.constant 0 : index
    %c0_93 = arith.constant 0 : index
    %23 = vector.load %arg2[%c0_89, %c27_90, %c4_91, %c0_92, %c0_93] : memref<2x72x8x10x6xf32, #tpu.memory_space<vmem>>, vector<2x3x4x10x6xf32>
    tpu.vector_store %arg2[%c0_89, %c27_90, %c4_91, %c0_92, %c0_93], %3 {strides = array<i32>} : memref<2x72x8x10x6xf32, #tpu.memory_space<vmem>>, vector<2x3x4x10x6xf32>,
    %c0_94 = arith.constant 0 : index
    %c30 = arith.constant 30 : index
    %c0_95 = arith.constant 0 : index
    %c0_96 = arith.constant 0 : index
    %c0_97 = arith.constant 0 : index
    %24 = vector.load %arg2[%c0_94, %c30, %c0_95, %c0_96, %c0_97] : memref<2x72x8x10x6xf32, #tpu.memory_space<vmem>>, vector<2x3x4x10x6xf32>
    tpu.vector_store %arg2[%c0_94, %c30, %c0_95, %c0_96, %c0_97], %3 {strides = array<i32>} : memref<2x72x8x10x6xf32, #tpu.memory_space<vmem>>, vector<2x3x4x10x6xf32>,
    %c0_98 = arith.constant 0 : index
    %c30_99 = arith.constant 30 : index
    %c4_100 = arith.constant 4 : index
    %c0_101 = arith.constant 0 : index
    %c0_102 = arith.constant 0 : index
    %25 = vector.load %arg2[%c0_98, %c30_99, %c4_100, %c0_101, %c0_102] : memref<2x72x8x10x6xf32, #tpu.memory_space<vmem>>, vector<2x3x4x10x6xf32>
    tpu.vector_store %arg2[%c0_98, %c30_99, %c4_100, %c0_101, %c0_102], %3 {strides = array<i32>} : memref<2x72x8x10x6xf32, #tpu.memory_space<vmem>>, vector<2x3x4x10x6xf32>,
    %c0_103 = arith.constant 0 : index
    %c33 = arith.constant 33 : index
    %c0_104 = arith.constant 0 : index
    %c0_105 = arith.constant 0 : index
    %c0_106 = arith.constant 0 : index
    %26 = vector.load %arg2[%c0_103, %c33, %c0_104, %c0_105, %c0_106] : memref<2x72x8x10x6xf32, #tpu.memory_space<vmem>>, vector<2x3x4x10x6xf32>
    tpu.vector_store %arg2[%c0_103, %c33, %c0_104, %c0_105, %c0_106], %3 {strides = array<i32>} : memref<2x72x8x10x6xf32, #tpu.memory_space<vmem>>, vector<2x3x4x10x6xf32>,
    %c0_107 = arith.constant 0 : index
    %c33_108 = arith.constant 33 : index
    %c4_109 = arith.constant 4 : index
    %c0_110 = arith.constant 0 : index
    %c0_111 = arith.constant 0 : index
    %27 = vector.load %arg2[%c0_107, %c33_108, %c4_109, %c0_110, %c0_111] : memref<2x72x8x10x6xf32, #tpu.memory_space<vmem>>, vector<2x3x4x10x6xf32>
    tpu.vector_store %arg2[%c0_107, %c33_108, %c4_109, %c0_110, %c0_111], %3 {strides = array<i32>} : memref<2x72x8x10x6xf32, #tpu.memory_space<vmem>>, vector<2x3x4x10x6xf32>,
    %c0_112 = arith.constant 0 : index
    %c36 = arith.constant 36 : index
    %c0_113 = arith.constant 0 : index
    %c0_114 = arith.constant 0 : index
    %c0_115 = arith.constant 0 : index
    %28 = vector.load %arg2[%c0_112, %c36, %c0_113, %c0_114, %c0_115] : memref<2x72x8x10x6xf32, #tpu.memory_space<vmem>>, vector<2x3x4x10x6xf32>
    tpu.vector_store %arg2[%c0_112, %c36, %c0_113, %c0_114, %c0_115], %3 {strides = array<i32>} : memref<2x72x8x10x6xf32, #tpu.memory_space<vmem>>, vector<2x3x4x10x6xf32>,
    %c0_116 = arith.constant 0 : index
    %c36_117 = arith.constant 36 : index
    %c4_118 = arith.constant 4 : index
    %c0_119 = arith.constant 0 : index
    %c0_120 = arith.constant 0 : index
    %29 = vector.load %arg2[%c0_116, %c36_117, %c4_118, %c0_119, %c0_120] : memref<2x72x8x10x6xf32, #tpu.memory_space<vmem>>, vector<2x3x4x10x6xf32>
    tpu.vector_store %arg2[%c0_116, %c36_117, %c4_118, %c0_119, %c0_120], %3 {strides = array<i32>} : memref<2x72x8x10x6xf32, #tpu.memory_space<vmem>>, vector<2x3x4x10x6xf32>,
    %c0_121 = arith.constant 0 : index
    %c39 = arith.constant 39 : index
    %c0_122 = arith.constant 0 : index
    %c0_123 = arith.constant 0 : index
    %c0_124 = arith.constant 0 : index
    %30 = vector.load %arg2[%c0_121, %c39, %c0_122, %c0_123, %c0_124] : memref<2x72x8x10x6xf32, #tpu.memory_space<vmem>>, vector<2x3x4x10x6xf32>
    tpu.vector_store %arg2[%c0_121, %c39, %c0_122, %c0_123, %c0_124], %3 {strides = array<i32>} : memref<2x72x8x10x6xf32, #tpu.memory_space<vmem>>, vector<2x3x4x10x6xf32>,
    %c0_125 = arith.constant 0 : index
    %c39_126 = arith.constant 39 : index
    %c4_127 = arith.constant 4 : index
    %c0_128 = arith.constant 0 : index
    %c0_129 = arith.constant 0 : index
    %31 = vector.load %arg2[%c0_125, %c39_126, %c4_127, %c0_128, %c0_129] : memref<2x72x8x10x6xf32, #tpu.memory_space<vmem>>, vector<2x3x4x10x6xf32>
    tpu.vector_store %arg2[%c0_125, %c39_126, %c4_127, %c0_128, %c0_129], %3 {strides = array<i32>} : memref<2x72x8x10x6xf32, #tpu.memory_space<vmem>>, vector<2x3x4x10x6xf32>,
    %c0_130 = arith.constant 0 : index
    %c42 = arith.constant 42 : index
    %c0_131 = arith.constant 0 : index
    %c0_132 = arith.constant 0 : index
    %c0_133 = arith.constant 0 : index
    %32 = vector.load %arg2[%c0_130, %c42, %c0_131, %c0_132, %c0_133] : memref<2x72x8x10x6xf32, #tpu.memory_space<vmem>>, vector<2x3x4x10x6xf32>
    tpu.vector_store %arg2[%c0_130, %c42, %c0_131, %c0_132, %c0_133], %3 {strides = array<i32>} : memref<2x72x8x10x6xf32, #tpu.memory_space<vmem>>, vector<2x3x4x10x6xf32>,
    %c0_134 = arith.constant 0 : index
    %c42_135 = arith.constant 42 : index
    %c4_136 = arith.constant 4 : index
    %c0_137 = arith.constant 0 : index
    %c0_138 = arith.constant 0 : index
    %33 = vector.load %arg2[%c0_134, %c42_135, %c4_136, %c0_137, %c0_138] : memref<2x72x8x10x6xf32, #tpu.memory_space<vmem>>, vector<2x3x4x10x6xf32>
    tpu.vector_store %arg2[%c0_134, %c42_135, %c4_136, %c0_137, %c0_138], %3 {strides = array<i32>} : memref<2x72x8x10x6xf32, #tpu.memory_space<vmem>>, vector<2x3x4x10x6xf32>,
    %c0_139 = arith.constant 0 : index
    %c45 = arith.constant 45 : index
    %c0_140 = arith.constant 0 : index
    %c0_141 = arith.constant 0 : index
    %c0_142 = arith.constant 0 : index
    %34 = vector.load %arg2[%c0_139, %c45, %c0_140, %c0_141, %c0_142] : memref<2x72x8x10x6xf32, #tpu.memory_space<vmem>>, vector<2x3x4x10x6xf32>
    tpu.vector_store %arg2[%c0_139, %c45, %c0_140, %c0_141, %c0_142], %3 {strides = array<i32>} : memref<2x72x8x10x6xf32, #tpu.memory_space<vmem>>, vector<2x3x4x10x6xf32>,
    %c0_143 = arith.constant 0 : index
    %c45_144 = arith.constant 45 : index
    %c4_145 = arith.constant 4 : index
    %c0_146 = arith.constant 0 : index
    %c0_147 = arith.constant 0 : index
    %35 = vector.load %arg2[%c0_143, %c45_144, %c4_145, %c0_146, %c0_147] : memref<2x72x8x10x6xf32, #tpu.memory_space<vmem>>, vector<2x3x4x10x6xf32>
    tpu.vector_store %arg2[%c0_143, %c45_144, %c4_145, %c0_146, %c0_147], %3 {strides = array<i32>} : memref<2x72x8x10x6xf32, #tpu.memory_space<vmem>>, vector<2x3x4x10x6xf32>,
    %c0_148 = arith.constant 0 : index
    %c48 = arith.constant 48 : index
    %c0_149 = arith.constant 0 : index
    %c0_150 = arith.constant 0 : index
    %c0_151 = arith.constant 0 : index
    %36 = vector.load %arg2[%c0_148, %c48, %c0_149, %c0_150, %c0_151] : memref<2x72x8x10x6xf32, #tpu.memory_space<vmem>>, vector<2x3x4x10x6xf32>
    tpu.vector_store %arg2[%c0_148, %c48, %c0_149, %c0_150, %c0_151], %3 {strides = array<i32>} : memref<2x72x8x10x6xf32, #tpu.memory_space<vmem>>, vector<2x3x4x10x6xf32>,
    %c0_152 = arith.constant 0 : index
    %c48_153 = arith.constant 48 : index
    %c4_154 = arith.constant 4 : index
    %c0_155 = arith.constant 0 : index
    %c0_156 = arith.constant 0 : index
    %37 = vector.load %arg2[%c0_152, %c48_153, %c4_154, %c0_155, %c0_156] : memref<2x72x8x10x6xf32, #tpu.memory_space<vmem>>, vector<2x3x4x10x6xf32>
    tpu.vector_store %arg2[%c0_152, %c48_153, %c4_154, %c0_155, %c0_156], %3 {strides = array<i32>} : memref<2x72x8x10x6xf32, #tpu.memory_space<vmem>>, vector<2x3x4x10x6xf32>,
    %c0_157 = arith.constant 0 : index
    %c51 = arith.constant 51 : index
    %c0_158 = arith.constant 0 : index
    %c0_159 = arith.constant 0 : index
    %c0_160 = arith.constant 0 : index
    %38 = vector.load %arg2[%c0_157, %c51, %c0_158, %c0_159, %c0_160] : memref<2x72x8x10x6xf32, #tpu.memory_space<vmem>>, vector<2x3x4x10x6xf32>
    tpu.vector_store %arg2[%c0_157, %c51, %c0_158, %c0_159, %c0_160], %3 {strides = array<i32>} : memref<2x72x8x10x6xf32, #tpu.memory_space<vmem>>, vector<2x3x4x10x6xf32>,
    %c0_161 = arith.constant 0 : index
    %c51_162 = arith.constant 51 : index
    %c4_163 = arith.constant 4 : index
    %c0_164 = arith.constant 0 : index
    %c0_165 = arith.constant 0 : index
    %39 = vector.load %arg2[%c0_161, %c51_162, %c4_163, %c0_164, %c0_165] : memref<2x72x8x10x6xf32, #tpu.memory_space<vmem>>, vector<2x3x4x10x6xf32>
    tpu.vector_store %arg2[%c0_161, %c51_162, %c4_163, %c0_164, %c0_165], %3 {strides = array<i32>} : memref<2x72x8x10x6xf32, #tpu.memory_space<vmem>>, vector<2x3x4x10x6xf32>,
    %c0_166 = arith.constant 0 : index
    %c54 = arith.constant 54 : index
    %c0_167 = arith.constant 0 : index
    %c0_168 = arith.constant 0 : index
    %c0_169 = arith.constant 0 : index
    %40 = vector.load %arg2[%c0_166, %c54, %c0_167, %c0_168, %c0_169] : memref<2x72x8x10x6xf32, #tpu.memory_space<vmem>>, vector<2x3x4x10x6xf32>
    tpu.vector_store %arg2[%c0_166, %c54, %c0_167, %c0_168, %c0_169], %3 {strides = array<i32>} : memref<2x72x8x10x6xf32, #tpu.memory_space<vmem>>, vector<2x3x4x10x6xf32>,
    %c0_170 = arith.constant 0 : index
    %c54_171 = arith.constant 54 : index
    %c4_172 = arith.constant 4 : index
    %c0_173 = arith.constant 0 : index
    %c0_174 = arith.constant 0 : index
    %41 = vector.load %arg2[%c0_170, %c54_171, %c4_172, %c0_173, %c0_174] : memref<2x72x8x10x6xf32, #tpu.memory_space<vmem>>, vector<2x3x4x10x6xf32>
    tpu.vector_store %arg2[%c0_170, %c54_171, %c4_172, %c0_173, %c0_174], %3 {strides = array<i32>} : memref<2x72x8x10x6xf32, #tpu.memory_space<vmem>>, vector<2x3x4x10x6xf32>,
    %c0_175 = arith.constant 0 : index
    %c57 = arith.constant 57 : index
    %c0_176 = arith.constant 0 : index
    %c0_177 = arith.constant 0 : index
    %c0_178 = arith.constant 0 : index
    %42 = vector.load %arg2[%c0_175, %c57, %c0_176, %c0_177, %c0_178] : memref<2x72x8x10x6xf32, #tpu.memory_space<vmem>>, vector<2x3x4x10x6xf32>
    tpu.vector_store %arg2[%c0_175, %c57, %c0_176, %c0_177, %c0_178], %3 {strides = array<i32>} : memref<2x72x8x10x6xf32, #tpu.memory_space<vmem>>, vector<2x3x4x10x6xf32>,
    %c0_179 = arith.constant 0 : index
    %c57_180 = arith.constant 57 : index
    %c4_181 = arith.constant 4 : index
    %c0_182 = arith.constant 0 : index
    %c0_183 = arith.constant 0 : index
    %43 = vector.load %arg2[%c0_179, %c57_180, %c4_181, %c0_182, %c0_183] : memref<2x72x8x10x6xf32, #tpu.memory_space<vmem>>, vector<2x3x4x10x6xf32>
    tpu.vector_store %arg2[%c0_179, %c57_180, %c4_181, %c0_182, %c0_183], %3 {strides = array<i32>} : memref<2x72x8x10x6xf32, #tpu.memory_space<vmem>>, vector<2x3x4x10x6xf32>,
    %c0_184 = arith.constant 0 : index
    %c60 = arith.constant 60 : index
    %c0_185 = arith.constant 0 : index
    %c0_186 = arith.constant 0 : index
    %c0_187 = arith.constant 0 : index
    %44 = vector.load %arg2[%c0_184, %c60, %c0_185, %c0_186, %c0_187] : memref<2x72x8x10x6xf32, #tpu.memory_space<vmem>>, vector<2x3x4x10x6xf32>
    tpu.vector_store %arg2[%c0_184, %c60, %c0_185, %c0_186, %c0_187], %3 {strides = array<i32>} : memref<2x72x8x10x6xf32, #tpu.memory_space<vmem>>, vector<2x3x4x10x6xf32>,
    %c0_188 = arith.constant 0 : index
    %c60_189 = arith.constant 60 : index
    %c4_190 = arith.constant 4 : index
    %c0_191 = arith.constant 0 : index
    %c0_192 = arith.constant 0 : index
    %45 = vector.load %arg2[%c0_188, %c60_189, %c4_190, %c0_191, %c0_192] : memref<2x72x8x10x6xf32, #tpu.memory_space<vmem>>, vector<2x3x4x10x6xf32>
    tpu.vector_store %arg2[%c0_188, %c60_189, %c4_190, %c0_191, %c0_192], %3 {strides = array<i32>} : memref<2x72x8x10x6xf32, #tpu.memory_space<vmem>>, vector<2x3x4x10x6xf32>,
    %c0_193 = arith.constant 0 : index
    %c63 = arith.constant 63 : index
    %c0_194 = arith.constant 0 : index
    %c0_195 = arith.constant 0 : index
    %c0_196 = arith.constant 0 : index
    %46 = vector.load %arg2[%c0_193, %c63, %c0_194, %c0_195, %c0_196] : memref<2x72x8x10x6xf32, #tpu.memory_space<vmem>>, vector<2x3x4x10x6xf32>
    tpu.vector_store %arg2[%c0_193, %c63, %c0_194, %c0_195, %c0_196], %3 {strides = array<i32>} : memref<2x72x8x10x6xf32, #tpu.memory_space<vmem>>, vector<2x3x4x10x6xf32>,
    %c0_197 = arith.constant 0 : index
    %c63_198 = arith.constant 63 : index
    %c4_199 = arith.constant 4 : index
    %c0_200 = arith.constant 0 : index
    %c0_201 = arith.constant 0 : index
    %47 = vector.load %arg2[%c0_197, %c63_198, %c4_199, %c0_200, %c0_201] : memref<2x72x8x10x6xf32, #tpu.memory_space<vmem>>, vector<2x3x4x10x6xf32>
    tpu.vector_store %arg2[%c0_197, %c63_198, %c4_199, %c0_200, %c0_201], %3 {strides = array<i32>} : memref<2x72x8x10x6xf32, #tpu.memory_space<vmem>>, vector<2x3x4x10x6xf32>,
    %c0_202 = arith.constant 0 : index
    %c66 = arith.constant 66 : index
    %c0_203 = arith.constant 0 : index
    %c0_204 = arith.constant 0 : index
    %c0_205 = arith.constant 0 : index
    %48 = vector.load %arg2[%c0_202, %c66, %c0_203, %c0_204, %c0_205] : memref<2x72x8x10x6xf32, #tpu.memory_space<vmem>>, vector<2x3x4x10x6xf32>
    tpu.vector_store %arg2[%c0_202, %c66, %c0_203, %c0_204, %c0_205], %3 {strides = array<i32>} : memref<2x72x8x10x6xf32, #tpu.memory_space<vmem>>, vector<2x3x4x10x6xf32>,
    %c0_206 = arith.constant 0 : index
    %c66_207 = arith.constant 66 : index
    %c4_208 = arith.constant 4 : index
    %c0_209 = arith.constant 0 : index
    %c0_210 = arith.constant 0 : index
    %49 = vector.load %arg2[%c0_206, %c66_207, %c4_208, %c0_209, %c0_210] : memref<2x72x8x10x6xf32, #tpu.memory_space<vmem>>, vector<2x3x4x10x6xf32>
    tpu.vector_store %arg2[%c0_206, %c66_207, %c4_208, %c0_209, %c0_210], %3 {strides = array<i32>} : memref<2x72x8x10x6xf32, #tpu.memory_space<vmem>>, vector<2x3x4x10x6xf32>,
    %c0_211 = arith.constant 0 : index
    %c69 = arith.constant 69 : index
    %c0_212 = arith.constant 0 : index
    %c0_213 = arith.constant 0 : index
    %c0_214 = arith.constant 0 : index
    %50 = vector.load %arg2[%c0_211, %c69, %c0_212, %c0_213, %c0_214] : memref<2x72x8x10x6xf32, #tpu.memory_space<vmem>>, vector<2x3x4x10x6xf32>
    tpu.vector_store %arg2[%c0_211, %c69, %c0_212, %c0_213, %c0_214], %3 {strides = array<i32>} : memref<2x72x8x10x6xf32, #tpu.memory_space<vmem>>, vector<2x3x4x10x6xf32>,
    %c0_215 = arith.constant 0 : index
    %c69_216 = arith.constant 69 : index
    %c4_217 = arith.constant 4 : index
    %c0_218 = arith.constant 0 : index
    %c0_219 = arith.constant 0 : index
    %51 = vector.load %arg2[%c0_215, %c69_216, %c4_217, %c0_218, %c0_219] : memref<2x72x8x10x6xf32, #tpu.memory_space<vmem>>, vector<2x3x4x10x6xf32>
    tpu.vector_store %arg2[%c0_215, %c69_216, %c4_217, %c0_218, %c0_219], %3 {strides = array<i32>} : memref<2x72x8x10x6xf32, #tpu.memory_space<vmem>>, vector<2x3x4x10x6xf32>,
    return
  }
  func.func @transform_0(%arg0: i32) -> (i32, i32, i32, i32, i32) {
    %c0_i32 = arith.constant 0 : i32
    %c0_i32_0 = arith.constant 0 : i32
    %c0_i32_1 = arith.constant 0 : i32
    %c0_i32_2 = arith.constant 0 : i32
    %c0_i32_3 = arith.constant 0 : i32
    %c0_i32_4 = arith.constant 0 : i32
    return %c0_i32, %c0_i32_0, %c0_i32_1, %c0_i32_2, %c0_i32_3 : i32, i32, i32, i32, i32
  }
  func.func @transform_1(%arg0: i32) -> (i32, i32, i32, i32, i32) {
    %c0_i32 = arith.constant 0 : i32
    %c0_i32_0 = arith.constant 0 : i32
    %c0_i32_1 = arith.constant 0 : i32
    %c0_i32_2 = arith.constant 0 : i32
    %c0_i32_3 = arith.constant 0 : i32
    %c0_i32_4 = arith.constant 0 : i32
    return %c0_i32, %c0_i32_0, %c0_i32_1, %c0_i32_2, %c0_i32_3 : i32, i32, i32, i32, i32
  }
}

</mosaic_0001>

<bundles_post_ra>
// kernel: model_forward.1
= control target key start
LH: loop header
LB: loop body
LE: loop exit
PB: predicated region body
PF: predicated region fallthrough
CT: control target
= control target key end

     0   :  { %vm128_vm0 = vcmask 1044480   ;;  %vm153_vm1 = vcmask 48128   ;;  %vm155_vm2 = vcmask 41984   ;;  %s16622_s0 = inlined_call_operand.vmem [shape: f32[2,3,4,5,6], index: 0, kind: input, shape index: {}]   ;;  %s16623_s1 = inlined_call_operand.vmem [shape: f32[2,72,8,10,6], index: 1, kind: output, shape index: {}]  }
   0x1   :  { %v8_v0 = vld [vmem:[%s16622_s0] sm:$0x1f]  ;;  %v4782_v1 = vld [vmem:[%s16622_s0 + $0x8] sm:$0x1f]  ;;  %v4787_v2 = vld [vmem:[%s16622_s0 + $0x10] sm:$0x1f] }
   0x2   :  { %v32_v3 = vmax.f32 %v8_v0, 0.0  ;;  %v33_v4 = vmax.f32 %v4782_v1, 0.0  ;;  %v34_v5 = vmax.f32 %v4787_v2, 0.0  ;;  %v4794_v6 = vld [vmem:[%s16622_s0 + $0x18] sm:$0x1f] }
   0x3   :  { %v35_v7 = vmax.f32 %v4794_v6, 0.0  ;;  %v4800_v8 = vld [vmem:[%s16622_s0 + $0x20] sm:$0x1f]  ;;  %v4805_v9 = vld [vmem:[%s16622_s0 + $0x28] sm:$0x1f] }
   0x4   :  { %v80_v10 = vrot.slane %v32_v3, 3  ;;  %v4809_v11 = vrot.slane %v33_v4, 3  ;;  %v4813_v12 = vrot.slane %v34_v5, 3  ;;  %v36_v13 = vmax.f32 %v4800_v8, 0.0  ;;  %v4819_v14 = vld [vmem:[%s16622_s0 + $0x30] sm:$0x1f] }
   0x5   :  { %v4823_v15 = vrot.slane %v35_v7, 3  ;;  %v37_v16 = vmax.f32 %v4805_v9, 0.0  ;;  %v38_v17 = vmax.f32 %v4819_v14, 0.0  ;;  %v4830_v18 = vld [vmem:[%s16622_s0 + $0x38] sm:$0x1f] }
   0x6   :  { %v4833_v19 = vsel %vm128_vm0, %v32_v3, %v80_v10  ;;  %156 = vst.msk [vmem:[%s16623_s1 + $0x8] sm:$0x3] %vm155_vm2, %v80_v10  ;;  %2511 = vst.msk [vmem:[%s16623_s1 + $0x48] sm:$0x3] %vm155_vm2, %v80_v10  ;;  %v5031_v20 = vsel %vm128_vm0, %v33_v4, %v4809_v11  ;;  %v5277_v21 = vsel %vm128_vm0, %v34_v5, %v4813_v12  ;;  %v5521_v22 = vrot.slane %v36_v13, 3 }
   0x7   :  { %2559 = vst.msk [vmem:[%s16623_s1 + $0x188] sm:$0x3] %vm155_vm2, %v80_v10  ;;  %2607 = vst.msk [vmem:[%s16623_s1 + $0x1c8] sm:$0x3] %vm155_vm2, %v80_v10  ;;  %v5526_v23 = vld [vmem:[%s16622_s0 + $0x40] sm:$0x1f]  ;;  %v6257_v25 = vsel %vm128_vm0, %v35_v7, %v4823_v15 }
   0x8   :  { %2655 = vst.msk [vmem:[%s16623_s1 + $0x308] sm:$0x3] %vm155_vm2, %v80_v10  ;;  %2703 = vst.msk [vmem:[%s16623_s1 + $0x348] sm:$0x3] %vm155_vm2, %v80_v10  ;;  %v5531_v24 = vld [vmem:[%s16622_s0 + $0x48] sm:$0x1f]  ;;  %v6757_v30 = vsel %vm128_vm0, %v36_v13, %v5521_v22 }
   0x9   :  { %2751 = vst.msk [vmem:[%s16623_s1 + $0x488] sm:$0x3] %vm155_vm2, %v80_v10  ;;  %2799 = vst.msk [vmem:[%s16623_s1 + $0x4c8] sm:$0x3] %vm155_vm2, %v80_v10  ;;  %v6501_v26 = vrot.slane %v37_v16, 3  ;;  %v6505_v27 = vrot.slane %v38_v17, 3 }
   0xa   :  { %2847 = vst.msk [vmem:[%s16623_s1 + $0x608] sm:$0x3] %vm155_vm2, %v80_v10  ;;  %2895 = vst.msk [vmem:[%s16623_s1 + $0x648] sm:$0x3] %vm155_vm2, %v80_v10  ;;  %v39_v28 = vmax.f32 %v4830_v18, 0.0  ;;  %v40_v31 = vmax.f32 %v5526_v23, 0.0 }
   0xb   :  { %2943 = vst.msk [vmem:[%s16623_s1 + $0x788] sm:$0x3] %vm155_vm2, %v80_v10  ;;  %2991 = vst.msk [vmem:[%s16623_s1 + $0x7c8] sm:$0x3] %vm155_vm2, %v80_v10  ;;  %v6511_v29 = vld [vmem:[%s16622_s0 + $0x50] sm:$0x1f]  ;;  %v7251_v35 = vsel %vm128_vm0, %v37_v16, %v6501_v26  ;;  %v7497_v36 = vsel %vm128_vm0, %v38_v17, %v6505_v27 }
   0xc   :  { %3039 = vst.msk [vmem:[%s16623_s1 + $0x908] sm:$0x3] %vm155_vm2, %v80_v10  ;;  %3087 = vst.msk [vmem:[%s16623_s1 + $0x948] sm:$0x3] %vm155_vm2, %v80_v10  ;;  %v41_v32 = vmax.f32 %v5531_v24, 0.0  ;;  %v42_v33 = vmax.f32 %v6511_v29, 0.0 }
   0xd   :  { %3135 = vst.msk [vmem:[%s16623_s1 + $0xa88] sm:$0x3] %vm155_vm2, %v80_v10  ;;  %3183 = vst.msk [vmem:[%s16623_s1 + $0xac8] sm:$0x3] %vm155_vm2, %v80_v10  ;;  %v7005_v34 = vld [vmem:[%s16622_s0 + $0x58] sm:$0x1f] }
   0xe   :  { %3231 = vst.msk [vmem:[%s16623_s1 + $0xc08] sm:$0x3] %vm155_vm2, %v80_v10  ;;  %3279 = vst.msk [vmem:[%s16623_s1 + $0xc48] sm:$0x3] %vm155_vm2, %v80_v10  ;;  %v7741_v37 = vrot.slane %v39_v28, 3  ;;  %v43_v38 = vmax.f32 %v7005_v34, 0.0 }
   0xf   :  { %3327 = vst.msk [vmem:[%s16623_s1 + $0xd88] sm:$0x3] %vm155_vm2, %v80_v10  ;;  %3375 = vst.msk [vmem:[%s16623_s1 + $0xdc8] sm:$0x3] %vm155_vm2, %v80_v10  ;;  %v7747_v39 = vld [vmem:[%s16622_s0 + $0x60] sm:$0x1f] }
  0x10   :  { %3423 = vst.msk [vmem:[%s16623_s1 + $0xf08] sm:$0x3] %vm155_vm2, %v80_v10  ;;  %3471 = vst.msk [vmem:[%s16623_s1 + $0xf48] sm:$0x3] %vm155_vm2, %v80_v10  ;;  %v7752_v40 = vld [vmem:[%s16622_s0 + $0x68] sm:$0x1f]  ;;  %v8256_v46 = vsel %vm128_vm0, %v39_v28, %v7741_v37 }
  0x11   :  { %3519 = vst.msk [vmem:[%s16623_s1 + $0x1088] sm:$0x3] %vm155_vm2, %v80_v10  ;;  %3567 = vst.msk [vmem:[%s16623_s1 + $0x10c8] sm:$0x3] %vm155_vm2, %v80_v10  ;;  %v8236_v41 = vrot.slane %v40_v31, 3  ;;  %v8240_v42 = vrot.slane %v41_v32, 3 }
  0x12   :  { %3615 = vst.msk [vmem:[%s16623_s1 + $0x1208] sm:$0x3] %vm155_vm2, %v80_v10  ;;  %3663 = vst.msk [vmem:[%s16623_s1 + $0x1248] sm:$0x3] %vm155_vm2, %v80_v10  ;;  %v8244_v43 = vrot.slane %v42_v33, 3  ;;  %v44_v44 = vmax.f32 %v7747_v39, 0.0 }
  0x13   :  { %3711 = vst.msk [vmem:[%s16623_s1 + $0x1388] sm:$0x3] %vm155_vm2, %v80_v10  ;;  %3759 = vst.msk [vmem:[%s16623_s1 + $0x13c8] sm:$0x3] %vm155_vm2, %v80_v10  ;;  %v8250_v45 = vld [vmem:[%s16622_s0 + $0x70] sm:$0x1f]  ;;  %v8753_v51 = vsel %vm128_vm0, %v40_v31, %v8236_v41  ;;  %v8999_v52 = vsel %vm128_vm0, %v41_v32, %v8240_v42 }
  0x14   :  { %3807 = vst.msk [vmem:[%s16623_s1 + $0x1508] sm:$0x3] %vm155_vm2, %v80_v10  ;;  %3855 = vst.msk [vmem:[%s16623_s1 + $0x1548] sm:$0x3] %vm155_vm2, %v80_v10  ;;  %v8500_v47 = vrot.slane %v43_v38, 3  ;;  %v45_v48 = vmax.f32 %v7752_v40, 0.0  ;;  %v9245_v53 = vsel %vm128_vm0, %v42_v33, %v8244_v43 }
  0x15   :  { %3903 = vst.msk [vmem:[%s16623_s1 + $0x1688] sm:$0x3] %vm155_vm2, %v80_v10  ;;  %3951 = vst.msk [vmem:[%s16623_s1 + $0x16c8] sm:$0x3] %vm155_vm2, %v80_v10  ;;  %v46_v49 = vmax.f32 %v8250_v45, 0.0  ;;  %v9489_v54 = vrot.slane %v44_v44, 3 }
  0x16   :  { %3999 = vst.msk [vmem:[%s16623_s1 + $0x1808] sm:$0x3] %vm155_vm2, %v80_v10  ;;  %4047 = vst.msk [vmem:[%s16623_s1 + $0x1848] sm:$0x3] %vm155_vm2, %v80_v10  ;;  %v8507_v50 = vld [vmem:[%s16622_s0 + $0x78] sm:$0x1f]  ;;  %v10225_v57 = vsel %vm128_vm0, %v43_v38, %v8500_v47 }
  0x17   :  { %4095 = vst.msk [vmem:[%s16623_s1 + $0x1988] sm:$0x3] %vm155_vm2, %v80_v10  ;;  %4143 = vst.msk [vmem:[%s16623_s1 + $0x19c8] sm:$0x3] %vm155_vm2, %v80_v10  ;;  %v9494_v55 = vld [vmem:[%s16622_s0 + $0x80] sm:$0x1f]  ;;  %v10725_v62 = vsel %vm128_vm0, %v44_v44, %v9489_v54 }
  0x18   :  { %4191 = vst.msk [vmem:[%s16623_s1 + $0x1b08] sm:$0x3] %vm155_vm2, %v80_v10  ;;  %4239 = vst.msk [vmem:[%s16623_s1 + $0x1b48] sm:$0x3] %vm155_vm2, %v80_v10  ;;  %v9499_v56 = vld [vmem:[%s16622_s0 + $0x88] sm:$0x1f] }
  0x19   :  { %4287 = vst.msk [vmem:[%s16623_s1 + $0x1c88] sm:$0x3] %vm155_vm2, %v80_v10  ;;  %4335 = vst.msk [vmem:[%s16623_s1 + $0x1cc8] sm:$0x3] %vm155_vm2, %v80_v10  ;;  %v10469_v58 = vrot.slane %v45_v48, 3  ;;  %v10473_v59 = vrot.slane %v46_v49, 3 }
  0x1a   :  { %4383 = vst.msk [vmem:[%s16623_s1 + $0x1e08] sm:$0x3] %vm155_vm2, %v80_v10  ;;  %4431 = vst.msk [vmem:[%s16623_s1 + $0x1e48] sm:$0x3] %vm155_vm2, %v80_v10  ;;  %v47_v60 = vmax.f32 %v8507_v50, 0.0  ;;  %v48_v63 = vmax.f32 %v9494_v55, 0.0 }
  0x1b   :  { %4479 = vst.msk [vmem:[%s16623_s1 + $0x1f88] sm:$0x3] %vm155_vm2, %v80_v10  ;;  %4527 = vst.msk [vmem:[%s16623_s1 + $0x1fc8] sm:$0x3] %vm155_vm2, %v80_v10  ;;  %v10479_v61 = vld [vmem:[%s16622_s0 + $0x90] sm:$0x1f]  ;;  %v11219_v3 = vsel %vm128_vm0, %v45_v48, %v10469_v58  ;;  %v11465_v4 = vsel %vm128_vm0, %v46_v49, %v10473_v59 }
  0x1c   :  { %4575 = vst.msk [vmem:[%s16623_s1 + $0x2108] sm:$0x3] %vm155_vm2, %v80_v10  ;;  %4623 = vst.msk [vmem:[%s16623_s1 + $0x2148] sm:$0x3] %vm155_vm2, %v80_v10  ;;  %v49_v0 = vmax.f32 %v9499_v56, 0.0  ;;  %v50_v1 = vmax.f32 %v10479_v61, 0.0 }
  0x1d   :  { %4671 = vst.msk [vmem:[%s16623_s1 + $0x2288] sm:$0x3] %vm155_vm2, %v80_v10  ;;  %4719 = vst.msk [vmem:[%s16623_s1 + $0x22c8] sm:$0x3] %vm155_vm2, %v80_v10  ;;  %v10973_v2 = vld [vmem:[%s16622_s0 + $0x98] sm:$0x1f] }
  0x1e   :  { %158 = vst.msk [vmem:[%s16623_s1 + $0x18] sm:$0x3] %vm155_vm2, %v4809_v11  ;;  %2513 = vst.msk [vmem:[%s16623_s1 + $0x58] sm:$0x3] %vm155_vm2, %v4809_v11  ;;  %v11709_v5 = vrot.slane %v47_v60, 3  ;;  %v51_v6 = vmax.f32 %v10973_v2, 0.0 }
  0x1f   :  { %2561 = vst.msk [vmem:[%s16623_s1 + $0x198] sm:$0x3] %vm155_vm2, %v4809_v11  ;;  %2609 = vst.msk [vmem:[%s16623_s1 + $0x1d8] sm:$0x3] %vm155_vm2, %v4809_v11  ;;  %v11715_v7 = vld [vmem:[%s16622_s0 + $0xa0] sm:$0x1f] }
  0x20   :  { %2657 = vst.msk [vmem:[%s16623_s1 + $0x318] sm:$0x3] %vm155_vm2, %v4809_v11  ;;  %2705 = vst.msk [vmem:[%s16623_s1 + $0x358] sm:$0x3] %vm155_vm2, %v4809_v11  ;;  %v11720_v8 = vld [vmem:[%s16622_s0 + $0xa8] sm:$0x1f]  ;;  %v12224_v14 = vsel %vm128_vm0, %v47_v60, %v11709_v5 }
  0x21   :  { %2753 = vst.msk [vmem:[%s16623_s1 + $0x498] sm:$0x3] %vm155_vm2, %v4809_v11  ;;  %2801 = vst.msk [vmem:[%s16623_s1 + $0x4d8] sm:$0x3] %vm155_vm2, %v4809_v11  ;;  %v12204_v9 = vrot.slane %v48_v63, 3  ;;  %v12208_v10 = vrot.slane %v49_v0, 3 }
  0x22   :  { %2849 = vst.msk [vmem:[%s16623_s1 + $0x618] sm:$0x3] %vm155_vm2, %v4809_v11  ;;  %2897 = vst.msk [vmem:[%s16623_s1 + $0x658] sm:$0x3] %vm155_vm2, %v4809_v11  ;;  %v12218_v13 = vld [vmem:[%s16622_s0 + $0xb0] sm:$0x1f] }
  0x23   :  { %2945 = vst.msk [vmem:[%s16623_s1 + $0x798] sm:$0x3] %vm155_vm2, %v4809_v11  ;;  %2993 = vst.msk [vmem:[%s16623_s1 + $0x7d8] sm:$0x3] %vm155_vm2, %v4809_v11  ;;  %v53_v16 = vmax.f32 %v11720_v8, 0.0  ;;  %v54_v17 = vmax.f32 %v12218_v13, 0.0 }
  0x24   :  { %3041 = vst.msk [vmem:[%s16623_s1 + $0x918] sm:$0x3] %vm155_vm2, %v4809_v11  ;;  %3089 = vst.msk [vmem:[%s16623_s1 + $0x958] sm:$0x3] %vm155_vm2, %v4809_v11  ;;  %v12475_v18 = vld [vmem:[%s16622_s0 + $0xb8] sm:$0x1f] }
  0x25   :  { %3137 = vst.msk [vmem:[%s16623_s1 + $0xa98] sm:$0x3] %vm155_vm2, %v4809_v11  ;;  %3185 = vst.msk [vmem:[%s16623_s1 + $0xad8] sm:$0x3] %vm155_vm2, %v4809_v11  ;;  %v14427_v24 = vrot.slane %v53_v16, 3 }
  0x26   :  { %3233 = vst.msk [vmem:[%s16623_s1 + $0xc18] sm:$0x3] %vm155_vm2, %v4809_v11  ;;  %3281 = vst.msk [vmem:[%s16623_s1 + $0xc58] sm:$0x3] %vm155_vm2, %v4809_v11 }
  0x27   :  { %3329 = vst.msk [vmem:[%s16623_s1 + $0xd98] sm:$0x3] %vm155_vm2, %v4809_v11  ;;  %3377 = vst.msk [vmem:[%s16623_s1 + $0xdd8] sm:$0x3] %vm155_vm2, %v4809_v11  ;;  %v15164_v28 = vsel %vm128_vm0, %v53_v16, %v14427_v24 }
  0x28   :  { %3425 = vst.msk [vmem:[%s16623_s1 + $0xf18] sm:$0x3] %vm155_vm2, %v4809_v11  ;;  %3473 = vst.msk [vmem:[%s16623_s1 + $0xf58] sm:$0x3] %vm155_vm2, %v4809_v11 }
  0x29   :  { %3521 = vst.msk [vmem:[%s16623_s1 + $0x1098] sm:$0x3] %vm155_vm2, %v4809_v11  ;;  %3569 = vst.msk [vmem:[%s16623_s1 + $0x10d8] sm:$0x3] %vm155_vm2, %v4809_v11 }
  0x2a   :  { %3617 = vst.msk [vmem:[%s16623_s1 + $0x1218] sm:$0x3] %vm155_vm2, %v4809_v11  ;;  %3665 = vst.msk [vmem:[%s16623_s1 + $0x1258] sm:$0x3] %vm155_vm2, %v4809_v11 }
  0x2b   :  { %3713 = vst.msk [vmem:[%s16623_s1 + $0x1398] sm:$0x3] %vm155_vm2, %v4809_v11  ;;  %3761 = vst.msk [vmem:[%s16623_s1 + $0x13d8] sm:$0x3] %vm155_vm2, %v4809_v11 }
  0x2c   :  { %3809 = vst.msk [vmem:[%s16623_s1 + $0x1518] sm:$0x3] %vm155_vm2, %v4809_v11  ;;  %3857 = vst.msk [vmem:[%s16623_s1 + $0x1558] sm:$0x3] %vm155_vm2, %v4809_v11 }
  0x2d   :  { %3905 = vst.msk [vmem:[%s16623_s1 + $0x1698] sm:$0x3] %vm155_vm2, %v4809_v11  ;;  %3953 = vst.msk [vmem:[%s16623_s1 + $0x16d8] sm:$0x3] %vm155_vm2, %v4809_v11 }
  0x2e   :  { %4001 = vst.msk [vmem:[%s16623_s1 + $0x1818] sm:$0x3] %vm155_vm2, %v4809_v11  ;;  %4049 = vst.msk [vmem:[%s16623_s1 + $0x1858] sm:$0x3] %vm155_vm2, %v4809_v11 }
  0x2f   :  { %4097 = vst.msk [vmem:[%s16623_s1 + $0x1998] sm:$0x3] %vm155_vm2, %v4809_v11  ;;  %4145 = vst.msk [vmem:[%s16623_s1 + $0x19d8] sm:$0x3] %vm155_vm2, %v4809_v11 }
  0x30   :  { %4193 = vst.msk [vmem:[%s16623_s1 + $0x1b18] sm:$0x3] %vm155_vm2, %v4809_v11  ;;  %4241 = vst.msk [vmem:[%s16623_s1 + $0x1b58] sm:$0x3] %vm155_vm2, %v4809_v11 }
  0x31   :  { %4289 = vst.msk [vmem:[%s16623_s1 + $0x1c98] sm:$0x3] %vm155_vm2, %v4809_v11  ;;  %4337 = vst.msk [vmem:[%s16623_s1 + $0x1cd8] sm:$0x3] %vm155_vm2, %v4809_v11 }
  0x32   :  { %4385 = vst.msk [vmem:[%s16623_s1 + $0x1e18] sm:$0x3] %vm155_vm2, %v4809_v11  ;;  %4433 = vst.msk [vmem:[%s16623_s1 + $0x1e58] sm:$0x3] %vm155_vm2, %v4809_v11 }
  0x33   :  { %4481 = vst.msk [vmem:[%s16623_s1 + $0x1f98] sm:$0x3] %vm155_vm2, %v4809_v11  ;;  %4529 = vst.msk [vmem:[%s16623_s1 + $0x1fd8] sm:$0x3] %vm155_vm2, %v4809_v11 }
  0x34   :  { %4577 = vst.msk [vmem:[%s16623_s1 + $0x2118] sm:$0x3] %vm155_vm2, %v4809_v11  ;;  %4625 = vst.msk [vmem:[%s16623_s1 + $0x2158] sm:$0x3] %vm155_vm2, %v4809_v11 }
  0x35   :  { %4673 = vst.msk [vmem:[%s16623_s1 + $0x2298] sm:$0x3] %vm155_vm2, %v4809_v11  ;;  %4721 = vst.msk [vmem:[%s16623_s1 + $0x22d8] sm:$0x3] %vm155_vm2, %v4809_v11  ;;  %v12212_v11 = vrot.slane %v50_v1, 3 }
  0x36   :  { %160 = vst.msk [vmem:[%s16623_s1 + $0x28] sm:$0x3] %vm155_vm2, %v4813_v12  ;;  %2515 = vst.msk [vmem:[%s16623_s1 + $0x68] sm:$0x3] %vm155_vm2, %v4813_v12 }
  0x37   :  { %2563 = vst.msk [vmem:[%s16623_s1 + $0x1a8] sm:$0x3] %vm155_vm2, %v4813_v12  ;;  %2611 = vst.msk [vmem:[%s16623_s1 + $0x1e8] sm:$0x3] %vm155_vm2, %v4813_v12 }
  0x38   :  { %2659 = vst.msk [vmem:[%s16623_s1 + $0x328] sm:$0x3] %vm155_vm2, %v4813_v12  ;;  %2707 = vst.msk [vmem:[%s16623_s1 + $0x368] sm:$0x3] %vm155_vm2, %v4813_v12 }
  0x39   :  { %2755 = vst.msk [vmem:[%s16623_s1 + $0x4a8] sm:$0x3] %vm155_vm2, %v4813_v12  ;;  %2803 = vst.msk [vmem:[%s16623_s1 + $0x4e8] sm:$0x3] %vm155_vm2, %v4813_v12 }
  0x3a   :  { %2851 = vst.msk [vmem:[%s16623_s1 + $0x628] sm:$0x3] %vm155_vm2, %v4813_v12  ;;  %2899 = vst.msk [vmem:[%s16623_s1 + $0x668] sm:$0x3] %vm155_vm2, %v4813_v12 }
  0x3b   :  { %2947 = vst.msk [vmem:[%s16623_s1 + $0x7a8] sm:$0x3] %vm155_vm2, %v4813_v12  ;;  %2995 = vst.msk [vmem:[%s16623_s1 + $0x7e8] sm:$0x3] %vm155_vm2, %v4813_v12 }
  0x3c   :  { %3043 = vst.msk [vmem:[%s16623_s1 + $0x928] sm:$0x3] %vm155_vm2, %v4813_v12  ;;  %3091 = vst.msk [vmem:[%s16623_s1 + $0x968] sm:$0x3] %vm155_vm2, %v4813_v12 }
  0x3d   :  { %3139 = vst.msk [vmem:[%s16623_s1 + $0xaa8] sm:$0x3] %vm155_vm2, %v4813_v12  ;;  %3187 = vst.msk [vmem:[%s16623_s1 + $0xae8] sm:$0x3] %vm155_vm2, %v4813_v12 }
  0x3e   :  { %3235 = vst.msk [vmem:[%s16623_s1 + $0xc28] sm:$0x3] %vm155_vm2, %v4813_v12  ;;  %3283 = vst.msk [vmem:[%s16623_s1 + $0xc68] sm:$0x3] %vm155_vm2, %v4813_v12 }
  0x3f   :  { %3331 = vst.msk [vmem:[%s16623_s1 + $0xda8] sm:$0x3] %vm155_vm2, %v4813_v12  ;;  %3379 = vst.msk [vmem:[%s16623_s1 + $0xde8] sm:$0x3] %vm155_vm2, %v4813_v12 }
  0x40   :  { %3427 = vst.msk [vmem:[%s16623_s1 + $0xf28] sm:$0x3] %vm155_vm2, %v4813_v12  ;;  %3475 = vst.msk [vmem:[%s16623_s1 + $0xf68] sm:$0x3] %vm155_vm2, %v4813_v12 }
  0x41   :  { %3523 = vst.msk [vmem:[%s16623_s1 + $0x10a8] sm:$0x3] %vm155_vm2, %v4813_v12  ;;  %3571 = vst.msk [vmem:[%s16623_s1 + $0x10e8] sm:$0x3] %vm155_vm2, %v4813_v12 }
  0x42   :  { %3619 = vst.msk [vmem:[%s16623_s1 + $0x1228] sm:$0x3] %vm155_vm2, %v4813_v12  ;;  %3667 = vst.msk [vmem:[%s16623_s1 + $0x1268] sm:$0x3] %vm155_vm2, %v4813_v12 }
  0x43   :  { %3715 = vst.msk [vmem:[%s16623_s1 + $0x13a8] sm:$0x3] %vm155_vm2, %v4813_v12  ;;  %3763 = vst.msk [vmem:[%s16623_s1 + $0x13e8] sm:$0x3] %vm155_vm2, %v4813_v12 }
  0x44   :  { %3811 = vst.msk [vmem:[%s16623_s1 + $0x1528] sm:$0x3] %vm155_vm2, %v4813_v12  ;;  %3859 = vst.msk [vmem:[%s16623_s1 + $0x1568] sm:$0x3] %vm155_vm2, %v4813_v12 }
  0x45   :  { %3907 = vst.msk [vmem:[%s16623_s1 + $0x16a8] sm:$0x3] %vm155_vm2, %v4813_v12  ;;  %3955 = vst.msk [vmem:[%s16623_s1 + $0x16e8] sm:$0x3] %vm155_vm2, %v4813_v12 }
  0x46   :  { %4003 = vst.msk [vmem:[%s16623_s1 + $0x1828] sm:$0x3] %vm155_vm2, %v4813_v12  ;;  %4051 = vst.msk [vmem:[%s16623_s1 + $0x1868] sm:$0x3] %vm155_vm2, %v4813_v12 }
  0x47   :  { %4099 = vst.msk [vmem:[%s16623_s1 + $0x19a8] sm:$0x3] %vm155_vm2, %v4813_v12  ;;  %4147 = vst.msk [vmem:[%s16623_s1 + $0x19e8] sm:$0x3] %vm155_vm2, %v4813_v12 }
  0x48   :  { %4195 = vst.msk [vmem:[%s16623_s1 + $0x1b28] sm:$0x3] %vm155_vm2, %v4813_v12  ;;  %4243 = vst.msk [vmem:[%s16623_s1 + $0x1b68] sm:$0x3] %vm155_vm2, %v4813_v12 }
  0x49   :  { %4291 = vst.msk [vmem:[%s16623_s1 + $0x1ca8] sm:$0x3] %vm155_vm2, %v4813_v12  ;;  %4339 = vst.msk [vmem:[%s16623_s1 + $0x1ce8] sm:$0x3] %vm155_vm2, %v4813_v12 }
  0x4a   :  { %4387 = vst.msk [vmem:[%s16623_s1 + $0x1e28] sm:$0x3] %vm155_vm2, %v4813_v12  ;;  %4435 = vst.msk [vmem:[%s16623_s1 + $0x1e68] sm:$0x3] %vm155_vm2, %v4813_v12 }
  0x4b   :  { %4483 = vst.msk [vmem:[%s16623_s1 + $0x1fa8] sm:$0x3] %vm155_vm2, %v4813_v12  ;;  %4531 = vst.msk [vmem:[%s16623_s1 + $0x1fe8] sm:$0x3] %vm155_vm2, %v4813_v12 }
  0x4c   :  { %4579 = vst.msk [vmem:[%s16623_s1 + $0x2128] sm:$0x3] %vm155_vm2, %v4813_v12  ;;  %4627 = vst.msk [vmem:[%s16623_s1 + $0x2168] sm:$0x3] %vm155_vm2, %v4813_v12 }
  0x4d   :  { %4675 = vst.msk [vmem:[%s16623_s1 + $0x22a8] sm:$0x3] %vm155_vm2, %v4813_v12  ;;  %4723 = vst.msk [vmem:[%s16623_s1 + $0x22e8] sm:$0x3] %vm155_vm2, %v4813_v12  ;;  %v52_v12 = vmax.f32 %v11715_v7, 0.0 }
  0x4e   :  { %154 = vst.msk [vmem:[%s16623_s1] sm:$0xff] %vm153_vm1, %v4833_v19  ;;  %2510 = vst.msk [vmem:[%s16623_s1 + $0x40] sm:$0xff] %vm153_vm1, %v4833_v19 }
  0x4f   :  { %2558 = vst.msk [vmem:[%s16623_s1 + $0x180] sm:$0xff] %vm153_vm1, %v4833_v19  ;;  %2606 = vst.msk [vmem:[%s16623_s1 + $0x1c0] sm:$0xff] %vm153_vm1, %v4833_v19 }
  0x50   :  { %2654 = vst.msk [vmem:[%s16623_s1 + $0x300] sm:$0xff] %vm153_vm1, %v4833_v19  ;;  %2702 = vst.msk [vmem:[%s16623_s1 + $0x340] sm:$0xff] %vm153_vm1, %v4833_v19 }
  0x51   :  { %2750 = vst.msk [vmem:[%s16623_s1 + $0x480] sm:$0xff] %vm153_vm1, %v4833_v19  ;;  %2798 = vst.msk [vmem:[%s16623_s1 + $0x4c0] sm:$0xff] %vm153_vm1, %v4833_v19 }
  0x52   :  { %2846 = vst.msk [vmem:[%s16623_s1 + $0x600] sm:$0xff] %vm153_vm1, %v4833_v19  ;;  %2894 = vst.msk [vmem:[%s16623_s1 + $0x640] sm:$0xff] %vm153_vm1, %v4833_v19 }
  0x53   :  { %2942 = vst.msk [vmem:[%s16623_s1 + $0x780] sm:$0xff] %vm153_vm1, %v4833_v19  ;;  %2990 = vst.msk [vmem:[%s16623_s1 + $0x7c0] sm:$0xff] %vm153_vm1, %v4833_v19 }
  0x54   :  { %3038 = vst.msk [vmem:[%s16623_s1 + $0x900] sm:$0xff] %vm153_vm1, %v4833_v19  ;;  %3086 = vst.msk [vmem:[%s16623_s1 + $0x940] sm:$0xff] %vm153_vm1, %v4833_v19 }
  0x55   :  { %3134 = vst.msk [vmem:[%s16623_s1 + $0xa80] sm:$0xff] %vm153_vm1, %v4833_v19  ;;  %3182 = vst.msk [vmem:[%s16623_s1 + $0xac0] sm:$0xff] %vm153_vm1, %v4833_v19 }
  0x56   :  { %3230 = vst.msk [vmem:[%s16623_s1 + $0xc00] sm:$0xff] %vm153_vm1, %v4833_v19  ;;  %3278 = vst.msk [vmem:[%s16623_s1 + $0xc40] sm:$0xff] %vm153_vm1, %v4833_v19 }
  0x57   :  { %3326 = vst.msk [vmem:[%s16623_s1 + $0xd80] sm:$0xff] %vm153_vm1, %v4833_v19  ;;  %3374 = vst.msk [vmem:[%s16623_s1 + $0xdc0] sm:$0xff] %vm153_vm1, %v4833_v19 }
  0x58   :  { %3422 = vst.msk [vmem:[%s16623_s1 + $0xf00] sm:$0xff] %vm153_vm1, %v4833_v19  ;;  %3470 = vst.msk [vmem:[%s16623_s1 + $0xf40] sm:$0xff] %vm153_vm1, %v4833_v19 }
  0x59   :  { %3518 = vst.msk [vmem:[%s16623_s1 + $0x1080] sm:$0xff] %vm153_vm1, %v4833_v19  ;;  %3566 = vst.msk [vmem:[%s16623_s1 + $0x10c0] sm:$0xff] %vm153_vm1, %v4833_v19 }
  0x5a   :  { %3614 = vst.msk [vmem:[%s16623_s1 + $0x1200] sm:$0xff] %vm153_vm1, %v4833_v19  ;;  %3662 = vst.msk [vmem:[%s16623_s1 + $0x1240] sm:$0xff] %vm153_vm1, %v4833_v19 }
  0x5b   :  { %3710 = vst.msk [vmem:[%s16623_s1 + $0x1380] sm:$0xff] %vm153_vm1, %v4833_v19  ;;  %3758 = vst.msk [vmem:[%s16623_s1 + $0x13c0] sm:$0xff] %vm153_vm1, %v4833_v19 }
  0x5c   :  { %3806 = vst.msk [vmem:[%s16623_s1 + $0x1500] sm:$0xff] %vm153_vm1, %v4833_v19  ;;  %3854 = vst.msk [vmem:[%s16623_s1 + $0x1540] sm:$0xff] %vm153_vm1, %v4833_v19 }
  0x5d   :  { %3902 = vst.msk [vmem:[%s16623_s1 + $0x1680] sm:$0xff] %vm153_vm1, %v4833_v19  ;;  %3950 = vst.msk [vmem:[%s16623_s1 + $0x16c0] sm:$0xff] %vm153_vm1, %v4833_v19 }
  0x5e   :  { %3998 = vst.msk [vmem:[%s16623_s1 + $0x1800] sm:$0xff] %vm153_vm1, %v4833_v19  ;;  %4046 = vst.msk [vmem:[%s16623_s1 + $0x1840] sm:$0xff] %vm153_vm1, %v4833_v19 }
  0x5f   :  { %4094 = vst.msk [vmem:[%s16623_s1 + $0x1980] sm:$0xff] %vm153_vm1, %v4833_v19  ;;  %4142 = vst.msk [vmem:[%s16623_s1 + $0x19c0] sm:$0xff] %vm153_vm1, %v4833_v19 }
  0x60   :  { %4190 = vst.msk [vmem:[%s16623_s1 + $0x1b00] sm:$0xff] %vm153_vm1, %v4833_v19  ;;  %4238 = vst.msk [vmem:[%s16623_s1 + $0x1b40] sm:$0xff] %vm153_vm1, %v4833_v19 }
  0x61   :  { %4286 = vst.msk [vmem:[%s16623_s1 + $0x1c80] sm:$0xff] %vm153_vm1, %v4833_v19  ;;  %4334 = vst.msk [vmem:[%s16623_s1 + $0x1cc0] sm:$0xff] %vm153_vm1, %v4833_v19 }
  0x62   :  { %4382 = vst.msk [vmem:[%s16623_s1 + $0x1e00] sm:$0xff] %vm153_vm1, %v4833_v19  ;;  %4430 = vst.msk [vmem:[%s16623_s1 + $0x1e40] sm:$0xff] %vm153_vm1, %v4833_v19 }
  0x63   :  { %4478 = vst.msk [vmem:[%s16623_s1 + $0x1f80] sm:$0xff] %vm153_vm1, %v4833_v19  ;;  %4526 = vst.msk [vmem:[%s16623_s1 + $0x1fc0] sm:$0xff] %vm153_vm1, %v4833_v19 }
  0x64   :  { %4574 = vst.msk [vmem:[%s16623_s1 + $0x2100] sm:$0xff] %vm153_vm1, %v4833_v19  ;;  %4622 = vst.msk [vmem:[%s16623_s1 + $0x2140] sm:$0xff] %vm153_vm1, %v4833_v19 }
  0x65   :  { %4670 = vst.msk [vmem:[%s16623_s1 + $0x2280] sm:$0xff] %vm153_vm1, %v4833_v19  ;;  %4718 = vst.msk [vmem:[%s16623_s1 + $0x22c0] sm:$0xff] %vm153_vm1, %v4833_v19  ;;  %v12721_v19 = vsel %vm128_vm0, %v48_v63, %v12204_v9 }
  0x66   :  { %157 = vst.msk [vmem:[%s16623_s1 + $0x10] sm:$0xff] %vm153_vm1, %v5031_v20  ;;  %2512 = vst.msk [vmem:[%s16623_s1 + $0x50] sm:$0xff] %vm153_vm1, %v5031_v20 }
  0x67   :  { %2560 = vst.msk [vmem:[%s16623_s1 + $0x190] sm:$0xff] %vm153_vm1, %v5031_v20  ;;  %2608 = vst.msk [vmem:[%s16623_s1 + $0x1d0] sm:$0xff] %vm153_vm1, %v5031_v20 }
  0x68   :  { %2656 = vst.msk [vmem:[%s16623_s1 + $0x310] sm:$0xff] %vm153_vm1, %v5031_v20  ;;  %2704 = vst.msk [vmem:[%s16623_s1 + $0x350] sm:$0xff] %vm153_vm1, %v5031_v20 }
  0x69   :  { %2752 = vst.msk [vmem:[%s16623_s1 + $0x490] sm:$0xff] %vm153_vm1, %v5031_v20  ;;  %2800 = vst.msk [vmem:[%s16623_s1 + $0x4d0] sm:$0xff] %vm153_vm1, %v5031_v20 }
  0x6a   :  { %2848 = vst.msk [vmem:[%s16623_s1 + $0x610] sm:$0xff] %vm153_vm1, %v5031_v20  ;;  %2896 = vst.msk [vmem:[%s16623_s1 + $0x650] sm:$0xff] %vm153_vm1, %v5031_v20 }
  0x6b   :  { %2944 = vst.msk [vmem:[%s16623_s1 + $0x790] sm:$0xff] %vm153_vm1, %v5031_v20  ;;  %2992 = vst.msk [vmem:[%s16623_s1 + $0x7d0] sm:$0xff] %vm153_vm1, %v5031_v20 }
  0x6c   :  { %3040 = vst.msk [vmem:[%s16623_s1 + $0x910] sm:$0xff] %vm153_vm1, %v5031_v20  ;;  %3088 = vst.msk [vmem:[%s16623_s1 + $0x950] sm:$0xff] %vm153_vm1, %v5031_v20 }
  0x6d   :  { %3136 = vst.msk [vmem:[%s16623_s1 + $0xa90] sm:$0xff] %vm153_vm1, %v5031_v20  ;;  %3184 = vst.msk [vmem:[%s16623_s1 + $0xad0] sm:$0xff] %vm153_vm1, %v5031_v20 }
  0x6e   :  { %3232 = vst.msk [vmem:[%s16623_s1 + $0xc10] sm:$0xff] %vm153_vm1, %v5031_v20  ;;  %3280 = vst.msk [vmem:[%s16623_s1 + $0xc50] sm:$0xff] %vm153_vm1, %v5031_v20 }
  0x6f   :  { %3328 = vst.msk [vmem:[%s16623_s1 + $0xd90] sm:$0xff] %vm153_vm1, %v5031_v20  ;;  %3376 = vst.msk [vmem:[%s16623_s1 + $0xdd0] sm:$0xff] %vm153_vm1, %v5031_v20 }
  0x70   :  { %3424 = vst.msk [vmem:[%s16623_s1 + $0xf10] sm:$0xff] %vm153_vm1, %v5031_v20  ;;  %3472 = vst.msk [vmem:[%s16623_s1 + $0xf50] sm:$0xff] %vm153_vm1, %v5031_v20 }
  0x71   :  { %3520 = vst.msk [vmem:[%s16623_s1 + $0x1090] sm:$0xff] %vm153_vm1, %v5031_v20  ;;  %3568 = vst.msk [vmem:[%s16623_s1 + $0x10d0] sm:$0xff] %vm153_vm1, %v5031_v20 }
  0x72   :  { %3616 = vst.msk [vmem:[%s16623_s1 + $0x1210] sm:$0xff] %vm153_vm1, %v5031_v20  ;;  %3664 = vst.msk [vmem:[%s16623_s1 + $0x1250] sm:$0xff] %vm153_vm1, %v5031_v20 }
  0x73   :  { %3712 = vst.msk [vmem:[%s16623_s1 + $0x1390] sm:$0xff] %vm153_vm1, %v5031_v20  ;;  %3760 = vst.msk [vmem:[%s16623_s1 + $0x13d0] sm:$0xff] %vm153_vm1, %v5031_v20 }
  0x74   :  { %3808 = vst.msk [vmem:[%s16623_s1 + $0x1510] sm:$0xff] %vm153_vm1, %v5031_v20  ;;  %3856 = vst.msk [vmem:[%s16623_s1 + $0x1550] sm:$0xff] %vm153_vm1, %v5031_v20 }
  0x75   :  { %3904 = vst.msk [vmem:[%s16623_s1 + $0x1690] sm:$0xff] %vm153_vm1, %v5031_v20  ;;  %3952 = vst.msk [vmem:[%s16623_s1 + $0x16d0] sm:$0xff] %vm153_vm1, %v5031_v20 }
  0x76   :  { %4000 = vst.msk [vmem:[%s16623_s1 + $0x1810] sm:$0xff] %vm153_vm1, %v5031_v20  ;;  %4048 = vst.msk [vmem:[%s16623_s1 + $0x1850] sm:$0xff] %vm153_vm1, %v5031_v20 }
  0x77   :  { %4096 = vst.msk [vmem:[%s16623_s1 + $0x1990] sm:$0xff] %vm153_vm1, %v5031_v20  ;;  %4144 = vst.msk [vmem:[%s16623_s1 + $0x19d0] sm:$0xff] %vm153_vm1, %v5031_v20 }
  0x78   :  { %4192 = vst.msk [vmem:[%s16623_s1 + $0x1b10] sm:$0xff] %vm153_vm1, %v5031_v20  ;;  %4240 = vst.msk [vmem:[%s16623_s1 + $0x1b50] sm:$0xff] %vm153_vm1, %v5031_v20 }
  0x79   :  { %4288 = vst.msk [vmem:[%s16623_s1 + $0x1c90] sm:$0xff] %vm153_vm1, %v5031_v20  ;;  %4336 = vst.msk [vmem:[%s16623_s1 + $0x1cd0] sm:$0xff] %vm153_vm1, %v5031_v20 }
  0x7a   :  { %4384 = vst.msk [vmem:[%s16623_s1 + $0x1e10] sm:$0xff] %vm153_vm1, %v5031_v20  ;;  %4432 = vst.msk [vmem:[%s16623_s1 + $0x1e50] sm:$0xff] %vm153_vm1, %v5031_v20 }
  0x7b   :  { %4480 = vst.msk [vmem:[%s16623_s1 + $0x1f90] sm:$0xff] %vm153_vm1, %v5031_v20  ;;  %4528 = vst.msk [vmem:[%s16623_s1 + $0x1fd0] sm:$0xff] %vm153_vm1, %v5031_v20 }
  0x7c   :  { %4576 = vst.msk [vmem:[%s16623_s1 + $0x2110] sm:$0xff] %vm153_vm1, %v5031_v20  ;;  %4624 = vst.msk [vmem:[%s16623_s1 + $0x2150] sm:$0xff] %vm153_vm1, %v5031_v20 }
  0x7d   :  { %4672 = vst.msk [vmem:[%s16623_s1 + $0x2290] sm:$0xff] %vm153_vm1, %v5031_v20  ;;  %4720 = vst.msk [vmem:[%s16623_s1 + $0x22d0] sm:$0xff] %vm153_vm1, %v5031_v20  ;;  %v12967_v20 = vsel %vm128_vm0, %v49_v0, %v12208_v10 }
  0x7e   :  { %159 = vst.msk [vmem:[%s16623_s1 + $0x20] sm:$0xff] %vm153_vm1, %v5277_v21  ;;  %2514 = vst.msk [vmem:[%s16623_s1 + $0x60] sm:$0xff] %vm153_vm1, %v5277_v21 }
  0x7f   :  { %2562 = vst.msk [vmem:[%s16623_s1 + $0x1a0] sm:$0xff] %vm153_vm1, %v5277_v21  ;;  %2610 = vst.msk [vmem:[%s16623_s1 + $0x1e0] sm:$0xff] %vm153_vm1, %v5277_v21 }
  0x80   :  { %2658 = vst.msk [vmem:[%s16623_s1 + $0x320] sm:$0xff] %vm153_vm1, %v5277_v21  ;;  %2706 = vst.msk [vmem:[%s16623_s1 + $0x360] sm:$0xff] %vm153_vm1, %v5277_v21 }
  0x81   :  { %2754 = vst.msk [vmem:[%s16623_s1 + $0x4a0] sm:$0xff] %vm153_vm1, %v5277_v21  ;;  %2802 = vst.msk [vmem:[%s16623_s1 + $0x4e0] sm:$0xff] %vm153_vm1, %v5277_v21 }
  0x82   :  { %2850 = vst.msk [vmem:[%s16623_s1 + $0x620] sm:$0xff] %vm153_vm1, %v5277_v21  ;;  %2898 = vst.msk [vmem:[%s16623_s1 + $0x660] sm:$0xff] %vm153_vm1, %v5277_v21 }
  0x83   :  { %2946 = vst.msk [vmem:[%s16623_s1 + $0x7a0] sm:$0xff] %vm153_vm1, %v5277_v21  ;;  %2994 = vst.msk [vmem:[%s16623_s1 + $0x7e0] sm:$0xff] %vm153_vm1, %v5277_v21 }
  0x84   :  { %3042 = vst.msk [vmem:[%s16623_s1 + $0x920] sm:$0xff] %vm153_vm1, %v5277_v21  ;;  %3090 = vst.msk [vmem:[%s16623_s1 + $0x960] sm:$0xff] %vm153_vm1, %v5277_v21 }
  0x85   :  { %3138 = vst.msk [vmem:[%s16623_s1 + $0xaa0] sm:$0xff] %vm153_vm1, %v5277_v21  ;;  %3186 = vst.msk [vmem:[%s16623_s1 + $0xae0] sm:$0xff] %vm153_vm1, %v5277_v21 }
  0x86   :  { %3234 = vst.msk [vmem:[%s16623_s1 + $0xc20] sm:$0xff] %vm153_vm1, %v5277_v21  ;;  %3282 = vst.msk [vmem:[%s16623_s1 + $0xc60] sm:$0xff] %vm153_vm1, %v5277_v21 }
  0x87   :  { %3330 = vst.msk [vmem:[%s16623_s1 + $0xda0] sm:$0xff] %vm153_vm1, %v5277_v21  ;;  %3378 = vst.msk [vmem:[%s16623_s1 + $0xde0] sm:$0xff] %vm153_vm1, %v5277_v21 }
  0x88   :  { %3426 = vst.msk [vmem:[%s16623_s1 + $0xf20] sm:$0xff] %vm153_vm1, %v5277_v21  ;;  %3474 = vst.msk [vmem:[%s16623_s1 + $0xf60] sm:$0xff] %vm153_vm1, %v5277_v21 }
  0x89   :  { %3522 = vst.msk [vmem:[%s16623_s1 + $0x10a0] sm:$0xff] %vm153_vm1, %v5277_v21  ;;  %3570 = vst.msk [vmem:[%s16623_s1 + $0x10e0] sm:$0xff] %vm153_vm1, %v5277_v21 }
  0x8a   :  { %3618 = vst.msk [vmem:[%s16623_s1 + $0x1220] sm:$0xff] %vm153_vm1, %v5277_v21  ;;  %3666 = vst.msk [vmem:[%s16623_s1 + $0x1260] sm:$0xff] %vm153_vm1, %v5277_v21 }
  0x8b   :  { %3714 = vst.msk [vmem:[%s16623_s1 + $0x13a0] sm:$0xff] %vm153_vm1, %v5277_v21  ;;  %3762 = vst.msk [vmem:[%s16623_s1 + $0x13e0] sm:$0xff] %vm153_vm1, %v5277_v21 }
  0x8c   :  { %3810 = vst.msk [vmem:[%s16623_s1 + $0x1520] sm:$0xff] %vm153_vm1, %v5277_v21  ;;  %3858 = vst.msk [vmem:[%s16623_s1 + $0x1560] sm:$0xff] %vm153_vm1, %v5277_v21 }
  0x8d   :  { %3906 = vst.msk [vmem:[%s16623_s1 + $0x16a0] sm:$0xff] %vm153_vm1, %v5277_v21  ;;  %3954 = vst.msk [vmem:[%s16623_s1 + $0x16e0] sm:$0xff] %vm153_vm1, %v5277_v21 }
  0x8e   :  { %4002 = vst.msk [vmem:[%s16623_s1 + $0x1820] sm:$0xff] %vm153_vm1, %v5277_v21  ;;  %4050 = vst.msk [vmem:[%s16623_s1 + $0x1860] sm:$0xff] %vm153_vm1, %v5277_v21 }
  0x8f   :  { %4098 = vst.msk [vmem:[%s16623_s1 + $0x19a0] sm:$0xff] %vm153_vm1, %v5277_v21  ;;  %4146 = vst.msk [vmem:[%s16623_s1 + $0x19e0] sm:$0xff] %vm153_vm1, %v5277_v21 }
  0x90   :  { %4194 = vst.msk [vmem:[%s16623_s1 + $0x1b20] sm:$0xff] %vm153_vm1, %v5277_v21  ;;  %4242 = vst.msk [vmem:[%s16623_s1 + $0x1b60] sm:$0xff] %vm153_vm1, %v5277_v21 }
  0x91   :  { %4290 = vst.msk [vmem:[%s16623_s1 + $0x1ca0] sm:$0xff] %vm153_vm1, %v5277_v21  ;;  %4338 = vst.msk [vmem:[%s16623_s1 + $0x1ce0] sm:$0xff] %vm153_vm1, %v5277_v21 }
  0x92   :  { %4386 = vst.msk [vmem:[%s16623_s1 + $0x1e20] sm:$0xff] %vm153_vm1, %v5277_v21  ;;  %4434 = vst.msk [vmem:[%s16623_s1 + $0x1e60] sm:$0xff] %vm153_vm1, %v5277_v21 }
  0x93   :  { %4482 = vst.msk [vmem:[%s16623_s1 + $0x1fa0] sm:$0xff] %vm153_vm1, %v5277_v21  ;;  %4530 = vst.msk [vmem:[%s16623_s1 + $0x1fe0] sm:$0xff] %vm153_vm1, %v5277_v21 }
  0x94   :  { %4578 = vst.msk [vmem:[%s16623_s1 + $0x2120] sm:$0xff] %vm153_vm1, %v5277_v21  ;;  %4626 = vst.msk [vmem:[%s16623_s1 + $0x2160] sm:$0xff] %vm153_vm1, %v5277_v21 }
  0x95   :  { %4674 = vst.msk [vmem:[%s16623_s1 + $0x22a0] sm:$0xff] %vm153_vm1, %v5277_v21  ;;  %4722 = vst.msk [vmem:[%s16623_s1 + $0x22e0] sm:$0xff] %vm153_vm1, %v5277_v21  ;;  %v13213_v21 = vsel %vm128_vm0, %v50_v1, %v12212_v11 }
  0x96   :  { %162 = vst.msk [vmem:[%s16623_s1 + $0x38] sm:$0x3] %vm155_vm2, %v4823_v15  ;;  %2517 = vst.msk [vmem:[%s16623_s1 + $0x78] sm:$0x3] %vm155_vm2, %v4823_v15 }
  0x97   :  { %2565 = vst.msk [vmem:[%s16623_s1 + $0x1b8] sm:$0x3] %vm155_vm2, %v4823_v15  ;;  %2613 = vst.msk [vmem:[%s16623_s1 + $0x1f8] sm:$0x3] %vm155_vm2, %v4823_v15 }
  0x98   :  { %2661 = vst.msk [vmem:[%s16623_s1 + $0x338] sm:$0x3] %vm155_vm2, %v4823_v15  ;;  %2709 = vst.msk [vmem:[%s16623_s1 + $0x378] sm:$0x3] %vm155_vm2, %v4823_v15 }
  0x99   :  { %2757 = vst.msk [vmem:[%s16623_s1 + $0x4b8] sm:$0x3] %vm155_vm2, %v4823_v15  ;;  %2805 = vst.msk [vmem:[%s16623_s1 + $0x4f8] sm:$0x3] %vm155_vm2, %v4823_v15 }
  0x9a   :  { %2853 = vst.msk [vmem:[%s16623_s1 + $0x638] sm:$0x3] %vm155_vm2, %v4823_v15  ;;  %2901 = vst.msk [vmem:[%s16623_s1 + $0x678] sm:$0x3] %vm155_vm2, %v4823_v15 }
  0x9b   :  { %2949 = vst.msk [vmem:[%s16623_s1 + $0x7b8] sm:$0x3] %vm155_vm2, %v4823_v15  ;;  %2997 = vst.msk [vmem:[%s16623_s1 + $0x7f8] sm:$0x3] %vm155_vm2, %v4823_v15 }
  0x9c   :  { %3045 = vst.msk [vmem:[%s16623_s1 + $0x938] sm:$0x3] %vm155_vm2, %v4823_v15  ;;  %3093 = vst.msk [vmem:[%s16623_s1 + $0x978] sm:$0x3] %vm155_vm2, %v4823_v15 }
  0x9d   :  { %3141 = vst.msk [vmem:[%s16623_s1 + $0xab8] sm:$0x3] %vm155_vm2, %v4823_v15  ;;  %3189 = vst.msk [vmem:[%s16623_s1 + $0xaf8] sm:$0x3] %vm155_vm2, %v4823_v15 }
  0x9e   :  { %3237 = vst.msk [vmem:[%s16623_s1 + $0xc38] sm:$0x3] %vm155_vm2, %v4823_v15  ;;  %3285 = vst.msk [vmem:[%s16623_s1 + $0xc78] sm:$0x3] %vm155_vm2, %v4823_v15 }
  0x9f   :  { %3333 = vst.msk [vmem:[%s16623_s1 + $0xdb8] sm:$0x3] %vm155_vm2, %v4823_v15  ;;  %3381 = vst.msk [vmem:[%s16623_s1 + $0xdf8] sm:$0x3] %vm155_vm2, %v4823_v15 }
  0xa0   :  { %3429 = vst.msk [vmem:[%s16623_s1 + $0xf38] sm:$0x3] %vm155_vm2, %v4823_v15  ;;  %3477 = vst.msk [vmem:[%s16623_s1 + $0xf78] sm:$0x3] %vm155_vm2, %v4823_v15 }
  0xa1   :  { %3525 = vst.msk [vmem:[%s16623_s1 + $0x10b8] sm:$0x3] %vm155_vm2, %v4823_v15  ;;  %3573 = vst.msk [vmem:[%s16623_s1 + $0x10f8] sm:$0x3] %vm155_vm2, %v4823_v15 }
  0xa2   :  { %3621 = vst.msk [vmem:[%s16623_s1 + $0x1238] sm:$0x3] %vm155_vm2, %v4823_v15  ;;  %3669 = vst.msk [vmem:[%s16623_s1 + $0x1278] sm:$0x3] %vm155_vm2, %v4823_v15 }
  0xa3   :  { %3717 = vst.msk [vmem:[%s16623_s1 + $0x13b8] sm:$0x3] %vm155_vm2, %v4823_v15  ;;  %3765 = vst.msk [vmem:[%s16623_s1 + $0x13f8] sm:$0x3] %vm155_vm2, %v4823_v15 }
  0xa4   :  { %3813 = vst.msk [vmem:[%s16623_s1 + $0x1538] sm:$0x3] %vm155_vm2, %v4823_v15  ;;  %3861 = vst.msk [vmem:[%s16623_s1 + $0x1578] sm:$0x3] %vm155_vm2, %v4823_v15 }
  0xa5   :  { %3909 = vst.msk [vmem:[%s16623_s1 + $0x16b8] sm:$0x3] %vm155_vm2, %v4823_v15  ;;  %3957 = vst.msk [vmem:[%s16623_s1 + $0x16f8] sm:$0x3] %vm155_vm2, %v4823_v15 }
  0xa6   :  { %4005 = vst.msk [vmem:[%s16623_s1 + $0x1838] sm:$0x3] %vm155_vm2, %v4823_v15  ;;  %4053 = vst.msk [vmem:[%s16623_s1 + $0x1878] sm:$0x3] %vm155_vm2, %v4823_v15 }
  0xa7   :  { %4101 = vst.msk [vmem:[%s16623_s1 + $0x19b8] sm:$0x3] %vm155_vm2, %v4823_v15  ;;  %4149 = vst.msk [vmem:[%s16623_s1 + $0x19f8] sm:$0x3] %vm155_vm2, %v4823_v15 }
  0xa8   :  { %4197 = vst.msk [vmem:[%s16623_s1 + $0x1b38] sm:$0x3] %vm155_vm2, %v4823_v15  ;;  %4245 = vst.msk [vmem:[%s16623_s1 + $0x1b78] sm:$0x3] %vm155_vm2, %v4823_v15 }
  0xa9   :  { %4293 = vst.msk [vmem:[%s16623_s1 + $0x1cb8] sm:$0x3] %vm155_vm2, %v4823_v15  ;;  %4341 = vst.msk [vmem:[%s16623_s1 + $0x1cf8] sm:$0x3] %vm155_vm2, %v4823_v15 }
  0xaa   :  { %4389 = vst.msk [vmem:[%s16623_s1 + $0x1e38] sm:$0x3] %vm155_vm2, %v4823_v15  ;;  %4437 = vst.msk [vmem:[%s16623_s1 + $0x1e78] sm:$0x3] %vm155_vm2, %v4823_v15 }
  0xab   :  { %4485 = vst.msk [vmem:[%s16623_s1 + $0x1fb8] sm:$0x3] %vm155_vm2, %v4823_v15  ;;  %4533 = vst.msk [vmem:[%s16623_s1 + $0x1ff8] sm:$0x3] %vm155_vm2, %v4823_v15 }
  0xac   :  { %4581 = vst.msk [vmem:[%s16623_s1 + $0x2138] sm:$0x3] %vm155_vm2, %v4823_v15  ;;  %4629 = vst.msk [vmem:[%s16623_s1 + $0x2178] sm:$0x3] %vm155_vm2, %v4823_v15 }
  0xad   :  { %4677 = vst.msk [vmem:[%s16623_s1 + $0x22b8] sm:$0x3] %vm155_vm2, %v4823_v15  ;;  %4725 = vst.msk [vmem:[%s16623_s1 + $0x22f8] sm:$0x3] %vm155_vm2, %v4823_v15  ;;  %v12468_v15 = vrot.slane %v51_v6, 3 }
  0xae   :  { %161 = vst.msk [vmem:[%s16623_s1 + $0x30] sm:$0xff] %vm153_vm1, %v6257_v25  ;;  %2516 = vst.msk [vmem:[%s16623_s1 + $0x70] sm:$0xff] %vm153_vm1, %v6257_v25 }
  0xaf   :  { %2564 = vst.msk [vmem:[%s16623_s1 + $0x1b0] sm:$0xff] %vm153_vm1, %v6257_v25  ;;  %2612 = vst.msk [vmem:[%s16623_s1 + $0x1f0] sm:$0xff] %vm153_vm1, %v6257_v25  ;;  %v14183_v23 = vsel %vm128_vm0, %v51_v6, %v12468_v15 }
  0xb0   :  { %2660 = vst.msk [vmem:[%s16623_s1 + $0x330] sm:$0xff] %vm153_vm1, %v6257_v25  ;;  %2708 = vst.msk [vmem:[%s16623_s1 + $0x370] sm:$0xff] %vm153_vm1, %v6257_v25 }
  0xb1   :  { %2756 = vst.msk [vmem:[%s16623_s1 + $0x4b0] sm:$0xff] %vm153_vm1, %v6257_v25  ;;  %2804 = vst.msk [vmem:[%s16623_s1 + $0x4f0] sm:$0xff] %vm153_vm1, %v6257_v25 }
  0xb2   :  { %2852 = vst.msk [vmem:[%s16623_s1 + $0x630] sm:$0xff] %vm153_vm1, %v6257_v25  ;;  %2900 = vst.msk [vmem:[%s16623_s1 + $0x670] sm:$0xff] %vm153_vm1, %v6257_v25 }
  0xb3   :  { %2948 = vst.msk [vmem:[%s16623_s1 + $0x7b0] sm:$0xff] %vm153_vm1, %v6257_v25  ;;  %2996 = vst.msk [vmem:[%s16623_s1 + $0x7f0] sm:$0xff] %vm153_vm1, %v6257_v25 }
  0xb4   :  { %3044 = vst.msk [vmem:[%s16623_s1 + $0x930] sm:$0xff] %vm153_vm1, %v6257_v25  ;;  %3092 = vst.msk [vmem:[%s16623_s1 + $0x970] sm:$0xff] %vm153_vm1, %v6257_v25 }
  0xb5   :  { %3140 = vst.msk [vmem:[%s16623_s1 + $0xab0] sm:$0xff] %vm153_vm1, %v6257_v25  ;;  %3188 = vst.msk [vmem:[%s16623_s1 + $0xaf0] sm:$0xff] %vm153_vm1, %v6257_v25 }
  0xb6   :  { %3236 = vst.msk [vmem:[%s16623_s1 + $0xc30] sm:$0xff] %vm153_vm1, %v6257_v25  ;;  %3284 = vst.msk [vmem:[%s16623_s1 + $0xc70] sm:$0xff] %vm153_vm1, %v6257_v25 }
  0xb7   :  { %3332 = vst.msk [vmem:[%s16623_s1 + $0xdb0] sm:$0xff] %vm153_vm1, %v6257_v25  ;;  %3380 = vst.msk [vmem:[%s16623_s1 + $0xdf0] sm:$0xff] %vm153_vm1, %v6257_v25 }
  0xb8   :  { %3428 = vst.msk [vmem:[%s16623_s1 + $0xf30] sm:$0xff] %vm153_vm1, %v6257_v25  ;;  %3476 = vst.msk [vmem:[%s16623_s1 + $0xf70] sm:$0xff] %vm153_vm1, %v6257_v25 }
  0xb9   :  { %3524 = vst.msk [vmem:[%s16623_s1 + $0x10b0] sm:$0xff] %vm153_vm1, %v6257_v25  ;;  %3572 = vst.msk [vmem:[%s16623_s1 + $0x10f0] sm:$0xff] %vm153_vm1, %v6257_v25 }
  0xba   :  { %3620 = vst.msk [vmem:[%s16623_s1 + $0x1230] sm:$0xff] %vm153_vm1, %v6257_v25  ;;  %3668 = vst.msk [vmem:[%s16623_s1 + $0x1270] sm:$0xff] %vm153_vm1, %v6257_v25 }
  0xbb   :  { %3716 = vst.msk [vmem:[%s16623_s1 + $0x13b0] sm:$0xff] %vm153_vm1, %v6257_v25  ;;  %3764 = vst.msk [vmem:[%s16623_s1 + $0x13f0] sm:$0xff] %vm153_vm1, %v6257_v25 }
  0xbc   :  { %3812 = vst.msk [vmem:[%s16623_s1 + $0x1530] sm:$0xff] %vm153_vm1, %v6257_v25  ;;  %3860 = vst.msk [vmem:[%s16623_s1 + $0x1570] sm:$0xff] %vm153_vm1, %v6257_v25 }
  0xbd   :  { %3908 = vst.msk [vmem:[%s16623_s1 + $0x16b0] sm:$0xff] %vm153_vm1, %v6257_v25  ;;  %3956 = vst.msk [vmem:[%s16623_s1 + $0x16f0] sm:$0xff] %vm153_vm1, %v6257_v25 }
  0xbe   :  { %4004 = vst.msk [vmem:[%s16623_s1 + $0x1830] sm:$0xff] %vm153_vm1, %v6257_v25  ;;  %4052 = vst.msk [vmem:[%s16623_s1 + $0x1870] sm:$0xff] %vm153_vm1, %v6257_v25 }
  0xbf   :  { %4100 = vst.msk [vmem:[%s16623_s1 + $0x19b0] sm:$0xff] %vm153_vm1, %v6257_v25  ;;  %4148 = vst.msk [vmem:[%s16623_s1 + $0x19f0] sm:$0xff] %vm153_vm1, %v6257_v25 }
  0xc0   :  { %4196 = vst.msk [vmem:[%s16623_s1 + $0x1b30] sm:$0xff] %vm153_vm1, %v6257_v25  ;;  %4244 = vst.msk [vmem:[%s16623_s1 + $0x1b70] sm:$0xff] %vm153_vm1, %v6257_v25 }
  0xc1   :  { %4292 = vst.msk [vmem:[%s16623_s1 + $0x1cb0] sm:$0xff] %vm153_vm1, %v6257_v25  ;;  %4340 = vst.msk [vmem:[%s16623_s1 + $0x1cf0] sm:$0xff] %vm153_vm1, %v6257_v25 }
  0xc2   :  { %4388 = vst.msk [vmem:[%s16623_s1 + $0x1e30] sm:$0xff] %vm153_vm1, %v6257_v25  ;;  %4436 = vst.msk [vmem:[%s16623_s1 + $0x1e70] sm:$0xff] %vm153_vm1, %v6257_v25 }
  0xc3   :  { %4484 = vst.msk [vmem:[%s16623_s1 + $0x1fb0] sm:$0xff] %vm153_vm1, %v6257_v25  ;;  %4532 = vst.msk [vmem:[%s16623_s1 + $0x1ff0] sm:$0xff] %vm153_vm1, %v6257_v25 }
  0xc4   :  { %4580 = vst.msk [vmem:[%s16623_s1 + $0x2130] sm:$0xff] %vm153_vm1, %v6257_v25  ;;  %4628 = vst.msk [vmem:[%s16623_s1 + $0x2170] sm:$0xff] %vm153_vm1, %v6257_v25 }
  0xc5   :  { %4676 = vst.msk [vmem:[%s16623_s1 + $0x22b0] sm:$0xff] %vm153_vm1, %v6257_v25  ;;  %4724 = vst.msk [vmem:[%s16623_s1 + $0x22f0] sm:$0xff] %vm153_vm1, %v6257_v25  ;;  %v14431_v25 = vrot.slane %v54_v17, 3 }
  0xc6   :  { %164 = vst.msk [vmem:[%s16623_s1 + $0x88] sm:$0x3] %vm155_vm2, %v5521_v22  ;;  %2519 = vst.msk [vmem:[%s16623_s1 + $0xc8] sm:$0x3] %vm155_vm2, %v5521_v22 }
  0xc7   :  { %2567 = vst.msk [vmem:[%s16623_s1 + $0x208] sm:$0x3] %vm155_vm2, %v5521_v22  ;;  %2615 = vst.msk [vmem:[%s16623_s1 + $0x248] sm:$0x3] %vm155_vm2, %v5521_v22  ;;  %v15410_v29 = vsel %vm128_vm0, %v54_v17, %v14431_v25 }
  0xc8   :  { %2663 = vst.msk [vmem:[%s16623_s1 + $0x388] sm:$0x3] %vm155_vm2, %v5521_v22  ;;  %2711 = vst.msk [vmem:[%s16623_s1 + $0x3c8] sm:$0x3] %vm155_vm2, %v5521_v22 }
  0xc9   :  { %2759 = vst.msk [vmem:[%s16623_s1 + $0x508] sm:$0x3] %vm155_vm2, %v5521_v22  ;;  %2807 = vst.msk [vmem:[%s16623_s1 + $0x548] sm:$0x3] %vm155_vm2, %v5521_v22 }
  0xca   :  { %2855 = vst.msk [vmem:[%s16623_s1 + $0x688] sm:$0x3] %vm155_vm2, %v5521_v22  ;;  %2903 = vst.msk [vmem:[%s16623_s1 + $0x6c8] sm:$0x3] %vm155_vm2, %v5521_v22 }
  0xcb   :  { %2951 = vst.msk [vmem:[%s16623_s1 + $0x808] sm:$0x3] %vm155_vm2, %v5521_v22  ;;  %2999 = vst.msk [vmem:[%s16623_s1 + $0x848] sm:$0x3] %vm155_vm2, %v5521_v22 }
  0xcc   :  { %3047 = vst.msk [vmem:[%s16623_s1 + $0x988] sm:$0x3] %vm155_vm2, %v5521_v22  ;;  %3095 = vst.msk [vmem:[%s16623_s1 + $0x9c8] sm:$0x3] %vm155_vm2, %v5521_v22 }
  0xcd   :  { %3143 = vst.msk [vmem:[%s16623_s1 + $0xb08] sm:$0x3] %vm155_vm2, %v5521_v22  ;;  %3191 = vst.msk [vmem:[%s16623_s1 + $0xb48] sm:$0x3] %vm155_vm2, %v5521_v22 }
  0xce   :  { %3239 = vst.msk [vmem:[%s16623_s1 + $0xc88] sm:$0x3] %vm155_vm2, %v5521_v22  ;;  %3287 = vst.msk [vmem:[%s16623_s1 + $0xcc8] sm:$0x3] %vm155_vm2, %v5521_v22 }
  0xcf   :  { %3335 = vst.msk [vmem:[%s16623_s1 + $0xe08] sm:$0x3] %vm155_vm2, %v5521_v22  ;;  %3383 = vst.msk [vmem:[%s16623_s1 + $0xe48] sm:$0x3] %vm155_vm2, %v5521_v22 }
  0xd0   :  { %3431 = vst.msk [vmem:[%s16623_s1 + $0xf88] sm:$0x3] %vm155_vm2, %v5521_v22  ;;  %3479 = vst.msk [vmem:[%s16623_s1 + $0xfc8] sm:$0x3] %vm155_vm2, %v5521_v22 }
  0xd1   :  { %3527 = vst.msk [vmem:[%s16623_s1 + $0x1108] sm:$0x3] %vm155_vm2, %v5521_v22  ;;  %3575 = vst.msk [vmem:[%s16623_s1 + $0x1148] sm:$0x3] %vm155_vm2, %v5521_v22 }
  0xd2   :  { %3623 = vst.msk [vmem:[%s16623_s1 + $0x1288] sm:$0x3] %vm155_vm2, %v5521_v22  ;;  %3671 = vst.msk [vmem:[%s16623_s1 + $0x12c8] sm:$0x3] %vm155_vm2, %v5521_v22 }
  0xd3   :  { %3719 = vst.msk [vmem:[%s16623_s1 + $0x1408] sm:$0x3] %vm155_vm2, %v5521_v22  ;;  %3767 = vst.msk [vmem:[%s16623_s1 + $0x1448] sm:$0x3] %vm155_vm2, %v5521_v22 }
  0xd4   :  { %3815 = vst.msk [vmem:[%s16623_s1 + $0x1588] sm:$0x3] %vm155_vm2, %v5521_v22  ;;  %3863 = vst.msk [vmem:[%s16623_s1 + $0x15c8] sm:$0x3] %vm155_vm2, %v5521_v22 }
  0xd5   :  { %3911 = vst.msk [vmem:[%s16623_s1 + $0x1708] sm:$0x3] %vm155_vm2, %v5521_v22  ;;  %3959 = vst.msk [vmem:[%s16623_s1 + $0x1748] sm:$0x3] %vm155_vm2, %v5521_v22 }
  0xd6   :  { %4007 = vst.msk [vmem:[%s16623_s1 + $0x1888] sm:$0x3] %vm155_vm2, %v5521_v22  ;;  %4055 = vst.msk [vmem:[%s16623_s1 + $0x18c8] sm:$0x3] %vm155_vm2, %v5521_v22 }
  0xd7   :  { %4103 = vst.msk [vmem:[%s16623_s1 + $0x1a08] sm:$0x3] %vm155_vm2, %v5521_v22  ;;  %4151 = vst.msk [vmem:[%s16623_s1 + $0x1a48] sm:$0x3] %vm155_vm2, %v5521_v22 }
  0xd8   :  { %4199 = vst.msk [vmem:[%s16623_s1 + $0x1b88] sm:$0x3] %vm155_vm2, %v5521_v22  ;;  %4247 = vst.msk [vmem:[%s16623_s1 + $0x1bc8] sm:$0x3] %vm155_vm2, %v5521_v22 }
  0xd9   :  { %4295 = vst.msk [vmem:[%s16623_s1 + $0x1d08] sm:$0x3] %vm155_vm2, %v5521_v22  ;;  %4343 = vst.msk [vmem:[%s16623_s1 + $0x1d48] sm:$0x3] %vm155_vm2, %v5521_v22 }
  0xda   :  { %4391 = vst.msk [vmem:[%s16623_s1 + $0x1e88] sm:$0x3] %vm155_vm2, %v5521_v22  ;;  %4439 = vst.msk [vmem:[%s16623_s1 + $0x1ec8] sm:$0x3] %vm155_vm2, %v5521_v22 }
  0xdb   :  { %4487 = vst.msk [vmem:[%s16623_s1 + $0x2008] sm:$0x3] %vm155_vm2, %v5521_v22  ;;  %4535 = vst.msk [vmem:[%s16623_s1 + $0x2048] sm:$0x3] %vm155_vm2, %v5521_v22 }
  0xdc   :  { %4583 = vst.msk [vmem:[%s16623_s1 + $0x2188] sm:$0x3] %vm155_vm2, %v5521_v22  ;;  %4631 = vst.msk [vmem:[%s16623_s1 + $0x21c8] sm:$0x3] %vm155_vm2, %v5521_v22 }
  0xdd   :  { %4679 = vst.msk [vmem:[%s16623_s1 + $0x2308] sm:$0x3] %vm155_vm2, %v5521_v22  ;;  %4727 = vst.msk [vmem:[%s16623_s1 + $0x2348] sm:$0x3] %vm155_vm2, %v5521_v22  ;;  %v13457_v22 = vrot.slane %v52_v12, 3 }
  0xde   :  { %163 = vst.msk [vmem:[%s16623_s1 + $0x80] sm:$0xff] %vm153_vm1, %v6757_v30  ;;  %2518 = vst.msk [vmem:[%s16623_s1 + $0xc0] sm:$0xff] %vm153_vm1, %v6757_v30 }
  0xdf   :  { %2566 = vst.msk [vmem:[%s16623_s1 + $0x200] sm:$0xff] %vm153_vm1, %v6757_v30  ;;  %2614 = vst.msk [vmem:[%s16623_s1 + $0x240] sm:$0xff] %vm153_vm1, %v6757_v30 }
  0xe0   :  { %2662 = vst.msk [vmem:[%s16623_s1 + $0x380] sm:$0xff] %vm153_vm1, %v6757_v30  ;;  %2710 = vst.msk [vmem:[%s16623_s1 + $0x3c0] sm:$0xff] %vm153_vm1, %v6757_v30 }
  0xe1   :  { %2758 = vst.msk [vmem:[%s16623_s1 + $0x500] sm:$0xff] %vm153_vm1, %v6757_v30  ;;  %2806 = vst.msk [vmem:[%s16623_s1 + $0x540] sm:$0xff] %vm153_vm1, %v6757_v30 }
  0xe2   :  { %2854 = vst.msk [vmem:[%s16623_s1 + $0x680] sm:$0xff] %vm153_vm1, %v6757_v30  ;;  %2902 = vst.msk [vmem:[%s16623_s1 + $0x6c0] sm:$0xff] %vm153_vm1, %v6757_v30 }
  0xe3   :  { %2950 = vst.msk [vmem:[%s16623_s1 + $0x800] sm:$0xff] %vm153_vm1, %v6757_v30  ;;  %2998 = vst.msk [vmem:[%s16623_s1 + $0x840] sm:$0xff] %vm153_vm1, %v6757_v30 }
  0xe4   :  { %3046 = vst.msk [vmem:[%s16623_s1 + $0x980] sm:$0xff] %vm153_vm1, %v6757_v30  ;;  %3094 = vst.msk [vmem:[%s16623_s1 + $0x9c0] sm:$0xff] %vm153_vm1, %v6757_v30 }
  0xe5   :  { %3142 = vst.msk [vmem:[%s16623_s1 + $0xb00] sm:$0xff] %vm153_vm1, %v6757_v30  ;;  %3190 = vst.msk [vmem:[%s16623_s1 + $0xb40] sm:$0xff] %vm153_vm1, %v6757_v30 }
  0xe6   :  { %3238 = vst.msk [vmem:[%s16623_s1 + $0xc80] sm:$0xff] %vm153_vm1, %v6757_v30  ;;  %3286 = vst.msk [vmem:[%s16623_s1 + $0xcc0] sm:$0xff] %vm153_vm1, %v6757_v30 }
  0xe7   :  { %3334 = vst.msk [vmem:[%s16623_s1 + $0xe00] sm:$0xff] %vm153_vm1, %v6757_v30  ;;  %3382 = vst.msk [vmem:[%s16623_s1 + $0xe40] sm:$0xff] %vm153_vm1, %v6757_v30 }
  0xe8   :  { %3430 = vst.msk [vmem:[%s16623_s1 + $0xf80] sm:$0xff] %vm153_vm1, %v6757_v30  ;;  %3478 = vst.msk [vmem:[%s16623_s1 + $0xfc0] sm:$0xff] %vm153_vm1, %v6757_v30 }
  0xe9   :  { %3526 = vst.msk [vmem:[%s16623_s1 + $0x1100] sm:$0xff] %vm153_vm1, %v6757_v30  ;;  %3574 = vst.msk [vmem:[%s16623_s1 + $0x1140] sm:$0xff] %vm153_vm1, %v6757_v30 }
  0xea   :  { %3622 = vst.msk [vmem:[%s16623_s1 + $0x1280] sm:$0xff] %vm153_vm1, %v6757_v30  ;;  %3670 = vst.msk [vmem:[%s16623_s1 + $0x12c0] sm:$0xff] %vm153_vm1, %v6757_v30 }
  0xeb   :  { %3718 = vst.msk [vmem:[%s16623_s1 + $0x1400] sm:$0xff] %vm153_vm1, %v6757_v30  ;;  %3766 = vst.msk [vmem:[%s16623_s1 + $0x1440] sm:$0xff] %vm153_vm1, %v6757_v30 }
  0xec   :  { %3814 = vst.msk [vmem:[%s16623_s1 + $0x1580] sm:$0xff] %vm153_vm1, %v6757_v30  ;;  %3862 = vst.msk [vmem:[%s16623_s1 + $0x15c0] sm:$0xff] %vm153_vm1, %v6757_v30 }
  0xed   :  { %3910 = vst.msk [vmem:[%s16623_s1 + $0x1700] sm:$0xff] %vm153_vm1, %v6757_v30  ;;  %3958 = vst.msk [vmem:[%s16623_s1 + $0x1740] sm:$0xff] %vm153_vm1, %v6757_v30 }
  0xee   :  { %4006 = vst.msk [vmem:[%s16623_s1 + $0x1880] sm:$0xff] %vm153_vm1, %v6757_v30  ;;  %4054 = vst.msk [vmem:[%s16623_s1 + $0x18c0] sm:$0xff] %vm153_vm1, %v6757_v30 }
  0xef   :  { %4102 = vst.msk [vmem:[%s16623_s1 + $0x1a00] sm:$0xff] %vm153_vm1, %v6757_v30  ;;  %4150 = vst.msk [vmem:[%s16623_s1 + $0x1a40] sm:$0xff] %vm153_vm1, %v6757_v30 }
  0xf0   :  { %4198 = vst.msk [vmem:[%s16623_s1 + $0x1b80] sm:$0xff] %vm153_vm1, %v6757_v30  ;;  %4246 = vst.msk [vmem:[%s16623_s1 + $0x1bc0] sm:$0xff] %vm153_vm1, %v6757_v30 }
  0xf1   :  { %4294 = vst.msk [vmem:[%s16623_s1 + $0x1d00] sm:$0xff] %vm153_vm1, %v6757_v30  ;;  %4342 = vst.msk [vmem:[%s16623_s1 + $0x1d40] sm:$0xff] %vm153_vm1, %v6757_v30 }
  0xf2   :  { %4390 = vst.msk [vmem:[%s16623_s1 + $0x1e80] sm:$0xff] %vm153_vm1, %v6757_v30  ;;  %4438 = vst.msk [vmem:[%s16623_s1 + $0x1ec0] sm:$0xff] %vm153_vm1, %v6757_v30 }
  0xf3   :  { %4486 = vst.msk [vmem:[%s16623_s1 + $0x2000] sm:$0xff] %vm153_vm1, %v6757_v30  ;;  %4534 = vst.msk [vmem:[%s16623_s1 + $0x2040] sm:$0xff] %vm153_vm1, %v6757_v30 }
  0xf4   :  { %4582 = vst.msk [vmem:[%s16623_s1 + $0x2180] sm:$0xff] %vm153_vm1, %v6757_v30  ;;  %4630 = vst.msk [vmem:[%s16623_s1 + $0x21c0] sm:$0xff] %vm153_vm1, %v6757_v30 }
  0xf5   :  { %4678 = vst.msk [vmem:[%s16623_s1 + $0x2300] sm:$0xff] %vm153_vm1, %v6757_v30  ;;  %4726 = vst.msk [vmem:[%s16623_s1 + $0x2340] sm:$0xff] %vm153_vm1, %v6757_v30 }
  0xf6   :  { %166 = vst.msk [vmem:[%s16623_s1 + $0x98] sm:$0x3] %vm155_vm2, %v6501_v26  ;;  %2521 = vst.msk [vmem:[%s16623_s1 + $0xd8] sm:$0x3] %vm155_vm2, %v6501_v26 }
  0xf7   :  { %2569 = vst.msk [vmem:[%s16623_s1 + $0x218] sm:$0x3] %vm155_vm2, %v6501_v26  ;;  %2617 = vst.msk [vmem:[%s16623_s1 + $0x258] sm:$0x3] %vm155_vm2, %v6501_v26 }
  0xf8   :  { %2665 = vst.msk [vmem:[%s16623_s1 + $0x398] sm:$0x3] %vm155_vm2, %v6501_v26  ;;  %2713 = vst.msk [vmem:[%s16623_s1 + $0x3d8] sm:$0x3] %vm155_vm2, %v6501_v26 }
  0xf9   :  { %2761 = vst.msk [vmem:[%s16623_s1 + $0x518] sm:$0x3] %vm155_vm2, %v6501_v26  ;;  %2809 = vst.msk [vmem:[%s16623_s1 + $0x558] sm:$0x3] %vm155_vm2, %v6501_v26 }
  0xfa   :  { %2857 = vst.msk [vmem:[%s16623_s1 + $0x698] sm:$0x3] %vm155_vm2, %v6501_v26  ;;  %2905 = vst.msk [vmem:[%s16623_s1 + $0x6d8] sm:$0x3] %vm155_vm2, %v6501_v26 }
  0xfb   :  { %2953 = vst.msk [vmem:[%s16623_s1 + $0x818] sm:$0x3] %vm155_vm2, %v6501_v26  ;;  %3001 = vst.msk [vmem:[%s16623_s1 + $0x858] sm:$0x3] %vm155_vm2, %v6501_v26 }
  0xfc   :  { %3049 = vst.msk [vmem:[%s16623_s1 + $0x998] sm:$0x3] %vm155_vm2, %v6501_v26  ;;  %3097 = vst.msk [vmem:[%s16623_s1 + $0x9d8] sm:$0x3] %vm155_vm2, %v6501_v26 }
  0xfd   :  { %3145 = vst.msk [vmem:[%s16623_s1 + $0xb18] sm:$0x3] %vm155_vm2, %v6501_v26  ;;  %3193 = vst.msk [vmem:[%s16623_s1 + $0xb58] sm:$0x3] %vm155_vm2, %v6501_v26 }
  0xfe   :  { %3241 = vst.msk [vmem:[%s16623_s1 + $0xc98] sm:$0x3] %vm155_vm2, %v6501_v26  ;;  %3289 = vst.msk [vmem:[%s16623_s1 + $0xcd8] sm:$0x3] %vm155_vm2, %v6501_v26 }
  0xff   :  { %3337 = vst.msk [vmem:[%s16623_s1 + $0xe18] sm:$0x3] %vm155_vm2, %v6501_v26  ;;  %3385 = vst.msk [vmem:[%s16623_s1 + $0xe58] sm:$0x3] %vm155_vm2, %v6501_v26 }
 0x100   :  { %3433 = vst.msk [vmem:[%s16623_s1 + $0xf98] sm:$0x3] %vm155_vm2, %v6501_v26  ;;  %3481 = vst.msk [vmem:[%s16623_s1 + $0xfd8] sm:$0x3] %vm155_vm2, %v6501_v26 }
 0x101   :  { %3529 = vst.msk [vmem:[%s16623_s1 + $0x1118] sm:$0x3] %vm155_vm2, %v6501_v26  ;;  %3577 = vst.msk [vmem:[%s16623_s1 + $0x1158] sm:$0x3] %vm155_vm2, %v6501_v26 }
 0x102   :  { %3625 = vst.msk [vmem:[%s16623_s1 + $0x1298] sm:$0x3] %vm155_vm2, %v6501_v26  ;;  %3673 = vst.msk [vmem:[%s16623_s1 + $0x12d8] sm:$0x3] %vm155_vm2, %v6501_v26 }
 0x103   :  { %3721 = vst.msk [vmem:[%s16623_s1 + $0x1418] sm:$0x3] %vm155_vm2, %v6501_v26  ;;  %3769 = vst.msk [vmem:[%s16623_s1 + $0x1458] sm:$0x3] %vm155_vm2, %v6501_v26 }
 0x104   :  { %3817 = vst.msk [vmem:[%s16623_s1 + $0x1598] sm:$0x3] %vm155_vm2, %v6501_v26  ;;  %3865 = vst.msk [vmem:[%s16623_s1 + $0x15d8] sm:$0x3] %vm155_vm2, %v6501_v26 }
 0x105   :  { %3913 = vst.msk [vmem:[%s16623_s1 + $0x1718] sm:$0x3] %vm155_vm2, %v6501_v26  ;;  %3961 = vst.msk [vmem:[%s16623_s1 + $0x1758] sm:$0x3] %vm155_vm2, %v6501_v26 }
 0x106   :  { %4009 = vst.msk [vmem:[%s16623_s1 + $0x1898] sm:$0x3] %vm155_vm2, %v6501_v26  ;;  %4057 = vst.msk [vmem:[%s16623_s1 + $0x18d8] sm:$0x3] %vm155_vm2, %v6501_v26 }
 0x107   :  { %4105 = vst.msk [vmem:[%s16623_s1 + $0x1a18] sm:$0x3] %vm155_vm2, %v6501_v26  ;;  %4153 = vst.msk [vmem:[%s16623_s1 + $0x1a58] sm:$0x3] %vm155_vm2, %v6501_v26 }
 0x108   :  { %4201 = vst.msk [vmem:[%s16623_s1 + $0x1b98] sm:$0x3] %vm155_vm2, %v6501_v26  ;;  %4249 = vst.msk [vmem:[%s16623_s1 + $0x1bd8] sm:$0x3] %vm155_vm2, %v6501_v26 }
 0x109   :  { %4297 = vst.msk [vmem:[%s16623_s1 + $0x1d18] sm:$0x3] %vm155_vm2, %v6501_v26  ;;  %4345 = vst.msk [vmem:[%s16623_s1 + $0x1d58] sm:$0x3] %vm155_vm2, %v6501_v26 }
 0x10a   :  { %4393 = vst.msk [vmem:[%s16623_s1 + $0x1e98] sm:$0x3] %vm155_vm2, %v6501_v26  ;;  %4441 = vst.msk [vmem:[%s16623_s1 + $0x1ed8] sm:$0x3] %vm155_vm2, %v6501_v26 }
 0x10b   :  { %4489 = vst.msk [vmem:[%s16623_s1 + $0x2018] sm:$0x3] %vm155_vm2, %v6501_v26  ;;  %4537 = vst.msk [vmem:[%s16623_s1 + $0x2058] sm:$0x3] %vm155_vm2, %v6501_v26 }
 0x10c   :  { %4585 = vst.msk [vmem:[%s16623_s1 + $0x2198] sm:$0x3] %vm155_vm2, %v6501_v26  ;;  %4633 = vst.msk [vmem:[%s16623_s1 + $0x21d8] sm:$0x3] %vm155_vm2, %v6501_v26 }
 0x10d   :  { %4681 = vst.msk [vmem:[%s16623_s1 + $0x2318] sm:$0x3] %vm155_vm2, %v6501_v26  ;;  %4729 = vst.msk [vmem:[%s16623_s1 + $0x2358] sm:$0x3] %vm155_vm2, %v6501_v26  ;;  %v55_v26 = vmax.f32 %v12475_v18, 0.0 }
 0x10e   :  { %168 = vst.msk [vmem:[%s16623_s1 + $0xa8] sm:$0x3] %vm155_vm2, %v6505_v27  ;;  %2523 = vst.msk [vmem:[%s16623_s1 + $0xe8] sm:$0x3] %vm155_vm2, %v6505_v27 }
 0x10f   :  { %2571 = vst.msk [vmem:[%s16623_s1 + $0x228] sm:$0x3] %vm155_vm2, %v6505_v27  ;;  %2619 = vst.msk [vmem:[%s16623_s1 + $0x268] sm:$0x3] %vm155_vm2, %v6505_v27  ;;  %v15654_v30 = vrot.slane %v55_v26, 3 }
 0x110   :  { %2667 = vst.msk [vmem:[%s16623_s1 + $0x3a8] sm:$0x3] %vm155_vm2, %v6505_v27  ;;  %2715 = vst.msk [vmem:[%s16623_s1 + $0x3e8] sm:$0x3] %vm155_vm2, %v6505_v27 }
 0x111   :  { %2763 = vst.msk [vmem:[%s16623_s1 + $0x528] sm:$0x3] %vm155_vm2, %v6505_v27  ;;  %2811 = vst.msk [vmem:[%s16623_s1 + $0x568] sm:$0x3] %vm155_vm2, %v6505_v27  ;;  %v16140_v31 = vsel %vm128_vm0, %v55_v26, %v15654_v30 }
 0x112   :  { %2859 = vst.msk [vmem:[%s16623_s1 + $0x6a8] sm:$0x3] %vm155_vm2, %v6505_v27  ;;  %2907 = vst.msk [vmem:[%s16623_s1 + $0x6e8] sm:$0x3] %vm155_vm2, %v6505_v27 }
 0x113   :  { %2955 = vst.msk [vmem:[%s16623_s1 + $0x828] sm:$0x3] %vm155_vm2, %v6505_v27  ;;  %3003 = vst.msk [vmem:[%s16623_s1 + $0x868] sm:$0x3] %vm155_vm2, %v6505_v27 }
 0x114   :  { %3051 = vst.msk [vmem:[%s16623_s1 + $0x9a8] sm:$0x3] %vm155_vm2, %v6505_v27  ;;  %3099 = vst.msk [vmem:[%s16623_s1 + $0x9e8] sm:$0x3] %vm155_vm2, %v6505_v27 }
 0x115   :  { %3147 = vst.msk [vmem:[%s16623_s1 + $0xb28] sm:$0x3] %vm155_vm2, %v6505_v27  ;;  %3195 = vst.msk [vmem:[%s16623_s1 + $0xb68] sm:$0x3] %vm155_vm2, %v6505_v27 }
 0x116   :  { %3243 = vst.msk [vmem:[%s16623_s1 + $0xca8] sm:$0x3] %vm155_vm2, %v6505_v27  ;;  %3291 = vst.msk [vmem:[%s16623_s1 + $0xce8] sm:$0x3] %vm155_vm2, %v6505_v27 }
 0x117   :  { %3339 = vst.msk [vmem:[%s16623_s1 + $0xe28] sm:$0x3] %vm155_vm2, %v6505_v27  ;;  %3387 = vst.msk [vmem:[%s16623_s1 + $0xe68] sm:$0x3] %vm155_vm2, %v6505_v27 }
 0x118   :  { %3435 = vst.msk [vmem:[%s16623_s1 + $0xfa8] sm:$0x3] %vm155_vm2, %v6505_v27  ;;  %3483 = vst.msk [vmem:[%s16623_s1 + $0xfe8] sm:$0x3] %vm155_vm2, %v6505_v27 }
 0x119   :  { %3531 = vst.msk [vmem:[%s16623_s1 + $0x1128] sm:$0x3] %vm155_vm2, %v6505_v27  ;;  %3579 = vst.msk [vmem:[%s16623_s1 + $0x1168] sm:$0x3] %vm155_vm2, %v6505_v27 }
 0x11a   :  { %3627 = vst.msk [vmem:[%s16623_s1 + $0x12a8] sm:$0x3] %vm155_vm2, %v6505_v27  ;;  %3675 = vst.msk [vmem:[%s16623_s1 + $0x12e8] sm:$0x3] %vm155_vm2, %v6505_v27 }
 0x11b   :  { %3723 = vst.msk [vmem:[%s16623_s1 + $0x1428] sm:$0x3] %vm155_vm2, %v6505_v27  ;;  %3771 = vst.msk [vmem:[%s16623_s1 + $0x1468] sm:$0x3] %vm155_vm2, %v6505_v27 }
 0x11c   :  { %3819 = vst.msk [vmem:[%s16623_s1 + $0x15a8] sm:$0x3] %vm155_vm2, %v6505_v27  ;;  %3867 = vst.msk [vmem:[%s16623_s1 + $0x15e8] sm:$0x3] %vm155_vm2, %v6505_v27 }
 0x11d   :  { %3915 = vst.msk [vmem:[%s16623_s1 + $0x1728] sm:$0x3] %vm155_vm2, %v6505_v27  ;;  %3963 = vst.msk [vmem:[%s16623_s1 + $0x1768] sm:$0x3] %vm155_vm2, %v6505_v27 }
 0x11e   :  { %4011 = vst.msk [vmem:[%s16623_s1 + $0x18a8] sm:$0x3] %vm155_vm2, %v6505_v27  ;;  %4059 = vst.msk [vmem:[%s16623_s1 + $0x18e8] sm:$0x3] %vm155_vm2, %v6505_v27 }
 0x11f   :  { %4107 = vst.msk [vmem:[%s16623_s1 + $0x1a28] sm:$0x3] %vm155_vm2, %v6505_v27  ;;  %4155 = vst.msk [vmem:[%s16623_s1 + $0x1a68] sm:$0x3] %vm155_vm2, %v6505_v27 }
 0x120   :  { %4203 = vst.msk [vmem:[%s16623_s1 + $0x1ba8] sm:$0x3] %vm155_vm2, %v6505_v27  ;;  %4251 = vst.msk [vmem:[%s16623_s1 + $0x1be8] sm:$0x3] %vm155_vm2, %v6505_v27 }
 0x121   :  { %4299 = vst.msk [vmem:[%s16623_s1 + $0x1d28] sm:$0x3] %vm155_vm2, %v6505_v27  ;;  %4347 = vst.msk [vmem:[%s16623_s1 + $0x1d68] sm:$0x3] %vm155_vm2, %v6505_v27 }
 0x122   :  { %4395 = vst.msk [vmem:[%s16623_s1 + $0x1ea8] sm:$0x3] %vm155_vm2, %v6505_v27  ;;  %4443 = vst.msk [vmem:[%s16623_s1 + $0x1ee8] sm:$0x3] %vm155_vm2, %v6505_v27 }
 0x123   :  { %4491 = vst.msk [vmem:[%s16623_s1 + $0x2028] sm:$0x3] %vm155_vm2, %v6505_v27  ;;  %4539 = vst.msk [vmem:[%s16623_s1 + $0x2068] sm:$0x3] %vm155_vm2, %v6505_v27 }
 0x124   :  { %4587 = vst.msk [vmem:[%s16623_s1 + $0x21a8] sm:$0x3] %vm155_vm2, %v6505_v27  ;;  %4635 = vst.msk [vmem:[%s16623_s1 + $0x21e8] sm:$0x3] %vm155_vm2, %v6505_v27 }
 0x125   :  { %4683 = vst.msk [vmem:[%s16623_s1 + $0x2328] sm:$0x3] %vm155_vm2, %v6505_v27  ;;  %4731 = vst.msk [vmem:[%s16623_s1 + $0x2368] sm:$0x3] %vm155_vm2, %v6505_v27  ;;  %v14678_v27 = vsel %vm128_vm0, %v52_v12, %v13457_v22 }
 0x126   :  { %165 = vst.msk [vmem:[%s16623_s1 + $0x90] sm:$0xff] %vm153_vm1, %v7251_v35  ;;  %2520 = vst.msk [vmem:[%s16623_s1 + $0xd0] sm:$0xff] %vm153_vm1, %v7251_v35 }
 0x127   :  { %2568 = vst.msk [vmem:[%s16623_s1 + $0x210] sm:$0xff] %vm153_vm1, %v7251_v35  ;;  %2616 = vst.msk [vmem:[%s16623_s1 + $0x250] sm:$0xff] %vm153_vm1, %v7251_v35 }
 0x128   :  { %2664 = vst.msk [vmem:[%s16623_s1 + $0x390] sm:$0xff] %vm153_vm1, %v7251_v35  ;;  %2712 = vst.msk [vmem:[%s16623_s1 + $0x3d0] sm:$0xff] %vm153_vm1, %v7251_v35 }
 0x129   :  { %2760 = vst.msk [vmem:[%s16623_s1 + $0x510] sm:$0xff] %vm153_vm1, %v7251_v35  ;;  %2808 = vst.msk [vmem:[%s16623_s1 + $0x550] sm:$0xff] %vm153_vm1, %v7251_v35 }
 0x12a   :  { %2856 = vst.msk [vmem:[%s16623_s1 + $0x690] sm:$0xff] %vm153_vm1, %v7251_v35  ;;  %2904 = vst.msk [vmem:[%s16623_s1 + $0x6d0] sm:$0xff] %vm153_vm1, %v7251_v35 }
 0x12b   :  { %2952 = vst.msk [vmem:[%s16623_s1 + $0x810] sm:$0xff] %vm153_vm1, %v7251_v35  ;;  %3000 = vst.msk [vmem:[%s16623_s1 + $0x850] sm:$0xff] %vm153_vm1, %v7251_v35 }
 0x12c   :  { %3048 = vst.msk [vmem:[%s16623_s1 + $0x990] sm:$0xff] %vm153_vm1, %v7251_v35  ;;  %3096 = vst.msk [vmem:[%s16623_s1 + $0x9d0] sm:$0xff] %vm153_vm1, %v7251_v35 }
 0x12d   :  { %3144 = vst.msk [vmem:[%s16623_s1 + $0xb10] sm:$0xff] %vm153_vm1, %v7251_v35  ;;  %3192 = vst.msk [vmem:[%s16623_s1 + $0xb50] sm:$0xff] %vm153_vm1, %v7251_v35 }
 0x12e   :  { %3240 = vst.msk [vmem:[%s16623_s1 + $0xc90] sm:$0xff] %vm153_vm1, %v7251_v35  ;;  %3288 = vst.msk [vmem:[%s16623_s1 + $0xcd0] sm:$0xff] %vm153_vm1, %v7251_v35 }
 0x12f   :  { %3336 = vst.msk [vmem:[%s16623_s1 + $0xe10] sm:$0xff] %vm153_vm1, %v7251_v35  ;;  %3384 = vst.msk [vmem:[%s16623_s1 + $0xe50] sm:$0xff] %vm153_vm1, %v7251_v35 }
 0x130   :  { %3432 = vst.msk [vmem:[%s16623_s1 + $0xf90] sm:$0xff] %vm153_vm1, %v7251_v35  ;;  %3480 = vst.msk [vmem:[%s16623_s1 + $0xfd0] sm:$0xff] %vm153_vm1, %v7251_v35 }
 0x131   :  { %3528 = vst.msk [vmem:[%s16623_s1 + $0x1110] sm:$0xff] %vm153_vm1, %v7251_v35  ;;  %3576 = vst.msk [vmem:[%s16623_s1 + $0x1150] sm:$0xff] %vm153_vm1, %v7251_v35 }
 0x132   :  { %3624 = vst.msk [vmem:[%s16623_s1 + $0x1290] sm:$0xff] %vm153_vm1, %v7251_v35  ;;  %3672 = vst.msk [vmem:[%s16623_s1 + $0x12d0] sm:$0xff] %vm153_vm1, %v7251_v35 }
 0x133   :  { %3720 = vst.msk [vmem:[%s16623_s1 + $0x1410] sm:$0xff] %vm153_vm1, %v7251_v35  ;;  %3768 = vst.msk [vmem:[%s16623_s1 + $0x1450] sm:$0xff] %vm153_vm1, %v7251_v35 }
 0x134   :  { %3816 = vst.msk [vmem:[%s16623_s1 + $0x1590] sm:$0xff] %vm153_vm1, %v7251_v35  ;;  %3864 = vst.msk [vmem:[%s16623_s1 + $0x15d0] sm:$0xff] %vm153_vm1, %v7251_v35 }
 0x135   :  { %3912 = vst.msk [vmem:[%s16623_s1 + $0x1710] sm:$0xff] %vm153_vm1, %v7251_v35  ;;  %3960 = vst.msk [vmem:[%s16623_s1 + $0x1750] sm:$0xff] %vm153_vm1, %v7251_v35 }
 0x136   :  { %4008 = vst.msk [vmem:[%s16623_s1 + $0x1890] sm:$0xff] %vm153_vm1, %v7251_v35  ;;  %4056 = vst.msk [vmem:[%s16623_s1 + $0x18d0] sm:$0xff] %vm153_vm1, %v7251_v35 }
 0x137   :  { %4104 = vst.msk [vmem:[%s16623_s1 + $0x1a10] sm:$0xff] %vm153_vm1, %v7251_v35  ;;  %4152 = vst.msk [vmem:[%s16623_s1 + $0x1a50] sm:$0xff] %vm153_vm1, %v7251_v35 }
 0x138   :  { %4200 = vst.msk [vmem:[%s16623_s1 + $0x1b90] sm:$0xff] %vm153_vm1, %v7251_v35  ;;  %4248 = vst.msk [vmem:[%s16623_s1 + $0x1bd0] sm:$0xff] %vm153_vm1, %v7251_v35 }
 0x139   :  { %4296 = vst.msk [vmem:[%s16623_s1 + $0x1d10] sm:$0xff] %vm153_vm1, %v7251_v35  ;;  %4344 = vst.msk [vmem:[%s16623_s1 + $0x1d50] sm:$0xff] %vm153_vm1, %v7251_v35 }
 0x13a   :  { %4392 = vst.msk [vmem:[%s16623_s1 + $0x1e90] sm:$0xff] %vm153_vm1, %v7251_v35  ;;  %4440 = vst.msk [vmem:[%s16623_s1 + $0x1ed0] sm:$0xff] %vm153_vm1, %v7251_v35 }
 0x13b   :  { %4488 = vst.msk [vmem:[%s16623_s1 + $0x2010] sm:$0xff] %vm153_vm1, %v7251_v35  ;;  %4536 = vst.msk [vmem:[%s16623_s1 + $0x2050] sm:$0xff] %vm153_vm1, %v7251_v35 }
 0x13c   :  { %4584 = vst.msk [vmem:[%s16623_s1 + $0x2190] sm:$0xff] %vm153_vm1, %v7251_v35  ;;  %4632 = vst.msk [vmem:[%s16623_s1 + $0x21d0] sm:$0xff] %vm153_vm1, %v7251_v35 }
 0x13d   :  { %4680 = vst.msk [vmem:[%s16623_s1 + $0x2310] sm:$0xff] %vm153_vm1, %v7251_v35  ;;  %4728 = vst.msk [vmem:[%s16623_s1 + $0x2350] sm:$0xff] %vm153_vm1, %v7251_v35 }
 0x13e   :  { %167 = vst.msk [vmem:[%s16623_s1 + $0xa0] sm:$0xff] %vm153_vm1, %v7497_v36  ;;  %2522 = vst.msk [vmem:[%s16623_s1 + $0xe0] sm:$0xff] %vm153_vm1, %v7497_v36 }
 0x13f   :  { %2570 = vst.msk [vmem:[%s16623_s1 + $0x220] sm:$0xff] %vm153_vm1, %v7497_v36  ;;  %2618 = vst.msk [vmem:[%s16623_s1 + $0x260] sm:$0xff] %vm153_vm1, %v7497_v36 }
 0x140   :  { %2666 = vst.msk [vmem:[%s16623_s1 + $0x3a0] sm:$0xff] %vm153_vm1, %v7497_v36  ;;  %2714 = vst.msk [vmem:[%s16623_s1 + $0x3e0] sm:$0xff] %vm153_vm1, %v7497_v36 }
 0x141   :  { %2762 = vst.msk [vmem:[%s16623_s1 + $0x520] sm:$0xff] %vm153_vm1, %v7497_v36  ;;  %2810 = vst.msk [vmem:[%s16623_s1 + $0x560] sm:$0xff] %vm153_vm1, %v7497_v36 }
 0x142   :  { %2858 = vst.msk [vmem:[%s16623_s1 + $0x6a0] sm:$0xff] %vm153_vm1, %v7497_v36  ;;  %2906 = vst.msk [vmem:[%s16623_s1 + $0x6e0] sm:$0xff] %vm153_vm1, %v7497_v36 }
 0x143   :  { %2954 = vst.msk [vmem:[%s16623_s1 + $0x820] sm:$0xff] %vm153_vm1, %v7497_v36  ;;  %3002 = vst.msk [vmem:[%s16623_s1 + $0x860] sm:$0xff] %vm153_vm1, %v7497_v36 }
 0x144   :  { %3050 = vst.msk [vmem:[%s16623_s1 + $0x9a0] sm:$0xff] %vm153_vm1, %v7497_v36  ;;  %3098 = vst.msk [vmem:[%s16623_s1 + $0x9e0] sm:$0xff] %vm153_vm1, %v7497_v36 }
 0x145   :  { %3146 = vst.msk [vmem:[%s16623_s1 + $0xb20] sm:$0xff] %vm153_vm1, %v7497_v36  ;;  %3194 = vst.msk [vmem:[%s16623_s1 + $0xb60] sm:$0xff] %vm153_vm1, %v7497_v36 }
 0x146   :  { %3242 = vst.msk [vmem:[%s16623_s1 + $0xca0] sm:$0xff] %vm153_vm1, %v7497_v36  ;;  %3290 = vst.msk [vmem:[%s16623_s1 + $0xce0] sm:$0xff] %vm153_vm1, %v7497_v36 }
 0x147   :  { %3338 = vst.msk [vmem:[%s16623_s1 + $0xe20] sm:$0xff] %vm153_vm1, %v7497_v36  ;;  %3386 = vst.msk [vmem:[%s16623_s1 + $0xe60] sm:$0xff] %vm153_vm1, %v7497_v36 }
 0x148   :  { %3434 = vst.msk [vmem:[%s16623_s1 + $0xfa0] sm:$0xff] %vm153_vm1, %v7497_v36  ;;  %3482 = vst.msk [vmem:[%s16623_s1 + $0xfe0] sm:$0xff] %vm153_vm1, %v7497_v36 }
 0x149   :  { %3530 = vst.msk [vmem:[%s16623_s1 + $0x1120] sm:$0xff] %vm153_vm1, %v7497_v36  ;;  %3578 = vst.msk [vmem:[%s16623_s1 + $0x1160] sm:$0xff] %vm153_vm1, %v7497_v36 }
 0x14a   :  { %3626 = vst.msk [vmem:[%s16623_s1 + $0x12a0] sm:$0xff] %vm153_vm1, %v7497_v36  ;;  %3674 = vst.msk [vmem:[%s16623_s1 + $0x12e0] sm:$0xff] %vm153_vm1, %v7497_v36 }
 0x14b   :  { %3722 = vst.msk [vmem:[%s16623_s1 + $0x1420] sm:$0xff] %vm153_vm1, %v7497_v36  ;;  %3770 = vst.msk [vmem:[%s16623_s1 + $0x1460] sm:$0xff] %vm153_vm1, %v7497_v36 }
 0x14c   :  { %3818 = vst.msk [vmem:[%s16623_s1 + $0x15a0] sm:$0xff] %vm153_vm1, %v7497_v36  ;;  %3866 = vst.msk [vmem:[%s16623_s1 + $0x15e0] sm:$0xff] %vm153_vm1, %v7497_v36 }
 0x14d   :  { %3914 = vst.msk [vmem:[%s16623_s1 + $0x1720] sm:$0xff] %vm153_vm1, %v7497_v36  ;;  %3962 = vst.msk [vmem:[%s16623_s1 + $0x1760] sm:$0xff] %vm153_vm1, %v7497_v36 }
 0x14e   :  { %4010 = vst.msk [vmem:[%s16623_s1 + $0x18a0] sm:$0xff] %vm153_vm1, %v7497_v36  ;;  %4058 = vst.msk [vmem:[%s16623_s1 + $0x18e0] sm:$0xff] %vm153_vm1, %v7497_v36 }
 0x14f   :  { %4106 = vst.msk [vmem:[%s16623_s1 + $0x1a20] sm:$0xff] %vm153_vm1, %v7497_v36  ;;  %4154 = vst.msk [vmem:[%s16623_s1 + $0x1a60] sm:$0xff] %vm153_vm1, %v7497_v36 }
 0x150   :  { %4202 = vst.msk [vmem:[%s16623_s1 + $0x1ba0] sm:$0xff] %vm153_vm1, %v7497_v36  ;;  %4250 = vst.msk [vmem:[%s16623_s1 + $0x1be0] sm:$0xff] %vm153_vm1, %v7497_v36 }
 0x151   :  { %4298 = vst.msk [vmem:[%s16623_s1 + $0x1d20] sm:$0xff] %vm153_vm1, %v7497_v36  ;;  %4346 = vst.msk [vmem:[%s16623_s1 + $0x1d60] sm:$0xff] %vm153_vm1, %v7497_v36 }
 0x152   :  { %4394 = vst.msk [vmem:[%s16623_s1 + $0x1ea0] sm:$0xff] %vm153_vm1, %v7497_v36  ;;  %4442 = vst.msk [vmem:[%s16623_s1 + $0x1ee0] sm:$0xff] %vm153_vm1, %v7497_v36 }
 0x153   :  { %4490 = vst.msk [vmem:[%s16623_s1 + $0x2020] sm:$0xff] %vm153_vm1, %v7497_v36  ;;  %4538 = vst.msk [vmem:[%s16623_s1 + $0x2060] sm:$0xff] %vm153_vm1, %v7497_v36 }
 0x154   :  { %4586 = vst.msk [vmem:[%s16623_s1 + $0x21a0] sm:$0xff] %vm153_vm1, %v7497_v36  ;;  %4634 = vst.msk [vmem:[%s16623_s1 + $0x21e0] sm:$0xff] %vm153_vm1, %v7497_v36 }
 0x155   :  { %4682 = vst.msk [vmem:[%s16623_s1 + $0x2320] sm:$0xff] %vm153_vm1, %v7497_v36  ;;  %4730 = vst.msk [vmem:[%s16623_s1 + $0x2360] sm:$0xff] %vm153_vm1, %v7497_v36 }
 0x156   :  { %170 = vst.msk [vmem:[%s16623_s1 + $0xb8] sm:$0x3] %vm155_vm2, %v7741_v37  ;;  %2525 = vst.msk [vmem:[%s16623_s1 + $0xf8] sm:$0x3] %vm155_vm2, %v7741_v37 }
 0x157   :  { %2573 = vst.msk [vmem:[%s16623_s1 + $0x238] sm:$0x3] %vm155_vm2, %v7741_v37  ;;  %2621 = vst.msk [vmem:[%s16623_s1 + $0x278] sm:$0x3] %vm155_vm2, %v7741_v37 }
 0x158   :  { %2669 = vst.msk [vmem:[%s16623_s1 + $0x3b8] sm:$0x3] %vm155_vm2, %v7741_v37  ;;  %2717 = vst.msk [vmem:[%s16623_s1 + $0x3f8] sm:$0x3] %vm155_vm2, %v7741_v37 }
 0x159   :  { %2765 = vst.msk [vmem:[%s16623_s1 + $0x538] sm:$0x3] %vm155_vm2, %v7741_v37  ;;  %2813 = vst.msk [vmem:[%s16623_s1 + $0x578] sm:$0x3] %vm155_vm2, %v7741_v37 }
 0x15a   :  { %2861 = vst.msk [vmem:[%s16623_s1 + $0x6b8] sm:$0x3] %vm155_vm2, %v7741_v37  ;;  %2909 = vst.msk [vmem:[%s16623_s1 + $0x6f8] sm:$0x3] %vm155_vm2, %v7741_v37 }
 0x15b   :  { %2957 = vst.msk [vmem:[%s16623_s1 + $0x838] sm:$0x3] %vm155_vm2, %v7741_v37  ;;  %3005 = vst.msk [vmem:[%s16623_s1 + $0x878] sm:$0x3] %vm155_vm2, %v7741_v37 }
 0x15c   :  { %3053 = vst.msk [vmem:[%s16623_s1 + $0x9b8] sm:$0x3] %vm155_vm2, %v7741_v37  ;;  %3101 = vst.msk [vmem:[%s16623_s1 + $0x9f8] sm:$0x3] %vm155_vm2, %v7741_v37 }
 0x15d   :  { %3149 = vst.msk [vmem:[%s16623_s1 + $0xb38] sm:$0x3] %vm155_vm2, %v7741_v37  ;;  %3197 = vst.msk [vmem:[%s16623_s1 + $0xb78] sm:$0x3] %vm155_vm2, %v7741_v37 }
 0x15e   :  { %3245 = vst.msk [vmem:[%s16623_s1 + $0xcb8] sm:$0x3] %vm155_vm2, %v7741_v37  ;;  %3293 = vst.msk [vmem:[%s16623_s1 + $0xcf8] sm:$0x3] %vm155_vm2, %v7741_v37 }
 0x15f   :  { %3341 = vst.msk [vmem:[%s16623_s1 + $0xe38] sm:$0x3] %vm155_vm2, %v7741_v37  ;;  %3389 = vst.msk [vmem:[%s16623_s1 + $0xe78] sm:$0x3] %vm155_vm2, %v7741_v37 }
 0x160   :  { %3437 = vst.msk [vmem:[%s16623_s1 + $0xfb8] sm:$0x3] %vm155_vm2, %v7741_v37  ;;  %3485 = vst.msk [vmem:[%s16623_s1 + $0xff8] sm:$0x3] %vm155_vm2, %v7741_v37 }
 0x161   :  { %3533 = vst.msk [vmem:[%s16623_s1 + $0x1138] sm:$0x3] %vm155_vm2, %v7741_v37  ;;  %3581 = vst.msk [vmem:[%s16623_s1 + $0x1178] sm:$0x3] %vm155_vm2, %v7741_v37 }
 0x162   :  { %3629 = vst.msk [vmem:[%s16623_s1 + $0x12b8] sm:$0x3] %vm155_vm2, %v7741_v37  ;;  %3677 = vst.msk [vmem:[%s16623_s1 + $0x12f8] sm:$0x3] %vm155_vm2, %v7741_v37 }
 0x163   :  { %3725 = vst.msk [vmem:[%s16623_s1 + $0x1438] sm:$0x3] %vm155_vm2, %v7741_v37  ;;  %3773 = vst.msk [vmem:[%s16623_s1 + $0x1478] sm:$0x3] %vm155_vm2, %v7741_v37 }
 0x164   :  { %3821 = vst.msk [vmem:[%s16623_s1 + $0x15b8] sm:$0x3] %vm155_vm2, %v7741_v37  ;;  %3869 = vst.msk [vmem:[%s16623_s1 + $0x15f8] sm:$0x3] %vm155_vm2, %v7741_v37 }
 0x165   :  { %3917 = vst.msk [vmem:[%s16623_s1 + $0x1738] sm:$0x3] %vm155_vm2, %v7741_v37  ;;  %3965 = vst.msk [vmem:[%s16623_s1 + $0x1778] sm:$0x3] %vm155_vm2, %v7741_v37 }
 0x166   :  { %4013 = vst.msk [vmem:[%s16623_s1 + $0x18b8] sm:$0x3] %vm155_vm2, %v7741_v37  ;;  %4061 = vst.msk [vmem:[%s16623_s1 + $0x18f8] sm:$0x3] %vm155_vm2, %v7741_v37 }
 0x167   :  { %4109 = vst.msk [vmem:[%s16623_s1 + $0x1a38] sm:$0x3] %vm155_vm2, %v7741_v37  ;;  %4157 = vst.msk [vmem:[%s16623_s1 + $0x1a78] sm:$0x3] %vm155_vm2, %v7741_v37 }
 0x168   :  { %4205 = vst.msk [vmem:[%s16623_s1 + $0x1bb8] sm:$0x3] %vm155_vm2, %v7741_v37  ;;  %4253 = vst.msk [vmem:[%s16623_s1 + $0x1bf8] sm:$0x3] %vm155_vm2, %v7741_v37 }
 0x169   :  { %4301 = vst.msk [vmem:[%s16623_s1 + $0x1d38] sm:$0x3] %vm155_vm2, %v7741_v37  ;;  %4349 = vst.msk [vmem:[%s16623_s1 + $0x1d78] sm:$0x3] %vm155_vm2, %v7741_v37 }
 0x16a   :  { %4397 = vst.msk [vmem:[%s16623_s1 + $0x1eb8] sm:$0x3] %vm155_vm2, %v7741_v37  ;;  %4445 = vst.msk [vmem:[%s16623_s1 + $0x1ef8] sm:$0x3] %vm155_vm2, %v7741_v37 }
 0x16b   :  { %4493 = vst.msk [vmem:[%s16623_s1 + $0x2038] sm:$0x3] %vm155_vm2, %v7741_v37  ;;  %4541 = vst.msk [vmem:[%s16623_s1 + $0x2078] sm:$0x3] %vm155_vm2, %v7741_v37 }
 0x16c   :  { %4589 = vst.msk [vmem:[%s16623_s1 + $0x21b8] sm:$0x3] %vm155_vm2, %v7741_v37  ;;  %4637 = vst.msk [vmem:[%s16623_s1 + $0x21f8] sm:$0x3] %vm155_vm2, %v7741_v37 }
 0x16d   :  { %4685 = vst.msk [vmem:[%s16623_s1 + $0x2338] sm:$0x3] %vm155_vm2, %v7741_v37  ;;  %4733 = vst.msk [vmem:[%s16623_s1 + $0x2378] sm:$0x3] %vm155_vm2, %v7741_v37 }
 0x16e   :  { %169 = vst.msk [vmem:[%s16623_s1 + $0xb0] sm:$0xff] %vm153_vm1, %v8256_v46  ;;  %2524 = vst.msk [vmem:[%s16623_s1 + $0xf0] sm:$0xff] %vm153_vm1, %v8256_v46 }
 0x16f   :  { %2572 = vst.msk [vmem:[%s16623_s1 + $0x230] sm:$0xff] %vm153_vm1, %v8256_v46  ;;  %2620 = vst.msk [vmem:[%s16623_s1 + $0x270] sm:$0xff] %vm153_vm1, %v8256_v46 }
 0x170   :  { %2668 = vst.msk [vmem:[%s16623_s1 + $0x3b0] sm:$0xff] %vm153_vm1, %v8256_v46  ;;  %2716 = vst.msk [vmem:[%s16623_s1 + $0x3f0] sm:$0xff] %vm153_vm1, %v8256_v46 }
 0x171   :  { %2764 = vst.msk [vmem:[%s16623_s1 + $0x530] sm:$0xff] %vm153_vm1, %v8256_v46  ;;  %2812 = vst.msk [vmem:[%s16623_s1 + $0x570] sm:$0xff] %vm153_vm1, %v8256_v46 }
 0x172   :  { %2860 = vst.msk [vmem:[%s16623_s1 + $0x6b0] sm:$0xff] %vm153_vm1, %v8256_v46  ;;  %2908 = vst.msk [vmem:[%s16623_s1 + $0x6f0] sm:$0xff] %vm153_vm1, %v8256_v46 }
 0x173   :  { %2956 = vst.msk [vmem:[%s16623_s1 + $0x830] sm:$0xff] %vm153_vm1, %v8256_v46  ;;  %3004 = vst.msk [vmem:[%s16623_s1 + $0x870] sm:$0xff] %vm153_vm1, %v8256_v46 }
 0x174   :  { %3052 = vst.msk [vmem:[%s16623_s1 + $0x9b0] sm:$0xff] %vm153_vm1, %v8256_v46  ;;  %3100 = vst.msk [vmem:[%s16623_s1 + $0x9f0] sm:$0xff] %vm153_vm1, %v8256_v46 }
 0x175   :  { %3148 = vst.msk [vmem:[%s16623_s1 + $0xb30] sm:$0xff] %vm153_vm1, %v8256_v46  ;;  %3196 = vst.msk [vmem:[%s16623_s1 + $0xb70] sm:$0xff] %vm153_vm1, %v8256_v46 }
 0x176   :  { %3244 = vst.msk [vmem:[%s16623_s1 + $0xcb0] sm:$0xff] %vm153_vm1, %v8256_v46  ;;  %3292 = vst.msk [vmem:[%s16623_s1 + $0xcf0] sm:$0xff] %vm153_vm1, %v8256_v46 }
 0x177   :  { %3340 = vst.msk [vmem:[%s16623_s1 + $0xe30] sm:$0xff] %vm153_vm1, %v8256_v46  ;;  %3388 = vst.msk [vmem:[%s16623_s1 + $0xe70] sm:$0xff] %vm153_vm1, %v8256_v46 }
 0x178   :  { %3436 = vst.msk [vmem:[%s16623_s1 + $0xfb0] sm:$0xff] %vm153_vm1, %v8256_v46  ;;  %3484 = vst.msk [vmem:[%s16623_s1 + $0xff0] sm:$0xff] %vm153_vm1, %v8256_v46 }
 0x179   :  { %3532 = vst.msk [vmem:[%s16623_s1 + $0x1130] sm:$0xff] %vm153_vm1, %v8256_v46  ;;  %3580 = vst.msk [vmem:[%s16623_s1 + $0x1170] sm:$0xff] %vm153_vm1, %v8256_v46 }
 0x17a   :  { %3628 = vst.msk [vmem:[%s16623_s1 + $0x12b0] sm:$0xff] %vm153_vm1, %v8256_v46  ;;  %3676 = vst.msk [vmem:[%s16623_s1 + $0x12f0] sm:$0xff] %vm153_vm1, %v8256_v46 }
 0x17b   :  { %3724 = vst.msk [vmem:[%s16623_s1 + $0x1430] sm:$0xff] %vm153_vm1, %v8256_v46  ;;  %3772 = vst.msk [vmem:[%s16623_s1 + $0x1470] sm:$0xff] %vm153_vm1, %v8256_v46 }
 0x17c   :  { %3820 = vst.msk [vmem:[%s16623_s1 + $0x15b0] sm:$0xff] %vm153_vm1, %v8256_v46  ;;  %3868 = vst.msk [vmem:[%s16623_s1 + $0x15f0] sm:$0xff] %vm153_vm1, %v8256_v46 }
 0x17d   :  { %3916 = vst.msk [vmem:[%s16623_s1 + $0x1730] sm:$0xff] %vm153_vm1, %v8256_v46  ;;  %3964 = vst.msk [vmem:[%s16623_s1 + $0x1770] sm:$0xff] %vm153_vm1, %v8256_v46 }
 0x17e   :  { %4012 = vst.msk [vmem:[%s16623_s1 + $0x18b0] sm:$0xff] %vm153_vm1, %v8256_v46  ;;  %4060 = vst.msk [vmem:[%s16623_s1 + $0x18f0] sm:$0xff] %vm153_vm1, %v8256_v46 }
 0x17f   :  { %4108 = vst.msk [vmem:[%s16623_s1 + $0x1a30] sm:$0xff] %vm153_vm1, %v8256_v46  ;;  %4156 = vst.msk [vmem:[%s16623_s1 + $0x1a70] sm:$0xff] %vm153_vm1, %v8256_v46 }
 0x180   :  { %4204 = vst.msk [vmem:[%s16623_s1 + $0x1bb0] sm:$0xff] %vm153_vm1, %v8256_v46  ;;  %4252 = vst.msk [vmem:[%s16623_s1 + $0x1bf0] sm:$0xff] %vm153_vm1, %v8256_v46 }
 0x181   :  { %4300 = vst.msk [vmem:[%s16623_s1 + $0x1d30] sm:$0xff] %vm153_vm1, %v8256_v46  ;;  %4348 = vst.msk [vmem:[%s16623_s1 + $0x1d70] sm:$0xff] %vm153_vm1, %v8256_v46 }
 0x182   :  { %4396 = vst.msk [vmem:[%s16623_s1 + $0x1eb0] sm:$0xff] %vm153_vm1, %v8256_v46  ;;  %4444 = vst.msk [vmem:[%s16623_s1 + $0x1ef0] sm:$0xff] %vm153_vm1, %v8256_v46 }
 0x183   :  { %4492 = vst.msk [vmem:[%s16623_s1 + $0x2030] sm:$0xff] %vm153_vm1, %v8256_v46  ;;  %4540 = vst.msk [vmem:[%s16623_s1 + $0x2070] sm:$0xff] %vm153_vm1, %v8256_v46 }
 0x184   :  { %4588 = vst.msk [vmem:[%s16623_s1 + $0x21b0] sm:$0xff] %vm153_vm1, %v8256_v46  ;;  %4636 = vst.msk [vmem:[%s16623_s1 + $0x21f0] sm:$0xff] %vm153_vm1, %v8256_v46 }
 0x185   :  { %4684 = vst.msk [vmem:[%s16623_s1 + $0x2330] sm:$0xff] %vm153_vm1, %v8256_v46  ;;  %4732 = vst.msk [vmem:[%s16623_s1 + $0x2370] sm:$0xff] %vm153_vm1, %v8256_v46 }
 0x186   :  { %172 = vst.msk [vmem:[%s16623_s1 + $0x108] sm:$0x3] %vm155_vm2, %v8236_v41  ;;  %2527 = vst.msk [vmem:[%s16623_s1 + $0x148] sm:$0x3] %vm155_vm2, %v8236_v41 }
 0x187   :  { %2575 = vst.msk [vmem:[%s16623_s1 + $0x288] sm:$0x3] %vm155_vm2, %v8236_v41  ;;  %2623 = vst.msk [vmem:[%s16623_s1 + $0x2c8] sm:$0x3] %vm155_vm2, %v8236_v41 }
 0x188   :  { %2671 = vst.msk [vmem:[%s16623_s1 + $0x408] sm:$0x3] %vm155_vm2, %v8236_v41  ;;  %2719 = vst.msk [vmem:[%s16623_s1 + $0x448] sm:$0x3] %vm155_vm2, %v8236_v41 }
 0x189   :  { %2767 = vst.msk [vmem:[%s16623_s1 + $0x588] sm:$0x3] %vm155_vm2, %v8236_v41  ;;  %2815 = vst.msk [vmem:[%s16623_s1 + $0x5c8] sm:$0x3] %vm155_vm2, %v8236_v41 }
 0x18a   :  { %2863 = vst.msk [vmem:[%s16623_s1 + $0x708] sm:$0x3] %vm155_vm2, %v8236_v41  ;;  %2911 = vst.msk [vmem:[%s16623_s1 + $0x748] sm:$0x3] %vm155_vm2, %v8236_v41 }
 0x18b   :  { %2959 = vst.msk [vmem:[%s16623_s1 + $0x888] sm:$0x3] %vm155_vm2, %v8236_v41  ;;  %3007 = vst.msk [vmem:[%s16623_s1 + $0x8c8] sm:$0x3] %vm155_vm2, %v8236_v41 }
 0x18c   :  { %3055 = vst.msk [vmem:[%s16623_s1 + $0xa08] sm:$0x3] %vm155_vm2, %v8236_v41  ;;  %3103 = vst.msk [vmem:[%s16623_s1 + $0xa48] sm:$0x3] %vm155_vm2, %v8236_v41 }
 0x18d   :  { %3151 = vst.msk [vmem:[%s16623_s1 + $0xb88] sm:$0x3] %vm155_vm2, %v8236_v41  ;;  %3199 = vst.msk [vmem:[%s16623_s1 + $0xbc8] sm:$0x3] %vm155_vm2, %v8236_v41 }
 0x18e   :  { %3247 = vst.msk [vmem:[%s16623_s1 + $0xd08] sm:$0x3] %vm155_vm2, %v8236_v41  ;;  %3295 = vst.msk [vmem:[%s16623_s1 + $0xd48] sm:$0x3] %vm155_vm2, %v8236_v41 }
 0x18f   :  { %3343 = vst.msk [vmem:[%s16623_s1 + $0xe88] sm:$0x3] %vm155_vm2, %v8236_v41  ;;  %3391 = vst.msk [vmem:[%s16623_s1 + $0xec8] sm:$0x3] %vm155_vm2, %v8236_v41 }
 0x190   :  { %3439 = vst.msk [vmem:[%s16623_s1 + $0x1008] sm:$0x3] %vm155_vm2, %v8236_v41  ;;  %3487 = vst.msk [vmem:[%s16623_s1 + $0x1048] sm:$0x3] %vm155_vm2, %v8236_v41 }
 0x191   :  { %3535 = vst.msk [vmem:[%s16623_s1 + $0x1188] sm:$0x3] %vm155_vm2, %v8236_v41  ;;  %3583 = vst.msk [vmem:[%s16623_s1 + $0x11c8] sm:$0x3] %vm155_vm2, %v8236_v41 }
 0x192   :  { %3631 = vst.msk [vmem:[%s16623_s1 + $0x1308] sm:$0x3] %vm155_vm2, %v8236_v41  ;;  %3679 = vst.msk [vmem:[%s16623_s1 + $0x1348] sm:$0x3] %vm155_vm2, %v8236_v41 }
 0x193   :  { %3727 = vst.msk [vmem:[%s16623_s1 + $0x1488] sm:$0x3] %vm155_vm2, %v8236_v41  ;;  %3775 = vst.msk [vmem:[%s16623_s1 + $0x14c8] sm:$0x3] %vm155_vm2, %v8236_v41 }
 0x194   :  { %3823 = vst.msk [vmem:[%s16623_s1 + $0x1608] sm:$0x3] %vm155_vm2, %v8236_v41  ;;  %3871 = vst.msk [vmem:[%s16623_s1 + $0x1648] sm:$0x3] %vm155_vm2, %v8236_v41 }
 0x195   :  { %3919 = vst.msk [vmem:[%s16623_s1 + $0x1788] sm:$0x3] %vm155_vm2, %v8236_v41  ;;  %3967 = vst.msk [vmem:[%s16623_s1 + $0x17c8] sm:$0x3] %vm155_vm2, %v8236_v41 }
 0x196   :  { %4015 = vst.msk [vmem:[%s16623_s1 + $0x1908] sm:$0x3] %vm155_vm2, %v8236_v41  ;;  %4063 = vst.msk [vmem:[%s16623_s1 + $0x1948] sm:$0x3] %vm155_vm2, %v8236_v41 }
 0x197   :  { %4111 = vst.msk [vmem:[%s16623_s1 + $0x1a88] sm:$0x3] %vm155_vm2, %v8236_v41  ;;  %4159 = vst.msk [vmem:[%s16623_s1 + $0x1ac8] sm:$0x3] %vm155_vm2, %v8236_v41 }
 0x198   :  { %4207 = vst.msk [vmem:[%s16623_s1 + $0x1c08] sm:$0x3] %vm155_vm2, %v8236_v41  ;;  %4255 = vst.msk [vmem:[%s16623_s1 + $0x1c48] sm:$0x3] %vm155_vm2, %v8236_v41 }
 0x199   :  { %4303 = vst.msk [vmem:[%s16623_s1 + $0x1d88] sm:$0x3] %vm155_vm2, %v8236_v41  ;;  %4351 = vst.msk [vmem:[%s16623_s1 + $0x1dc8] sm:$0x3] %vm155_vm2, %v8236_v41 }
 0x19a   :  { %4399 = vst.msk [vmem:[%s16623_s1 + $0x1f08] sm:$0x3] %vm155_vm2, %v8236_v41  ;;  %4447 = vst.msk [vmem:[%s16623_s1 + $0x1f48] sm:$0x3] %vm155_vm2, %v8236_v41 }
 0x19b   :  { %4495 = vst.msk [vmem:[%s16623_s1 + $0x2088] sm:$0x3] %vm155_vm2, %v8236_v41  ;;  %4543 = vst.msk [vmem:[%s16623_s1 + $0x20c8] sm:$0x3] %vm155_vm2, %v8236_v41 }
 0x19c   :  { %4591 = vst.msk [vmem:[%s16623_s1 + $0x2208] sm:$0x3] %vm155_vm2, %v8236_v41  ;;  %4639 = vst.msk [vmem:[%s16623_s1 + $0x2248] sm:$0x3] %vm155_vm2, %v8236_v41 }
 0x19d   :  { %4687 = vst.msk [vmem:[%s16623_s1 + $0x2388] sm:$0x3] %vm155_vm2, %v8236_v41  ;;  %4735 = vst.msk [vmem:[%s16623_s1 + $0x23c8] sm:$0x3] %vm155_vm2, %v8236_v41 }
 0x19e   :  { %174 = vst.msk [vmem:[%s16623_s1 + $0x118] sm:$0x3] %vm155_vm2, %v8240_v42  ;;  %2529 = vst.msk [vmem:[%s16623_s1 + $0x158] sm:$0x3] %vm155_vm2, %v8240_v42 }
 0x19f   :  { %2577 = vst.msk [vmem:[%s16623_s1 + $0x298] sm:$0x3] %vm155_vm2, %v8240_v42  ;;  %2625 = vst.msk [vmem:[%s16623_s1 + $0x2d8] sm:$0x3] %vm155_vm2, %v8240_v42 }
 0x1a0   :  { %2673 = vst.msk [vmem:[%s16623_s1 + $0x418] sm:$0x3] %vm155_vm2, %v8240_v42  ;;  %2721 = vst.msk [vmem:[%s16623_s1 + $0x458] sm:$0x3] %vm155_vm2, %v8240_v42 }
 0x1a1   :  { %2769 = vst.msk [vmem:[%s16623_s1 + $0x598] sm:$0x3] %vm155_vm2, %v8240_v42  ;;  %2817 = vst.msk [vmem:[%s16623_s1 + $0x5d8] sm:$0x3] %vm155_vm2, %v8240_v42 }
 0x1a2   :  { %2865 = vst.msk [vmem:[%s16623_s1 + $0x718] sm:$0x3] %vm155_vm2, %v8240_v42  ;;  %2913 = vst.msk [vmem:[%s16623_s1 + $0x758] sm:$0x3] %vm155_vm2, %v8240_v42 }
 0x1a3   :  { %2961 = vst.msk [vmem:[%s16623_s1 + $0x898] sm:$0x3] %vm155_vm2, %v8240_v42  ;;  %3009 = vst.msk [vmem:[%s16623_s1 + $0x8d8] sm:$0x3] %vm155_vm2, %v8240_v42 }
 0x1a4   :  { %3057 = vst.msk [vmem:[%s16623_s1 + $0xa18] sm:$0x3] %vm155_vm2, %v8240_v42  ;;  %3105 = vst.msk [vmem:[%s16623_s1 + $0xa58] sm:$0x3] %vm155_vm2, %v8240_v42 }
 0x1a5   :  { %3153 = vst.msk [vmem:[%s16623_s1 + $0xb98] sm:$0x3] %vm155_vm2, %v8240_v42  ;;  %3201 = vst.msk [vmem:[%s16623_s1 + $0xbd8] sm:$0x3] %vm155_vm2, %v8240_v42 }
 0x1a6   :  { %3249 = vst.msk [vmem:[%s16623_s1 + $0xd18] sm:$0x3] %vm155_vm2, %v8240_v42  ;;  %3297 = vst.msk [vmem:[%s16623_s1 + $0xd58] sm:$0x3] %vm155_vm2, %v8240_v42 }
 0x1a7   :  { %3345 = vst.msk [vmem:[%s16623_s1 + $0xe98] sm:$0x3] %vm155_vm2, %v8240_v42  ;;  %3393 = vst.msk [vmem:[%s16623_s1 + $0xed8] sm:$0x3] %vm155_vm2, %v8240_v42 }
 0x1a8   :  { %3441 = vst.msk [vmem:[%s16623_s1 + $0x1018] sm:$0x3] %vm155_vm2, %v8240_v42  ;;  %3489 = vst.msk [vmem:[%s16623_s1 + $0x1058] sm:$0x3] %vm155_vm2, %v8240_v42 }
 0x1a9   :  { %3537 = vst.msk [vmem:[%s16623_s1 + $0x1198] sm:$0x3] %vm155_vm2, %v8240_v42  ;;  %3585 = vst.msk [vmem:[%s16623_s1 + $0x11d8] sm:$0x3] %vm155_vm2, %v8240_v42 }
 0x1aa   :  { %3633 = vst.msk [vmem:[%s16623_s1 + $0x1318] sm:$0x3] %vm155_vm2, %v8240_v42  ;;  %3681 = vst.msk [vmem:[%s16623_s1 + $0x1358] sm:$0x3] %vm155_vm2, %v8240_v42 }
 0x1ab   :  { %3729 = vst.msk [vmem:[%s16623_s1 + $0x1498] sm:$0x3] %vm155_vm2, %v8240_v42  ;;  %3777 = vst.msk [vmem:[%s16623_s1 + $0x14d8] sm:$0x3] %vm155_vm2, %v8240_v42 }
 0x1ac   :  { %3825 = vst.msk [vmem:[%s16623_s1 + $0x1618] sm:$0x3] %vm155_vm2, %v8240_v42  ;;  %3873 = vst.msk [vmem:[%s16623_s1 + $0x1658] sm:$0x3] %vm155_vm2, %v8240_v42 }
 0x1ad   :  { %3921 = vst.msk [vmem:[%s16623_s1 + $0x1798] sm:$0x3] %vm155_vm2, %v8240_v42  ;;  %3969 = vst.msk [vmem:[%s16623_s1 + $0x17d8] sm:$0x3] %vm155_vm2, %v8240_v42 }
 0x1ae   :  { %4017 = vst.msk [vmem:[%s16623_s1 + $0x1918] sm:$0x3] %vm155_vm2, %v8240_v42  ;;  %4065 = vst.msk [vmem:[%s16623_s1 + $0x1958] sm:$0x3] %vm155_vm2, %v8240_v42 }
 0x1af   :  { %4113 = vst.msk [vmem:[%s16623_s1 + $0x1a98] sm:$0x3] %vm155_vm2, %v8240_v42  ;;  %4161 = vst.msk [vmem:[%s16623_s1 + $0x1ad8] sm:$0x3] %vm155_vm2, %v8240_v42 }
 0x1b0   :  { %4209 = vst.msk [vmem:[%s16623_s1 + $0x1c18] sm:$0x3] %vm155_vm2, %v8240_v42  ;;  %4257 = vst.msk [vmem:[%s16623_s1 + $0x1c58] sm:$0x3] %vm155_vm2, %v8240_v42 }
 0x1b1   :  { %4305 = vst.msk [vmem:[%s16623_s1 + $0x1d98] sm:$0x3] %vm155_vm2, %v8240_v42  ;;  %4353 = vst.msk [vmem:[%s16623_s1 + $0x1dd8] sm:$0x3] %vm155_vm2, %v8240_v42 }
 0x1b2   :  { %4401 = vst.msk [vmem:[%s16623_s1 + $0x1f18] sm:$0x3] %vm155_vm2, %v8240_v42  ;;  %4449 = vst.msk [vmem:[%s16623_s1 + $0x1f58] sm:$0x3] %vm155_vm2, %v8240_v42 }
 0x1b3   :  { %4497 = vst.msk [vmem:[%s16623_s1 + $0x2098] sm:$0x3] %vm155_vm2, %v8240_v42  ;;  %4545 = vst.msk [vmem:[%s16623_s1 + $0x20d8] sm:$0x3] %vm155_vm2, %v8240_v42 }
 0x1b4   :  { %4593 = vst.msk [vmem:[%s16623_s1 + $0x2218] sm:$0x3] %vm155_vm2, %v8240_v42  ;;  %4641 = vst.msk [vmem:[%s16623_s1 + $0x2258] sm:$0x3] %vm155_vm2, %v8240_v42 }
 0x1b5   :  { %4689 = vst.msk [vmem:[%s16623_s1 + $0x2398] sm:$0x3] %vm155_vm2, %v8240_v42  ;;  %4737 = vst.msk [vmem:[%s16623_s1 + $0x23d8] sm:$0x3] %vm155_vm2, %v8240_v42 }
 0x1b6   :  { %176 = vst.msk [vmem:[%s16623_s1 + $0x128] sm:$0x3] %vm155_vm2, %v8244_v43  ;;  %2531 = vst.msk [vmem:[%s16623_s1 + $0x168] sm:$0x3] %vm155_vm2, %v8244_v43 }
 0x1b7   :  { %2579 = vst.msk [vmem:[%s16623_s1 + $0x2a8] sm:$0x3] %vm155_vm2, %v8244_v43  ;;  %2627 = vst.msk [vmem:[%s16623_s1 + $0x2e8] sm:$0x3] %vm155_vm2, %v8244_v43 }
 0x1b8   :  { %2675 = vst.msk [vmem:[%s16623_s1 + $0x428] sm:$0x3] %vm155_vm2, %v8244_v43  ;;  %2723 = vst.msk [vmem:[%s16623_s1 + $0x468] sm:$0x3] %vm155_vm2, %v8244_v43 }
 0x1b9   :  { %2771 = vst.msk [vmem:[%s16623_s1 + $0x5a8] sm:$0x3] %vm155_vm2, %v8244_v43  ;;  %2819 = vst.msk [vmem:[%s16623_s1 + $0x5e8] sm:$0x3] %vm155_vm2, %v8244_v43 }
 0x1ba   :  { %2867 = vst.msk [vmem:[%s16623_s1 + $0x728] sm:$0x3] %vm155_vm2, %v8244_v43  ;;  %2915 = vst.msk [vmem:[%s16623_s1 + $0x768] sm:$0x3] %vm155_vm2, %v8244_v43 }
 0x1bb   :  { %2963 = vst.msk [vmem:[%s16623_s1 + $0x8a8] sm:$0x3] %vm155_vm2, %v8244_v43  ;;  %3011 = vst.msk [vmem:[%s16623_s1 + $0x8e8] sm:$0x3] %vm155_vm2, %v8244_v43 }
 0x1bc   :  { %3059 = vst.msk [vmem:[%s16623_s1 + $0xa28] sm:$0x3] %vm155_vm2, %v8244_v43  ;;  %3107 = vst.msk [vmem:[%s16623_s1 + $0xa68] sm:$0x3] %vm155_vm2, %v8244_v43 }
 0x1bd   :  { %3155 = vst.msk [vmem:[%s16623_s1 + $0xba8] sm:$0x3] %vm155_vm2, %v8244_v43  ;;  %3203 = vst.msk [vmem:[%s16623_s1 + $0xbe8] sm:$0x3] %vm155_vm2, %v8244_v43 }
 0x1be   :  { %3251 = vst.msk [vmem:[%s16623_s1 + $0xd28] sm:$0x3] %vm155_vm2, %v8244_v43  ;;  %3299 = vst.msk [vmem:[%s16623_s1 + $0xd68] sm:$0x3] %vm155_vm2, %v8244_v43 }
 0x1bf   :  { %3347 = vst.msk [vmem:[%s16623_s1 + $0xea8] sm:$0x3] %vm155_vm2, %v8244_v43  ;;  %3395 = vst.msk [vmem:[%s16623_s1 + $0xee8] sm:$0x3] %vm155_vm2, %v8244_v43 }
 0x1c0   :  { %3443 = vst.msk [vmem:[%s16623_s1 + $0x1028] sm:$0x3] %vm155_vm2, %v8244_v43  ;;  %3491 = vst.msk [vmem:[%s16623_s1 + $0x1068] sm:$0x3] %vm155_vm2, %v8244_v43 }
 0x1c1   :  { %3539 = vst.msk [vmem:[%s16623_s1 + $0x11a8] sm:$0x3] %vm155_vm2, %v8244_v43  ;;  %3587 = vst.msk [vmem:[%s16623_s1 + $0x11e8] sm:$0x3] %vm155_vm2, %v8244_v43 }
 0x1c2   :  { %3635 = vst.msk [vmem:[%s16623_s1 + $0x1328] sm:$0x3] %vm155_vm2, %v8244_v43  ;;  %3683 = vst.msk [vmem:[%s16623_s1 + $0x1368] sm:$0x3] %vm155_vm2, %v8244_v43 }
 0x1c3   :  { %3731 = vst.msk [vmem:[%s16623_s1 + $0x14a8] sm:$0x3] %vm155_vm2, %v8244_v43  ;;  %3779 = vst.msk [vmem:[%s16623_s1 + $0x14e8] sm:$0x3] %vm155_vm2, %v8244_v43 }
 0x1c4   :  { %3827 = vst.msk [vmem:[%s16623_s1 + $0x1628] sm:$0x3] %vm155_vm2, %v8244_v43  ;;  %3875 = vst.msk [vmem:[%s16623_s1 + $0x1668] sm:$0x3] %vm155_vm2, %v8244_v43 }
 0x1c5   :  { %3923 = vst.msk [vmem:[%s16623_s1 + $0x17a8] sm:$0x3] %vm155_vm2, %v8244_v43  ;;  %3971 = vst.msk [vmem:[%s16623_s1 + $0x17e8] sm:$0x3] %vm155_vm2, %v8244_v43 }
 0x1c6   :  { %4019 = vst.msk [vmem:[%s16623_s1 + $0x1928] sm:$0x3] %vm155_vm2, %v8244_v43  ;;  %4067 = vst.msk [vmem:[%s16623_s1 + $0x1968] sm:$0x3] %vm155_vm2, %v8244_v43 }
 0x1c7   :  { %4115 = vst.msk [vmem:[%s16623_s1 + $0x1aa8] sm:$0x3] %vm155_vm2, %v8244_v43  ;;  %4163 = vst.msk [vmem:[%s16623_s1 + $0x1ae8] sm:$0x3] %vm155_vm2, %v8244_v43 }
 0x1c8   :  { %4211 = vst.msk [vmem:[%s16623_s1 + $0x1c28] sm:$0x3] %vm155_vm2, %v8244_v43  ;;  %4259 = vst.msk [vmem:[%s16623_s1 + $0x1c68] sm:$0x3] %vm155_vm2, %v8244_v43 }
 0x1c9   :  { %4307 = vst.msk [vmem:[%s16623_s1 + $0x1da8] sm:$0x3] %vm155_vm2, %v8244_v43  ;;  %4355 = vst.msk [vmem:[%s16623_s1 + $0x1de8] sm:$0x3] %vm155_vm2, %v8244_v43 }
 0x1ca   :  { %4403 = vst.msk [vmem:[%s16623_s1 + $0x1f28] sm:$0x3] %vm155_vm2, %v8244_v43  ;;  %4451 = vst.msk [vmem:[%s16623_s1 + $0x1f68] sm:$0x3] %vm155_vm2, %v8244_v43 }
 0x1cb   :  { %4499 = vst.msk [vmem:[%s16623_s1 + $0x20a8] sm:$0x3] %vm155_vm2, %v8244_v43  ;;  %4547 = vst.msk [vmem:[%s16623_s1 + $0x20e8] sm:$0x3] %vm155_vm2, %v8244_v43 }
 0x1cc   :  { %4595 = vst.msk [vmem:[%s16623_s1 + $0x2228] sm:$0x3] %vm155_vm2, %v8244_v43  ;;  %4643 = vst.msk [vmem:[%s16623_s1 + $0x2268] sm:$0x3] %vm155_vm2, %v8244_v43 }
 0x1cd   :  { %4691 = vst.msk [vmem:[%s16623_s1 + $0x23a8] sm:$0x3] %vm155_vm2, %v8244_v43  ;;  %4739 = vst.msk [vmem:[%s16623_s1 + $0x23e8] sm:$0x3] %vm155_vm2, %v8244_v43 }
 0x1ce   :  { %171 = vst.msk [vmem:[%s16623_s1 + $0x100] sm:$0xff] %vm153_vm1, %v8753_v51  ;;  %2526 = vst.msk [vmem:[%s16623_s1 + $0x140] sm:$0xff] %vm153_vm1, %v8753_v51 }
 0x1cf   :  { %2574 = vst.msk [vmem:[%s16623_s1 + $0x280] sm:$0xff] %vm153_vm1, %v8753_v51  ;;  %2622 = vst.msk [vmem:[%s16623_s1 + $0x2c0] sm:$0xff] %vm153_vm1, %v8753_v51 }
 0x1d0   :  { %2670 = vst.msk [vmem:[%s16623_s1 + $0x400] sm:$0xff] %vm153_vm1, %v8753_v51  ;;  %2718 = vst.msk [vmem:[%s16623_s1 + $0x440] sm:$0xff] %vm153_vm1, %v8753_v51 }
 0x1d1   :  { %2766 = vst.msk [vmem:[%s16623_s1 + $0x580] sm:$0xff] %vm153_vm1, %v8753_v51  ;;  %2814 = vst.msk [vmem:[%s16623_s1 + $0x5c0] sm:$0xff] %vm153_vm1, %v8753_v51 }
 0x1d2   :  { %2862 = vst.msk [vmem:[%s16623_s1 + $0x700] sm:$0xff] %vm153_vm1, %v8753_v51  ;;  %2910 = vst.msk [vmem:[%s16623_s1 + $0x740] sm:$0xff] %vm153_vm1, %v8753_v51 }
 0x1d3   :  { %2958 = vst.msk [vmem:[%s16623_s1 + $0x880] sm:$0xff] %vm153_vm1, %v8753_v51  ;;  %3006 = vst.msk [vmem:[%s16623_s1 + $0x8c0] sm:$0xff] %vm153_vm1, %v8753_v51 }
 0x1d4   :  { %3054 = vst.msk [vmem:[%s16623_s1 + $0xa00] sm:$0xff] %vm153_vm1, %v8753_v51  ;;  %3102 = vst.msk [vmem:[%s16623_s1 + $0xa40] sm:$0xff] %vm153_vm1, %v8753_v51 }
 0x1d5   :  { %3150 = vst.msk [vmem:[%s16623_s1 + $0xb80] sm:$0xff] %vm153_vm1, %v8753_v51  ;;  %3198 = vst.msk [vmem:[%s16623_s1 + $0xbc0] sm:$0xff] %vm153_vm1, %v8753_v51 }
 0x1d6   :  { %3246 = vst.msk [vmem:[%s16623_s1 + $0xd00] sm:$0xff] %vm153_vm1, %v8753_v51  ;;  %3294 = vst.msk [vmem:[%s16623_s1 + $0xd40] sm:$0xff] %vm153_vm1, %v8753_v51 }
 0x1d7   :  { %3342 = vst.msk [vmem:[%s16623_s1 + $0xe80] sm:$0xff] %vm153_vm1, %v8753_v51  ;;  %3390 = vst.msk [vmem:[%s16623_s1 + $0xec0] sm:$0xff] %vm153_vm1, %v8753_v51 }
 0x1d8   :  { %3438 = vst.msk [vmem:[%s16623_s1 + $0x1000] sm:$0xff] %vm153_vm1, %v8753_v51  ;;  %3486 = vst.msk [vmem:[%s16623_s1 + $0x1040] sm:$0xff] %vm153_vm1, %v8753_v51 }
 0x1d9   :  { %3534 = vst.msk [vmem:[%s16623_s1 + $0x1180] sm:$0xff] %vm153_vm1, %v8753_v51  ;;  %3582 = vst.msk [vmem:[%s16623_s1 + $0x11c0] sm:$0xff] %vm153_vm1, %v8753_v51 }
 0x1da   :  { %3630 = vst.msk [vmem:[%s16623_s1 + $0x1300] sm:$0xff] %vm153_vm1, %v8753_v51  ;;  %3678 = vst.msk [vmem:[%s16623_s1 + $0x1340] sm:$0xff] %vm153_vm1, %v8753_v51 }
 0x1db   :  { %3726 = vst.msk [vmem:[%s16623_s1 + $0x1480] sm:$0xff] %vm153_vm1, %v8753_v51  ;;  %3774 = vst.msk [vmem:[%s16623_s1 + $0x14c0] sm:$0xff] %vm153_vm1, %v8753_v51 }
 0x1dc   :  { %3822 = vst.msk [vmem:[%s16623_s1 + $0x1600] sm:$0xff] %vm153_vm1, %v8753_v51  ;;  %3870 = vst.msk [vmem:[%s16623_s1 + $0x1640] sm:$0xff] %vm153_vm1, %v8753_v51 }
 0x1dd   :  { %3918 = vst.msk [vmem:[%s16623_s1 + $0x1780] sm:$0xff] %vm153_vm1, %v8753_v51  ;;  %3966 = vst.msk [vmem:[%s16623_s1 + $0x17c0] sm:$0xff] %vm153_vm1, %v8753_v51 }
 0x1de   :  { %4014 = vst.msk [vmem:[%s16623_s1 + $0x1900] sm:$0xff] %vm153_vm1, %v8753_v51  ;;  %4062 = vst.msk [vmem:[%s16623_s1 + $0x1940] sm:$0xff] %vm153_vm1, %v8753_v51 }
 0x1df   :  { %4110 = vst.msk [vmem:[%s16623_s1 + $0x1a80] sm:$0xff] %vm153_vm1, %v8753_v51  ;;  %4158 = vst.msk [vmem:[%s16623_s1 + $0x1ac0] sm:$0xff] %vm153_vm1, %v8753_v51 }
 0x1e0   :  { %4206 = vst.msk [vmem:[%s16623_s1 + $0x1c00] sm:$0xff] %vm153_vm1, %v8753_v51  ;;  %4254 = vst.msk [vmem:[%s16623_s1 + $0x1c40] sm:$0xff] %vm153_vm1, %v8753_v51 }
 0x1e1   :  { %4302 = vst.msk [vmem:[%s16623_s1 + $0x1d80] sm:$0xff] %vm153_vm1, %v8753_v51  ;;  %4350 = vst.msk [vmem:[%s16623_s1 + $0x1dc0] sm:$0xff] %vm153_vm1, %v8753_v51 }
 0x1e2   :  { %4398 = vst.msk [vmem:[%s16623_s1 + $0x1f00] sm:$0xff] %vm153_vm1, %v8753_v51  ;;  %4446 = vst.msk [vmem:[%s16623_s1 + $0x1f40] sm:$0xff] %vm153_vm1, %v8753_v51 }
 0x1e3   :  { %4494 = vst.msk [vmem:[%s16623_s1 + $0x2080] sm:$0xff] %vm153_vm1, %v8753_v51  ;;  %4542 = vst.msk [vmem:[%s16623_s1 + $0x20c0] sm:$0xff] %vm153_vm1, %v8753_v51 }
 0x1e4   :  { %4590 = vst.msk [vmem:[%s16623_s1 + $0x2200] sm:$0xff] %vm153_vm1, %v8753_v51  ;;  %4638 = vst.msk [vmem:[%s16623_s1 + $0x2240] sm:$0xff] %vm153_vm1, %v8753_v51 }
 0x1e5   :  { %4686 = vst.msk [vmem:[%s16623_s1 + $0x2380] sm:$0xff] %vm153_vm1, %v8753_v51  ;;  %4734 = vst.msk [vmem:[%s16623_s1 + $0x23c0] sm:$0xff] %vm153_vm1, %v8753_v51 }
 0x1e6   :  { %173 = vst.msk [vmem:[%s16623_s1 + $0x110] sm:$0xff] %vm153_vm1, %v8999_v52  ;;  %2528 = vst.msk [vmem:[%s16623_s1 + $0x150] sm:$0xff] %vm153_vm1, %v8999_v52 }
 0x1e7   :  { %2576 = vst.msk [vmem:[%s16623_s1 + $0x290] sm:$0xff] %vm153_vm1, %v8999_v52  ;;  %2624 = vst.msk [vmem:[%s16623_s1 + $0x2d0] sm:$0xff] %vm153_vm1, %v8999_v52 }
 0x1e8   :  { %2672 = vst.msk [vmem:[%s16623_s1 + $0x410] sm:$0xff] %vm153_vm1, %v8999_v52  ;;  %2720 = vst.msk [vmem:[%s16623_s1 + $0x450] sm:$0xff] %vm153_vm1, %v8999_v52 }
 0x1e9   :  { %2768 = vst.msk [vmem:[%s16623_s1 + $0x590] sm:$0xff] %vm153_vm1, %v8999_v52  ;;  %2816 = vst.msk [vmem:[%s16623_s1 + $0x5d0] sm:$0xff] %vm153_vm1, %v8999_v52 }
 0x1ea   :  { %2864 = vst.msk [vmem:[%s16623_s1 + $0x710] sm:$0xff] %vm153_vm1, %v8999_v52  ;;  %2912 = vst.msk [vmem:[%s16623_s1 + $0x750] sm:$0xff] %vm153_vm1, %v8999_v52 }
 0x1eb   :  { %2960 = vst.msk [vmem:[%s16623_s1 + $0x890] sm:$0xff] %vm153_vm1, %v8999_v52  ;;  %3008 = vst.msk [vmem:[%s16623_s1 + $0x8d0] sm:$0xff] %vm153_vm1, %v8999_v52 }
 0x1ec   :  { %3056 = vst.msk [vmem:[%s16623_s1 + $0xa10] sm:$0xff] %vm153_vm1, %v8999_v52  ;;  %3104 = vst.msk [vmem:[%s16623_s1 + $0xa50] sm:$0xff] %vm153_vm1, %v8999_v52 }
 0x1ed   :  { %3152 = vst.msk [vmem:[%s16623_s1 + $0xb90] sm:$0xff] %vm153_vm1, %v8999_v52  ;;  %3200 = vst.msk [vmem:[%s16623_s1 + $0xbd0] sm:$0xff] %vm153_vm1, %v8999_v52 }
 0x1ee   :  { %3248 = vst.msk [vmem:[%s16623_s1 + $0xd10] sm:$0xff] %vm153_vm1, %v8999_v52  ;;  %3296 = vst.msk [vmem:[%s16623_s1 + $0xd50] sm:$0xff] %vm153_vm1, %v8999_v52 }
 0x1ef   :  { %3344 = vst.msk [vmem:[%s16623_s1 + $0xe90] sm:$0xff] %vm153_vm1, %v8999_v52  ;;  %3392 = vst.msk [vmem:[%s16623_s1 + $0xed0] sm:$0xff] %vm153_vm1, %v8999_v52 }
 0x1f0   :  { %3440 = vst.msk [vmem:[%s16623_s1 + $0x1010] sm:$0xff] %vm153_vm1, %v8999_v52  ;;  %3488 = vst.msk [vmem:[%s16623_s1 + $0x1050] sm:$0xff] %vm153_vm1, %v8999_v52 }
 0x1f1   :  { %3536 = vst.msk [vmem:[%s16623_s1 + $0x1190] sm:$0xff] %vm153_vm1, %v8999_v52  ;;  %3584 = vst.msk [vmem:[%s16623_s1 + $0x11d0] sm:$0xff] %vm153_vm1, %v8999_v52 }
 0x1f2   :  { %3632 = vst.msk [vmem:[%s16623_s1 + $0x1310] sm:$0xff] %vm153_vm1, %v8999_v52  ;;  %3680 = vst.msk [vmem:[%s16623_s1 + $0x1350] sm:$0xff] %vm153_vm1, %v8999_v52 }
 0x1f3   :  { %3728 = vst.msk [vmem:[%s16623_s1 + $0x1490] sm:$0xff] %vm153_vm1, %v8999_v52  ;;  %3776 = vst.msk [vmem:[%s16623_s1 + $0x14d0] sm:$0xff] %vm153_vm1, %v8999_v52 }
 0x1f4   :  { %3824 = vst.msk [vmem:[%s16623_s1 + $0x1610] sm:$0xff] %vm153_vm1, %v8999_v52  ;;  %3872 = vst.msk [vmem:[%s16623_s1 + $0x1650] sm:$0xff] %vm153_vm1, %v8999_v52 }
 0x1f5   :  { %3920 = vst.msk [vmem:[%s16623_s1 + $0x1790] sm:$0xff] %vm153_vm1, %v8999_v52  ;;  %3968 = vst.msk [vmem:[%s16623_s1 + $0x17d0] sm:$0xff] %vm153_vm1, %v8999_v52 }
 0x1f6   :  { %4016 = vst.msk [vmem:[%s16623_s1 + $0x1910] sm:$0xff] %vm153_vm1, %v8999_v52  ;;  %4064 = vst.msk [vmem:[%s16623_s1 + $0x1950] sm:$0xff] %vm153_vm1, %v8999_v52 }
 0x1f7   :  { %4112 = vst.msk [vmem:[%s16623_s1 + $0x1a90] sm:$0xff] %vm153_vm1, %v8999_v52  ;;  %4160 = vst.msk [vmem:[%s16623_s1 + $0x1ad0] sm:$0xff] %vm153_vm1, %v8999_v52 }
 0x1f8   :  { %4208 = vst.msk [vmem:[%s16623_s1 + $0x1c10] sm:$0xff] %vm153_vm1, %v8999_v52  ;;  %4256 = vst.msk [vmem:[%s16623_s1 + $0x1c50] sm:$0xff] %vm153_vm1, %v8999_v52 }
 0x1f9   :  { %4304 = vst.msk [vmem:[%s16623_s1 + $0x1d90] sm:$0xff] %vm153_vm1, %v8999_v52  ;;  %4352 = vst.msk [vmem:[%s16623_s1 + $0x1dd0] sm:$0xff] %vm153_vm1, %v8999_v52 }
 0x1fa   :  { %4400 = vst.msk [vmem:[%s16623_s1 + $0x1f10] sm:$0xff] %vm153_vm1, %v8999_v52  ;;  %4448 = vst.msk [vmem:[%s16623_s1 + $0x1f50] sm:$0xff] %vm153_vm1, %v8999_v52 }
 0x1fb   :  { %4496 = vst.msk [vmem:[%s16623_s1 + $0x2090] sm:$0xff] %vm153_vm1, %v8999_v52  ;;  %4544 = vst.msk [vmem:[%s16623_s1 + $0x20d0] sm:$0xff] %vm153_vm1, %v8999_v52 }
 0x1fc   :  { %4592 = vst.msk [vmem:[%s16623_s1 + $0x2210] sm:$0xff] %vm153_vm1, %v8999_v52  ;;  %4640 = vst.msk [vmem:[%s16623_s1 + $0x2250] sm:$0xff] %vm153_vm1, %v8999_v52 }
 0x1fd   :  { %4688 = vst.msk [vmem:[%s16623_s1 + $0x2390] sm:$0xff] %vm153_vm1, %v8999_v52  ;;  %4736 = vst.msk [vmem:[%s16623_s1 + $0x23d0] sm:$0xff] %vm153_vm1, %v8999_v52 }
 0x1fe   :  { %175 = vst.msk [vmem:[%s16623_s1 + $0x120] sm:$0xff] %vm153_vm1, %v9245_v53  ;;  %2530 = vst.msk [vmem:[%s16623_s1 + $0x160] sm:$0xff] %vm153_vm1, %v9245_v53 }
 0x1ff   :  { %2578 = vst.msk [vmem:[%s16623_s1 + $0x2a0] sm:$0xff] %vm153_vm1, %v9245_v53  ;;  %2626 = vst.msk [vmem:[%s16623_s1 + $0x2e0] sm:$0xff] %vm153_vm1, %v9245_v53 }
 0x200   :  { %2674 = vst.msk [vmem:[%s16623_s1 + $0x420] sm:$0xff] %vm153_vm1, %v9245_v53  ;;  %2722 = vst.msk [vmem:[%s16623_s1 + $0x460] sm:$0xff] %vm153_vm1, %v9245_v53 }
 0x201   :  { %2770 = vst.msk [vmem:[%s16623_s1 + $0x5a0] sm:$0xff] %vm153_vm1, %v9245_v53  ;;  %2818 = vst.msk [vmem:[%s16623_s1 + $0x5e0] sm:$0xff] %vm153_vm1, %v9245_v53 }
 0x202   :  { %2866 = vst.msk [vmem:[%s16623_s1 + $0x720] sm:$0xff] %vm153_vm1, %v9245_v53  ;;  %2914 = vst.msk [vmem:[%s16623_s1 + $0x760] sm:$0xff] %vm153_vm1, %v9245_v53 }
 0x203   :  { %2962 = vst.msk [vmem:[%s16623_s1 + $0x8a0] sm:$0xff] %vm153_vm1, %v9245_v53  ;;  %3010 = vst.msk [vmem:[%s16623_s1 + $0x8e0] sm:$0xff] %vm153_vm1, %v9245_v53 }
 0x204   :  { %3058 = vst.msk [vmem:[%s16623_s1 + $0xa20] sm:$0xff] %vm153_vm1, %v9245_v53  ;;  %3106 = vst.msk [vmem:[%s16623_s1 + $0xa60] sm:$0xff] %vm153_vm1, %v9245_v53 }
 0x205   :  { %3154 = vst.msk [vmem:[%s16623_s1 + $0xba0] sm:$0xff] %vm153_vm1, %v9245_v53  ;;  %3202 = vst.msk [vmem:[%s16623_s1 + $0xbe0] sm:$0xff] %vm153_vm1, %v9245_v53 }
 0x206   :  { %3250 = vst.msk [vmem:[%s16623_s1 + $0xd20] sm:$0xff] %vm153_vm1, %v9245_v53  ;;  %3298 = vst.msk [vmem:[%s16623_s1 + $0xd60] sm:$0xff] %vm153_vm1, %v9245_v53 }
 0x207   :  { %3346 = vst.msk [vmem:[%s16623_s1 + $0xea0] sm:$0xff] %vm153_vm1, %v9245_v53  ;;  %3394 = vst.msk [vmem:[%s16623_s1 + $0xee0] sm:$0xff] %vm153_vm1, %v9245_v53 }
 0x208   :  { %3442 = vst.msk [vmem:[%s16623_s1 + $0x1020] sm:$0xff] %vm153_vm1, %v9245_v53  ;;  %3490 = vst.msk [vmem:[%s16623_s1 + $0x1060] sm:$0xff] %vm153_vm1, %v9245_v53 }
 0x209   :  { %3538 = vst.msk [vmem:[%s16623_s1 + $0x11a0] sm:$0xff] %vm153_vm1, %v9245_v53  ;;  %3586 = vst.msk [vmem:[%s16623_s1 + $0x11e0] sm:$0xff] %vm153_vm1, %v9245_v53 }
 0x20a   :  { %3634 = vst.msk [vmem:[%s16623_s1 + $0x1320] sm:$0xff] %vm153_vm1, %v9245_v53  ;;  %3682 = vst.msk [vmem:[%s16623_s1 + $0x1360] sm:$0xff] %vm153_vm1, %v9245_v53 }
 0x20b   :  { %3730 = vst.msk [vmem:[%s16623_s1 + $0x14a0] sm:$0xff] %vm153_vm1, %v9245_v53  ;;  %3778 = vst.msk [vmem:[%s16623_s1 + $0x14e0] sm:$0xff] %vm153_vm1, %v9245_v53 }
 0x20c   :  { %3826 = vst.msk [vmem:[%s16623_s1 + $0x1620] sm:$0xff] %vm153_vm1, %v9245_v53  ;;  %3874 = vst.msk [vmem:[%s16623_s1 + $0x1660] sm:$0xff] %vm153_vm1, %v9245_v53 }
 0x20d   :  { %3922 = vst.msk [vmem:[%s16623_s1 + $0x17a0] sm:$0xff] %vm153_vm1, %v9245_v53  ;;  %3970 = vst.msk [vmem:[%s16623_s1 + $0x17e0] sm:$0xff] %vm153_vm1, %v9245_v53 }
 0x20e   :  { %4018 = vst.msk [vmem:[%s16623_s1 + $0x1920] sm:$0xff] %vm153_vm1, %v9245_v53  ;;  %4066 = vst.msk [vmem:[%s16623_s1 + $0x1960] sm:$0xff] %vm153_vm1, %v9245_v53 }
 0x20f   :  { %4114 = vst.msk [vmem:[%s16623_s1 + $0x1aa0] sm:$0xff] %vm153_vm1, %v9245_v53  ;;  %4162 = vst.msk [vmem:[%s16623_s1 + $0x1ae0] sm:$0xff] %vm153_vm1, %v9245_v53 }
 0x210   :  { %4210 = vst.msk [vmem:[%s16623_s1 + $0x1c20] sm:$0xff] %vm153_vm1, %v9245_v53  ;;  %4258 = vst.msk [vmem:[%s16623_s1 + $0x1c60] sm:$0xff] %vm153_vm1, %v9245_v53 }
 0x211   :  { %4306 = vst.msk [vmem:[%s16623_s1 + $0x1da0] sm:$0xff] %vm153_vm1, %v9245_v53  ;;  %4354 = vst.msk [vmem:[%s16623_s1 + $0x1de0] sm:$0xff] %vm153_vm1, %v9245_v53 }
 0x212   :  { %4402 = vst.msk [vmem:[%s16623_s1 + $0x1f20] sm:$0xff] %vm153_vm1, %v9245_v53  ;;  %4450 = vst.msk [vmem:[%s16623_s1 + $0x1f60] sm:$0xff] %vm153_vm1, %v9245_v53 }
 0x213   :  { %4498 = vst.msk [vmem:[%s16623_s1 + $0x20a0] sm:$0xff] %vm153_vm1, %v9245_v53  ;;  %4546 = vst.msk [vmem:[%s16623_s1 + $0x20e0] sm:$0xff] %vm153_vm1, %v9245_v53 }
 0x214   :  { %4594 = vst.msk [vmem:[%s16623_s1 + $0x2220] sm:$0xff] %vm153_vm1, %v9245_v53  ;;  %4642 = vst.msk [vmem:[%s16623_s1 + $0x2260] sm:$0xff] %vm153_vm1, %v9245_v53 }
 0x215   :  { %4690 = vst.msk [vmem:[%s16623_s1 + $0x23a0] sm:$0xff] %vm153_vm1, %v9245_v53  ;;  %4738 = vst.msk [vmem:[%s16623_s1 + $0x23e0] sm:$0xff] %vm153_vm1, %v9245_v53 }
 0x216   :  { %178 = vst.msk [vmem:[%s16623_s1 + $0x138] sm:$0x3] %vm155_vm2, %v8500_v47  ;;  %2533 = vst.msk [vmem:[%s16623_s1 + $0x178] sm:$0x3] %vm155_vm2, %v8500_v47 }
 0x217   :  { %2581 = vst.msk [vmem:[%s16623_s1 + $0x2b8] sm:$0x3] %vm155_vm2, %v8500_v47  ;;  %2629 = vst.msk [vmem:[%s16623_s1 + $0x2f8] sm:$0x3] %vm155_vm2, %v8500_v47 }
 0x218   :  { %2677 = vst.msk [vmem:[%s16623_s1 + $0x438] sm:$0x3] %vm155_vm2, %v8500_v47  ;;  %2725 = vst.msk [vmem:[%s16623_s1 + $0x478] sm:$0x3] %vm155_vm2, %v8500_v47 }
 0x219   :  { %2773 = vst.msk [vmem:[%s16623_s1 + $0x5b8] sm:$0x3] %vm155_vm2, %v8500_v47  ;;  %2821 = vst.msk [vmem:[%s16623_s1 + $0x5f8] sm:$0x3] %vm155_vm2, %v8500_v47 }
 0x21a   :  { %2869 = vst.msk [vmem:[%s16623_s1 + $0x738] sm:$0x3] %vm155_vm2, %v8500_v47  ;;  %2917 = vst.msk [vmem:[%s16623_s1 + $0x778] sm:$0x3] %vm155_vm2, %v8500_v47 }
 0x21b   :  { %2965 = vst.msk [vmem:[%s16623_s1 + $0x8b8] sm:$0x3] %vm155_vm2, %v8500_v47  ;;  %3013 = vst.msk [vmem:[%s16623_s1 + $0x8f8] sm:$0x3] %vm155_vm2, %v8500_v47 }
 0x21c   :  { %3061 = vst.msk [vmem:[%s16623_s1 + $0xa38] sm:$0x3] %vm155_vm2, %v8500_v47  ;;  %3109 = vst.msk [vmem:[%s16623_s1 + $0xa78] sm:$0x3] %vm155_vm2, %v8500_v47 }
 0x21d   :  { %3157 = vst.msk [vmem:[%s16623_s1 + $0xbb8] sm:$0x3] %vm155_vm2, %v8500_v47  ;;  %3205 = vst.msk [vmem:[%s16623_s1 + $0xbf8] sm:$0x3] %vm155_vm2, %v8500_v47 }
 0x21e   :  { %3253 = vst.msk [vmem:[%s16623_s1 + $0xd38] sm:$0x3] %vm155_vm2, %v8500_v47  ;;  %3301 = vst.msk [vmem:[%s16623_s1 + $0xd78] sm:$0x3] %vm155_vm2, %v8500_v47 }
 0x21f   :  { %3349 = vst.msk [vmem:[%s16623_s1 + $0xeb8] sm:$0x3] %vm155_vm2, %v8500_v47  ;;  %3397 = vst.msk [vmem:[%s16623_s1 + $0xef8] sm:$0x3] %vm155_vm2, %v8500_v47 }
 0x220   :  { %3445 = vst.msk [vmem:[%s16623_s1 + $0x1038] sm:$0x3] %vm155_vm2, %v8500_v47  ;;  %3493 = vst.msk [vmem:[%s16623_s1 + $0x1078] sm:$0x3] %vm155_vm2, %v8500_v47 }
 0x221   :  { %3541 = vst.msk [vmem:[%s16623_s1 + $0x11b8] sm:$0x3] %vm155_vm2, %v8500_v47  ;;  %3589 = vst.msk [vmem:[%s16623_s1 + $0x11f8] sm:$0x3] %vm155_vm2, %v8500_v47 }
 0x222   :  { %3637 = vst.msk [vmem:[%s16623_s1 + $0x1338] sm:$0x3] %vm155_vm2, %v8500_v47  ;;  %3685 = vst.msk [vmem:[%s16623_s1 + $0x1378] sm:$0x3] %vm155_vm2, %v8500_v47 }
 0x223   :  { %3733 = vst.msk [vmem:[%s16623_s1 + $0x14b8] sm:$0x3] %vm155_vm2, %v8500_v47  ;;  %3781 = vst.msk [vmem:[%s16623_s1 + $0x14f8] sm:$0x3] %vm155_vm2, %v8500_v47 }
 0x224   :  { %3829 = vst.msk [vmem:[%s16623_s1 + $0x1638] sm:$0x3] %vm155_vm2, %v8500_v47  ;;  %3877 = vst.msk [vmem:[%s16623_s1 + $0x1678] sm:$0x3] %vm155_vm2, %v8500_v47 }
 0x225   :  { %3925 = vst.msk [vmem:[%s16623_s1 + $0x17b8] sm:$0x3] %vm155_vm2, %v8500_v47  ;;  %3973 = vst.msk [vmem:[%s16623_s1 + $0x17f8] sm:$0x3] %vm155_vm2, %v8500_v47 }
 0x226   :  { %4021 = vst.msk [vmem:[%s16623_s1 + $0x1938] sm:$0x3] %vm155_vm2, %v8500_v47  ;;  %4069 = vst.msk [vmem:[%s16623_s1 + $0x1978] sm:$0x3] %vm155_vm2, %v8500_v47 }
 0x227   :  { %4117 = vst.msk [vmem:[%s16623_s1 + $0x1ab8] sm:$0x3] %vm155_vm2, %v8500_v47  ;;  %4165 = vst.msk [vmem:[%s16623_s1 + $0x1af8] sm:$0x3] %vm155_vm2, %v8500_v47 }
 0x228   :  { %4213 = vst.msk [vmem:[%s16623_s1 + $0x1c38] sm:$0x3] %vm155_vm2, %v8500_v47  ;;  %4261 = vst.msk [vmem:[%s16623_s1 + $0x1c78] sm:$0x3] %vm155_vm2, %v8500_v47 }
 0x229   :  { %4309 = vst.msk [vmem:[%s16623_s1 + $0x1db8] sm:$0x3] %vm155_vm2, %v8500_v47  ;;  %4357 = vst.msk [vmem:[%s16623_s1 + $0x1df8] sm:$0x3] %vm155_vm2, %v8500_v47 }
 0x22a   :  { %4405 = vst.msk [vmem:[%s16623_s1 + $0x1f38] sm:$0x3] %vm155_vm2, %v8500_v47  ;;  %4453 = vst.msk [vmem:[%s16623_s1 + $0x1f78] sm:$0x3] %vm155_vm2, %v8500_v47 }
 0x22b   :  { %4501 = vst.msk [vmem:[%s16623_s1 + $0x20b8] sm:$0x3] %vm155_vm2, %v8500_v47  ;;  %4549 = vst.msk [vmem:[%s16623_s1 + $0x20f8] sm:$0x3] %vm155_vm2, %v8500_v47 }
 0x22c   :  { %4597 = vst.msk [vmem:[%s16623_s1 + $0x2238] sm:$0x3] %vm155_vm2, %v8500_v47  ;;  %4645 = vst.msk [vmem:[%s16623_s1 + $0x2278] sm:$0x3] %vm155_vm2, %v8500_v47 }
 0x22d   :  { %4693 = vst.msk [vmem:[%s16623_s1 + $0x23b8] sm:$0x3] %vm155_vm2, %v8500_v47  ;;  %4741 = vst.msk [vmem:[%s16623_s1 + $0x23f8] sm:$0x3] %vm155_vm2, %v8500_v47 }
 0x22e   :  { %177 = vst.msk [vmem:[%s16623_s1 + $0x130] sm:$0xff] %vm153_vm1, %v10225_v57  ;;  %2532 = vst.msk [vmem:[%s16623_s1 + $0x170] sm:$0xff] %vm153_vm1, %v10225_v57 }
 0x22f   :  { %2580 = vst.msk [vmem:[%s16623_s1 + $0x2b0] sm:$0xff] %vm153_vm1, %v10225_v57  ;;  %2628 = vst.msk [vmem:[%s16623_s1 + $0x2f0] sm:$0xff] %vm153_vm1, %v10225_v57 }
 0x230   :  { %2676 = vst.msk [vmem:[%s16623_s1 + $0x430] sm:$0xff] %vm153_vm1, %v10225_v57  ;;  %2724 = vst.msk [vmem:[%s16623_s1 + $0x470] sm:$0xff] %vm153_vm1, %v10225_v57 }
 0x231   :  { %2772 = vst.msk [vmem:[%s16623_s1 + $0x5b0] sm:$0xff] %vm153_vm1, %v10225_v57  ;;  %2820 = vst.msk [vmem:[%s16623_s1 + $0x5f0] sm:$0xff] %vm153_vm1, %v10225_v57 }
 0x232   :  { %2868 = vst.msk [vmem:[%s16623_s1 + $0x730] sm:$0xff] %vm153_vm1, %v10225_v57  ;;  %2916 = vst.msk [vmem:[%s16623_s1 + $0x770] sm:$0xff] %vm153_vm1, %v10225_v57 }
 0x233   :  { %2964 = vst.msk [vmem:[%s16623_s1 + $0x8b0] sm:$0xff] %vm153_vm1, %v10225_v57  ;;  %3012 = vst.msk [vmem:[%s16623_s1 + $0x8f0] sm:$0xff] %vm153_vm1, %v10225_v57 }
 0x234   :  { %3060 = vst.msk [vmem:[%s16623_s1 + $0xa30] sm:$0xff] %vm153_vm1, %v10225_v57  ;;  %3108 = vst.msk [vmem:[%s16623_s1 + $0xa70] sm:$0xff] %vm153_vm1, %v10225_v57 }
 0x235   :  { %3156 = vst.msk [vmem:[%s16623_s1 + $0xbb0] sm:$0xff] %vm153_vm1, %v10225_v57  ;;  %3204 = vst.msk [vmem:[%s16623_s1 + $0xbf0] sm:$0xff] %vm153_vm1, %v10225_v57 }
 0x236   :  { %3252 = vst.msk [vmem:[%s16623_s1 + $0xd30] sm:$0xff] %vm153_vm1, %v10225_v57  ;;  %3300 = vst.msk [vmem:[%s16623_s1 + $0xd70] sm:$0xff] %vm153_vm1, %v10225_v57 }
 0x237   :  { %3348 = vst.msk [vmem:[%s16623_s1 + $0xeb0] sm:$0xff] %vm153_vm1, %v10225_v57  ;;  %3396 = vst.msk [vmem:[%s16623_s1 + $0xef0] sm:$0xff] %vm153_vm1, %v10225_v57 }
 0x238   :  { %3444 = vst.msk [vmem:[%s16623_s1 + $0x1030] sm:$0xff] %vm153_vm1, %v10225_v57  ;;  %3492 = vst.msk [vmem:[%s16623_s1 + $0x1070] sm:$0xff] %vm153_vm1, %v10225_v57 }
 0x239   :  { %3540 = vst.msk [vmem:[%s16623_s1 + $0x11b0] sm:$0xff] %vm153_vm1, %v10225_v57  ;;  %3588 = vst.msk [vmem:[%s16623_s1 + $0x11f0] sm:$0xff] %vm153_vm1, %v10225_v57 }
 0x23a   :  { %3636 = vst.msk [vmem:[%s16623_s1 + $0x1330] sm:$0xff] %vm153_vm1, %v10225_v57  ;;  %3684 = vst.msk [vmem:[%s16623_s1 + $0x1370] sm:$0xff] %vm153_vm1, %v10225_v57 }
 0x23b   :  { %3732 = vst.msk [vmem:[%s16623_s1 + $0x14b0] sm:$0xff] %vm153_vm1, %v10225_v57  ;;  %3780 = vst.msk [vmem:[%s16623_s1 + $0x14f0] sm:$0xff] %vm153_vm1, %v10225_v57 }
 0x23c   :  { %3828 = vst.msk [vmem:[%s16623_s1 + $0x1630] sm:$0xff] %vm153_vm1, %v10225_v57  ;;  %3876 = vst.msk [vmem:[%s16623_s1 + $0x1670] sm:$0xff] %vm153_vm1, %v10225_v57 }
 0x23d   :  { %3924 = vst.msk [vmem:[%s16623_s1 + $0x17b0] sm:$0xff] %vm153_vm1, %v10225_v57  ;;  %3972 = vst.msk [vmem:[%s16623_s1 + $0x17f0] sm:$0xff] %vm153_vm1, %v10225_v57 }
 0x23e   :  { %4020 = vst.msk [vmem:[%s16623_s1 + $0x1930] sm:$0xff] %vm153_vm1, %v10225_v57  ;;  %4068 = vst.msk [vmem:[%s16623_s1 + $0x1970] sm:$0xff] %vm153_vm1, %v10225_v57 }
 0x23f   :  { %4116 = vst.msk [vmem:[%s16623_s1 + $0x1ab0] sm:$0xff] %vm153_vm1, %v10225_v57  ;;  %4164 = vst.msk [vmem:[%s16623_s1 + $0x1af0] sm:$0xff] %vm153_vm1, %v10225_v57 }
 0x240   :  { %4212 = vst.msk [vmem:[%s16623_s1 + $0x1c30] sm:$0xff] %vm153_vm1, %v10225_v57  ;;  %4260 = vst.msk [vmem:[%s16623_s1 + $0x1c70] sm:$0xff] %vm153_vm1, %v10225_v57 }
 0x241   :  { %4308 = vst.msk [vmem:[%s16623_s1 + $0x1db0] sm:$0xff] %vm153_vm1, %v10225_v57  ;;  %4356 = vst.msk [vmem:[%s16623_s1 + $0x1df0] sm:$0xff] %vm153_vm1, %v10225_v57 }
 0x242   :  { %4404 = vst.msk [vmem:[%s16623_s1 + $0x1f30] sm:$0xff] %vm153_vm1, %v10225_v57  ;;  %4452 = vst.msk [vmem:[%s16623_s1 + $0x1f70] sm:$0xff] %vm153_vm1, %v10225_v57 }
 0x243   :  { %4500 = vst.msk [vmem:[%s16623_s1 + $0x20b0] sm:$0xff] %vm153_vm1, %v10225_v57  ;;  %4548 = vst.msk [vmem:[%s16623_s1 + $0x20f0] sm:$0xff] %vm153_vm1, %v10225_v57 }
 0x244   :  { %4596 = vst.msk [vmem:[%s16623_s1 + $0x2230] sm:$0xff] %vm153_vm1, %v10225_v57  ;;  %4644 = vst.msk [vmem:[%s16623_s1 + $0x2270] sm:$0xff] %vm153_vm1, %v10225_v57 }
 0x245   :  { %4692 = vst.msk [vmem:[%s16623_s1 + $0x23b0] sm:$0xff] %vm153_vm1, %v10225_v57  ;;  %4740 = vst.msk [vmem:[%s16623_s1 + $0x23f0] sm:$0xff] %vm153_vm1, %v10225_v57 }
 0x246   :  { %180 = vst.msk [vmem:[%s16623_s1 + $0x2408] sm:$0x3] %vm155_vm2, %v9489_v54  ;;  %2535 = vst.msk [vmem:[%s16623_s1 + $0x2448] sm:$0x3] %vm155_vm2, %v9489_v54 }
 0x247   :  { %2583 = vst.msk [vmem:[%s16623_s1 + $0x2588] sm:$0x3] %vm155_vm2, %v9489_v54  ;;  %2631 = vst.msk [vmem:[%s16623_s1 + $0x25c8] sm:$0x3] %vm155_vm2, %v9489_v54 }
 0x248   :  { %2679 = vst.msk [vmem:[%s16623_s1 + $0x2708] sm:$0x3] %vm155_vm2, %v9489_v54  ;;  %2727 = vst.msk [vmem:[%s16623_s1 + $0x2748] sm:$0x3] %vm155_vm2, %v9489_v54 }
 0x249   :  { %2775 = vst.msk [vmem:[%s16623_s1 + $0x2888] sm:$0x3] %vm155_vm2, %v9489_v54  ;;  %2823 = vst.msk [vmem:[%s16623_s1 + $0x28c8] sm:$0x3] %vm155_vm2, %v9489_v54 }
 0x24a   :  { %2871 = vst.msk [vmem:[%s16623_s1 + $0x2a08] sm:$0x3] %vm155_vm2, %v9489_v54  ;;  %2919 = vst.msk [vmem:[%s16623_s1 + $0x2a48] sm:$0x3] %vm155_vm2, %v9489_v54 }
 0x24b   :  { %2967 = vst.msk [vmem:[%s16623_s1 + $0x2b88] sm:$0x3] %vm155_vm2, %v9489_v54  ;;  %3015 = vst.msk [vmem:[%s16623_s1 + $0x2bc8] sm:$0x3] %vm155_vm2, %v9489_v54 }
 0x24c   :  { %3063 = vst.msk [vmem:[%s16623_s1 + $0x2d08] sm:$0x3] %vm155_vm2, %v9489_v54  ;;  %3111 = vst.msk [vmem:[%s16623_s1 + $0x2d48] sm:$0x3] %vm155_vm2, %v9489_v54 }
 0x24d   :  { %3159 = vst.msk [vmem:[%s16623_s1 + $0x2e88] sm:$0x3] %vm155_vm2, %v9489_v54  ;;  %3207 = vst.msk [vmem:[%s16623_s1 + $0x2ec8] sm:$0x3] %vm155_vm2, %v9489_v54 }
 0x24e   :  { %3255 = vst.msk [vmem:[%s16623_s1 + $0x3008] sm:$0x3] %vm155_vm2, %v9489_v54  ;;  %3303 = vst.msk [vmem:[%s16623_s1 + $0x3048] sm:$0x3] %vm155_vm2, %v9489_v54 }
 0x24f   :  { %3351 = vst.msk [vmem:[%s16623_s1 + $0x3188] sm:$0x3] %vm155_vm2, %v9489_v54  ;;  %3399 = vst.msk [vmem:[%s16623_s1 + $0x31c8] sm:$0x3] %vm155_vm2, %v9489_v54 }
 0x250   :  { %3447 = vst.msk [vmem:[%s16623_s1 + $0x3308] sm:$0x3] %vm155_vm2, %v9489_v54  ;;  %3495 = vst.msk [vmem:[%s16623_s1 + $0x3348] sm:$0x3] %vm155_vm2, %v9489_v54 }
 0x251   :  { %3543 = vst.msk [vmem:[%s16623_s1 + $0x3488] sm:$0x3] %vm155_vm2, %v9489_v54  ;;  %3591 = vst.msk [vmem:[%s16623_s1 + $0x34c8] sm:$0x3] %vm155_vm2, %v9489_v54 }
 0x252   :  { %3639 = vst.msk [vmem:[%s16623_s1 + $0x3608] sm:$0x3] %vm155_vm2, %v9489_v54  ;;  %3687 = vst.msk [vmem:[%s16623_s1 + $0x3648] sm:$0x3] %vm155_vm2, %v9489_v54 }
 0x253   :  { %3735 = vst.msk [vmem:[%s16623_s1 + $0x3788] sm:$0x3] %vm155_vm2, %v9489_v54  ;;  %3783 = vst.msk [vmem:[%s16623_s1 + $0x37c8] sm:$0x3] %vm155_vm2, %v9489_v54 }
 0x254   :  { %3831 = vst.msk [vmem:[%s16623_s1 + $0x3908] sm:$0x3] %vm155_vm2, %v9489_v54  ;;  %3879 = vst.msk [vmem:[%s16623_s1 + $0x3948] sm:$0x3] %vm155_vm2, %v9489_v54 }
 0x255   :  { %3927 = vst.msk [vmem:[%s16623_s1 + $0x3a88] sm:$0x3] %vm155_vm2, %v9489_v54  ;;  %3975 = vst.msk [vmem:[%s16623_s1 + $0x3ac8] sm:$0x3] %vm155_vm2, %v9489_v54 }
 0x256   :  { %4023 = vst.msk [vmem:[%s16623_s1 + $0x3c08] sm:$0x3] %vm155_vm2, %v9489_v54  ;;  %4071 = vst.msk [vmem:[%s16623_s1 + $0x3c48] sm:$0x3] %vm155_vm2, %v9489_v54 }
 0x257   :  { %4119 = vst.msk [vmem:[%s16623_s1 + $0x3d88] sm:$0x3] %vm155_vm2, %v9489_v54  ;;  %4167 = vst.msk [vmem:[%s16623_s1 + $0x3dc8] sm:$0x3] %vm155_vm2, %v9489_v54 }
 0x258   :  { %4215 = vst.msk [vmem:[%s16623_s1 + $0x3f08] sm:$0x3] %vm155_vm2, %v9489_v54  ;;  %4263 = vst.msk [vmem:[%s16623_s1 + $0x3f48] sm:$0x3] %vm155_vm2, %v9489_v54 }
 0x259   :  { %4311 = vst.msk [vmem:[%s16623_s1 + $0x4088] sm:$0x3] %vm155_vm2, %v9489_v54  ;;  %4359 = vst.msk [vmem:[%s16623_s1 + $0x40c8] sm:$0x3] %vm155_vm2, %v9489_v54 }
 0x25a   :  { %4407 = vst.msk [vmem:[%s16623_s1 + $0x4208] sm:$0x3] %vm155_vm2, %v9489_v54  ;;  %4455 = vst.msk [vmem:[%s16623_s1 + $0x4248] sm:$0x3] %vm155_vm2, %v9489_v54 }
 0x25b   :  { %4503 = vst.msk [vmem:[%s16623_s1 + $0x4388] sm:$0x3] %vm155_vm2, %v9489_v54  ;;  %4551 = vst.msk [vmem:[%s16623_s1 + $0x43c8] sm:$0x3] %vm155_vm2, %v9489_v54 }
 0x25c   :  { %4599 = vst.msk [vmem:[%s16623_s1 + $0x4508] sm:$0x3] %vm155_vm2, %v9489_v54  ;;  %4647 = vst.msk [vmem:[%s16623_s1 + $0x4548] sm:$0x3] %vm155_vm2, %v9489_v54 }
 0x25d   :  { %4695 = vst.msk [vmem:[%s16623_s1 + $0x4688] sm:$0x3] %vm155_vm2, %v9489_v54  ;;  %4743 = vst.msk [vmem:[%s16623_s1 + $0x46c8] sm:$0x3] %vm155_vm2, %v9489_v54 }
 0x25e   :  { %179 = vst.msk [vmem:[%s16623_s1 + $0x2400] sm:$0xff] %vm153_vm1, %v10725_v62  ;;  %2534 = vst.msk [vmem:[%s16623_s1 + $0x2440] sm:$0xff] %vm153_vm1, %v10725_v62 }
 0x25f   :  { %2582 = vst.msk [vmem:[%s16623_s1 + $0x2580] sm:$0xff] %vm153_vm1, %v10725_v62  ;;  %2630 = vst.msk [vmem:[%s16623_s1 + $0x25c0] sm:$0xff] %vm153_vm1, %v10725_v62 }
 0x260   :  { %2678 = vst.msk [vmem:[%s16623_s1 + $0x2700] sm:$0xff] %vm153_vm1, %v10725_v62  ;;  %2726 = vst.msk [vmem:[%s16623_s1 + $0x2740] sm:$0xff] %vm153_vm1, %v10725_v62 }
 0x261   :  { %2774 = vst.msk [vmem:[%s16623_s1 + $0x2880] sm:$0xff] %vm153_vm1, %v10725_v62  ;;  %2822 = vst.msk [vmem:[%s16623_s1 + $0x28c0] sm:$0xff] %vm153_vm1, %v10725_v62 }
 0x262   :  { %2870 = vst.msk [vmem:[%s16623_s1 + $0x2a00] sm:$0xff] %vm153_vm1, %v10725_v62  ;;  %2918 = vst.msk [vmem:[%s16623_s1 + $0x2a40] sm:$0xff] %vm153_vm1, %v10725_v62 }
 0x263   :  { %2966 = vst.msk [vmem:[%s16623_s1 + $0x2b80] sm:$0xff] %vm153_vm1, %v10725_v62  ;;  %3014 = vst.msk [vmem:[%s16623_s1 + $0x2bc0] sm:$0xff] %vm153_vm1, %v10725_v62 }
 0x264   :  { %3062 = vst.msk [vmem:[%s16623_s1 + $0x2d00] sm:$0xff] %vm153_vm1, %v10725_v62  ;;  %3110 = vst.msk [vmem:[%s16623_s1 + $0x2d40] sm:$0xff] %vm153_vm1, %v10725_v62 }
 0x265   :  { %3158 = vst.msk [vmem:[%s16623_s1 + $0x2e80] sm:$0xff] %vm153_vm1, %v10725_v62  ;;  %3206 = vst.msk [vmem:[%s16623_s1 + $0x2ec0] sm:$0xff] %vm153_vm1, %v10725_v62 }
 0x266   :  { %3254 = vst.msk [vmem:[%s16623_s1 + $0x3000] sm:$0xff] %vm153_vm1, %v10725_v62  ;;  %3302 = vst.msk [vmem:[%s16623_s1 + $0x3040] sm:$0xff] %vm153_vm1, %v10725_v62 }
 0x267   :  { %3350 = vst.msk [vmem:[%s16623_s1 + $0x3180] sm:$0xff] %vm153_vm1, %v10725_v62  ;;  %3398 = vst.msk [vmem:[%s16623_s1 + $0x31c0] sm:$0xff] %vm153_vm1, %v10725_v62 }
 0x268   :  { %3446 = vst.msk [vmem:[%s16623_s1 + $0x3300] sm:$0xff] %vm153_vm1, %v10725_v62  ;;  %3494 = vst.msk [vmem:[%s16623_s1 + $0x3340] sm:$0xff] %vm153_vm1, %v10725_v62 }
 0x269   :  { %3542 = vst.msk [vmem:[%s16623_s1 + $0x3480] sm:$0xff] %vm153_vm1, %v10725_v62  ;;  %3590 = vst.msk [vmem:[%s16623_s1 + $0x34c0] sm:$0xff] %vm153_vm1, %v10725_v62 }
 0x26a   :  { %3638 = vst.msk [vmem:[%s16623_s1 + $0x3600] sm:$0xff] %vm153_vm1, %v10725_v62  ;;  %3686 = vst.msk [vmem:[%s16623_s1 + $0x3640] sm:$0xff] %vm153_vm1, %v10725_v62 }
 0x26b   :  { %3734 = vst.msk [vmem:[%s16623_s1 + $0x3780] sm:$0xff] %vm153_vm1, %v10725_v62  ;;  %3782 = vst.msk [vmem:[%s16623_s1 + $0x37c0] sm:$0xff] %vm153_vm1, %v10725_v62 }
 0x26c   :  { %3830 = vst.msk [vmem:[%s16623_s1 + $0x3900] sm:$0xff] %vm153_vm1, %v10725_v62  ;;  %3878 = vst.msk [vmem:[%s16623_s1 + $0x3940] sm:$0xff] %vm153_vm1, %v10725_v62 }
 0x26d   :  { %3926 = vst.msk [vmem:[%s16623_s1 + $0x3a80] sm:$0xff] %vm153_vm1, %v10725_v62  ;;  %3974 = vst.msk [vmem:[%s16623_s1 + $0x3ac0] sm:$0xff] %vm153_vm1, %v10725_v62 }
 0x26e   :  { %4022 = vst.msk [vmem:[%s16623_s1 + $0x3c00] sm:$0xff] %vm153_vm1, %v10725_v62  ;;  %4070 = vst.msk [vmem:[%s16623_s1 + $0x3c40] sm:$0xff] %vm153_vm1, %v10725_v62 }
 0x26f   :  { %4118 = vst.msk [vmem:[%s16623_s1 + $0x3d80] sm:$0xff] %vm153_vm1, %v10725_v62  ;;  %4166 = vst.msk [vmem:[%s16623_s1 + $0x3dc0] sm:$0xff] %vm153_vm1, %v10725_v62 }
 0x270   :  { %4214 = vst.msk [vmem:[%s16623_s1 + $0x3f00] sm:$0xff] %vm153_vm1, %v10725_v62  ;;  %4262 = vst.msk [vmem:[%s16623_s1 + $0x3f40] sm:$0xff] %vm153_vm1, %v10725_v62 }
 0x271   :  { %4310 = vst.msk [vmem:[%s16623_s1 + $0x4080] sm:$0xff] %vm153_vm1, %v10725_v62  ;;  %4358 = vst.msk [vmem:[%s16623_s1 + $0x40c0] sm:$0xff] %vm153_vm1, %v10725_v62 }
 0x272   :  { %4406 = vst.msk [vmem:[%s16623_s1 + $0x4200] sm:$0xff] %vm153_vm1, %v10725_v62  ;;  %4454 = vst.msk [vmem:[%s16623_s1 + $0x4240] sm:$0xff] %vm153_vm1, %v10725_v62 }
 0x273   :  { %4502 = vst.msk [vmem:[%s16623_s1 + $0x4380] sm:$0xff] %vm153_vm1, %v10725_v62  ;;  %4550 = vst.msk [vmem:[%s16623_s1 + $0x43c0] sm:$0xff] %vm153_vm1, %v10725_v62 }
 0x274   :  { %4598 = vst.msk [vmem:[%s16623_s1 + $0x4500] sm:$0xff] %vm153_vm1, %v10725_v62  ;;  %4646 = vst.msk [vmem:[%s16623_s1 + $0x4540] sm:$0xff] %vm153_vm1, %v10725_v62 }
 0x275   :  { %4694 = vst.msk [vmem:[%s16623_s1 + $0x4680] sm:$0xff] %vm153_vm1, %v10725_v62  ;;  %4742 = vst.msk [vmem:[%s16623_s1 + $0x46c0] sm:$0xff] %vm153_vm1, %v10725_v62 }
 0x276   :  { %182 = vst.msk [vmem:[%s16623_s1 + $0x2418] sm:$0x3] %vm155_vm2, %v10469_v58  ;;  %2537 = vst.msk [vmem:[%s16623_s1 + $0x2458] sm:$0x3] %vm155_vm2, %v10469_v58 }
 0x277   :  { %2585 = vst.msk [vmem:[%s16623_s1 + $0x2598] sm:$0x3] %vm155_vm2, %v10469_v58  ;;  %2633 = vst.msk [vmem:[%s16623_s1 + $0x25d8] sm:$0x3] %vm155_vm2, %v10469_v58 }
 0x278   :  { %2681 = vst.msk [vmem:[%s16623_s1 + $0x2718] sm:$0x3] %vm155_vm2, %v10469_v58  ;;  %2729 = vst.msk [vmem:[%s16623_s1 + $0x2758] sm:$0x3] %vm155_vm2, %v10469_v58 }
 0x279   :  { %2777 = vst.msk [vmem:[%s16623_s1 + $0x2898] sm:$0x3] %vm155_vm2, %v10469_v58  ;;  %2825 = vst.msk [vmem:[%s16623_s1 + $0x28d8] sm:$0x3] %vm155_vm2, %v10469_v58 }
 0x27a   :  { %2873 = vst.msk [vmem:[%s16623_s1 + $0x2a18] sm:$0x3] %vm155_vm2, %v10469_v58  ;;  %2921 = vst.msk [vmem:[%s16623_s1 + $0x2a58] sm:$0x3] %vm155_vm2, %v10469_v58 }
 0x27b   :  { %2969 = vst.msk [vmem:[%s16623_s1 + $0x2b98] sm:$0x3] %vm155_vm2, %v10469_v58  ;;  %3017 = vst.msk [vmem:[%s16623_s1 + $0x2bd8] sm:$0x3] %vm155_vm2, %v10469_v58 }
 0x27c   :  { %3065 = vst.msk [vmem:[%s16623_s1 + $0x2d18] sm:$0x3] %vm155_vm2, %v10469_v58  ;;  %3113 = vst.msk [vmem:[%s16623_s1 + $0x2d58] sm:$0x3] %vm155_vm2, %v10469_v58 }
 0x27d   :  { %3161 = vst.msk [vmem:[%s16623_s1 + $0x2e98] sm:$0x3] %vm155_vm2, %v10469_v58  ;;  %3209 = vst.msk [vmem:[%s16623_s1 + $0x2ed8] sm:$0x3] %vm155_vm2, %v10469_v58 }
 0x27e   :  { %3257 = vst.msk [vmem:[%s16623_s1 + $0x3018] sm:$0x3] %vm155_vm2, %v10469_v58  ;;  %3305 = vst.msk [vmem:[%s16623_s1 + $0x3058] sm:$0x3] %vm155_vm2, %v10469_v58 }
 0x27f   :  { %3353 = vst.msk [vmem:[%s16623_s1 + $0x3198] sm:$0x3] %vm155_vm2, %v10469_v58  ;;  %3401 = vst.msk [vmem:[%s16623_s1 + $0x31d8] sm:$0x3] %vm155_vm2, %v10469_v58 }
 0x280   :  { %3449 = vst.msk [vmem:[%s16623_s1 + $0x3318] sm:$0x3] %vm155_vm2, %v10469_v58  ;;  %3497 = vst.msk [vmem:[%s16623_s1 + $0x3358] sm:$0x3] %vm155_vm2, %v10469_v58 }
 0x281   :  { %3545 = vst.msk [vmem:[%s16623_s1 + $0x3498] sm:$0x3] %vm155_vm2, %v10469_v58  ;;  %3593 = vst.msk [vmem:[%s16623_s1 + $0x34d8] sm:$0x3] %vm155_vm2, %v10469_v58 }
 0x282   :  { %3641 = vst.msk [vmem:[%s16623_s1 + $0x3618] sm:$0x3] %vm155_vm2, %v10469_v58  ;;  %3689 = vst.msk [vmem:[%s16623_s1 + $0x3658] sm:$0x3] %vm155_vm2, %v10469_v58 }
 0x283   :  { %3737 = vst.msk [vmem:[%s16623_s1 + $0x3798] sm:$0x3] %vm155_vm2, %v10469_v58  ;;  %3785 = vst.msk [vmem:[%s16623_s1 + $0x37d8] sm:$0x3] %vm155_vm2, %v10469_v58 }
 0x284   :  { %3833 = vst.msk [vmem:[%s16623_s1 + $0x3918] sm:$0x3] %vm155_vm2, %v10469_v58  ;;  %3881 = vst.msk [vmem:[%s16623_s1 + $0x3958] sm:$0x3] %vm155_vm2, %v10469_v58 }
 0x285   :  { %3929 = vst.msk [vmem:[%s16623_s1 + $0x3a98] sm:$0x3] %vm155_vm2, %v10469_v58  ;;  %3977 = vst.msk [vmem:[%s16623_s1 + $0x3ad8] sm:$0x3] %vm155_vm2, %v10469_v58 }
 0x286   :  { %4025 = vst.msk [vmem:[%s16623_s1 + $0x3c18] sm:$0x3] %vm155_vm2, %v10469_v58  ;;  %4073 = vst.msk [vmem:[%s16623_s1 + $0x3c58] sm:$0x3] %vm155_vm2, %v10469_v58 }
 0x287   :  { %4121 = vst.msk [vmem:[%s16623_s1 + $0x3d98] sm:$0x3] %vm155_vm2, %v10469_v58  ;;  %4169 = vst.msk [vmem:[%s16623_s1 + $0x3dd8] sm:$0x3] %vm155_vm2, %v10469_v58 }
 0x288   :  { %4217 = vst.msk [vmem:[%s16623_s1 + $0x3f18] sm:$0x3] %vm155_vm2, %v10469_v58  ;;  %4265 = vst.msk [vmem:[%s16623_s1 + $0x3f58] sm:$0x3] %vm155_vm2, %v10469_v58 }
 0x289   :  { %4313 = vst.msk [vmem:[%s16623_s1 + $0x4098] sm:$0x3] %vm155_vm2, %v10469_v58  ;;  %4361 = vst.msk [vmem:[%s16623_s1 + $0x40d8] sm:$0x3] %vm155_vm2, %v10469_v58 }
 0x28a   :  { %4409 = vst.msk [vmem:[%s16623_s1 + $0x4218] sm:$0x3] %vm155_vm2, %v10469_v58  ;;  %4457 = vst.msk [vmem:[%s16623_s1 + $0x4258] sm:$0x3] %vm155_vm2, %v10469_v58 }
 0x28b   :  { %4505 = vst.msk [vmem:[%s16623_s1 + $0x4398] sm:$0x3] %vm155_vm2, %v10469_v58  ;;  %4553 = vst.msk [vmem:[%s16623_s1 + $0x43d8] sm:$0x3] %vm155_vm2, %v10469_v58 }
 0x28c   :  { %4601 = vst.msk [vmem:[%s16623_s1 + $0x4518] sm:$0x3] %vm155_vm2, %v10469_v58  ;;  %4649 = vst.msk [vmem:[%s16623_s1 + $0x4558] sm:$0x3] %vm155_vm2, %v10469_v58 }
 0x28d   :  { %4697 = vst.msk [vmem:[%s16623_s1 + $0x4698] sm:$0x3] %vm155_vm2, %v10469_v58  ;;  %4745 = vst.msk [vmem:[%s16623_s1 + $0x46d8] sm:$0x3] %vm155_vm2, %v10469_v58 }
 0x28e   :  { %184 = vst.msk [vmem:[%s16623_s1 + $0x2428] sm:$0x3] %vm155_vm2, %v10473_v59  ;;  %2539 = vst.msk [vmem:[%s16623_s1 + $0x2468] sm:$0x3] %vm155_vm2, %v10473_v59 }
 0x28f   :  { %2587 = vst.msk [vmem:[%s16623_s1 + $0x25a8] sm:$0x3] %vm155_vm2, %v10473_v59  ;;  %2635 = vst.msk [vmem:[%s16623_s1 + $0x25e8] sm:$0x3] %vm155_vm2, %v10473_v59 }
 0x290   :  { %2683 = vst.msk [vmem:[%s16623_s1 + $0x2728] sm:$0x3] %vm155_vm2, %v10473_v59  ;;  %2731 = vst.msk [vmem:[%s16623_s1 + $0x2768] sm:$0x3] %vm155_vm2, %v10473_v59 }
 0x291   :  { %2779 = vst.msk [vmem:[%s16623_s1 + $0x28a8] sm:$0x3] %vm155_vm2, %v10473_v59  ;;  %2827 = vst.msk [vmem:[%s16623_s1 + $0x28e8] sm:$0x3] %vm155_vm2, %v10473_v59 }
 0x292   :  { %2875 = vst.msk [vmem:[%s16623_s1 + $0x2a28] sm:$0x3] %vm155_vm2, %v10473_v59  ;;  %2923 = vst.msk [vmem:[%s16623_s1 + $0x2a68] sm:$0x3] %vm155_vm2, %v10473_v59 }
 0x293   :  { %2971 = vst.msk [vmem:[%s16623_s1 + $0x2ba8] sm:$0x3] %vm155_vm2, %v10473_v59  ;;  %3019 = vst.msk [vmem:[%s16623_s1 + $0x2be8] sm:$0x3] %vm155_vm2, %v10473_v59 }
 0x294   :  { %3067 = vst.msk [vmem:[%s16623_s1 + $0x2d28] sm:$0x3] %vm155_vm2, %v10473_v59  ;;  %3115 = vst.msk [vmem:[%s16623_s1 + $0x2d68] sm:$0x3] %vm155_vm2, %v10473_v59 }
 0x295   :  { %3163 = vst.msk [vmem:[%s16623_s1 + $0x2ea8] sm:$0x3] %vm155_vm2, %v10473_v59  ;;  %3211 = vst.msk [vmem:[%s16623_s1 + $0x2ee8] sm:$0x3] %vm155_vm2, %v10473_v59 }
 0x296   :  { %3259 = vst.msk [vmem:[%s16623_s1 + $0x3028] sm:$0x3] %vm155_vm2, %v10473_v59  ;;  %3307 = vst.msk [vmem:[%s16623_s1 + $0x3068] sm:$0x3] %vm155_vm2, %v10473_v59 }
 0x297   :  { %3355 = vst.msk [vmem:[%s16623_s1 + $0x31a8] sm:$0x3] %vm155_vm2, %v10473_v59  ;;  %3403 = vst.msk [vmem:[%s16623_s1 + $0x31e8] sm:$0x3] %vm155_vm2, %v10473_v59 }
 0x298   :  { %3451 = vst.msk [vmem:[%s16623_s1 + $0x3328] sm:$0x3] %vm155_vm2, %v10473_v59  ;;  %3499 = vst.msk [vmem:[%s16623_s1 + $0x3368] sm:$0x3] %vm155_vm2, %v10473_v59 }
 0x299   :  { %3547 = vst.msk [vmem:[%s16623_s1 + $0x34a8] sm:$0x3] %vm155_vm2, %v10473_v59  ;;  %3595 = vst.msk [vmem:[%s16623_s1 + $0x34e8] sm:$0x3] %vm155_vm2, %v10473_v59 }
 0x29a   :  { %3643 = vst.msk [vmem:[%s16623_s1 + $0x3628] sm:$0x3] %vm155_vm2, %v10473_v59  ;;  %3691 = vst.msk [vmem:[%s16623_s1 + $0x3668] sm:$0x3] %vm155_vm2, %v10473_v59 }
 0x29b   :  { %3739 = vst.msk [vmem:[%s16623_s1 + $0x37a8] sm:$0x3] %vm155_vm2, %v10473_v59  ;;  %3787 = vst.msk [vmem:[%s16623_s1 + $0x37e8] sm:$0x3] %vm155_vm2, %v10473_v59 }
 0x29c   :  { %3835 = vst.msk [vmem:[%s16623_s1 + $0x3928] sm:$0x3] %vm155_vm2, %v10473_v59  ;;  %3883 = vst.msk [vmem:[%s16623_s1 + $0x3968] sm:$0x3] %vm155_vm2, %v10473_v59 }
 0x29d   :  { %3931 = vst.msk [vmem:[%s16623_s1 + $0x3aa8] sm:$0x3] %vm155_vm2, %v10473_v59  ;;  %3979 = vst.msk [vmem:[%s16623_s1 + $0x3ae8] sm:$0x3] %vm155_vm2, %v10473_v59 }
 0x29e   :  { %4027 = vst.msk [vmem:[%s16623_s1 + $0x3c28] sm:$0x3] %vm155_vm2, %v10473_v59  ;;  %4075 = vst.msk [vmem:[%s16623_s1 + $0x3c68] sm:$0x3] %vm155_vm2, %v10473_v59 }
 0x29f   :  { %4123 = vst.msk [vmem:[%s16623_s1 + $0x3da8] sm:$0x3] %vm155_vm2, %v10473_v59  ;;  %4171 = vst.msk [vmem:[%s16623_s1 + $0x3de8] sm:$0x3] %vm155_vm2, %v10473_v59 }
 0x2a0   :  { %4219 = vst.msk [vmem:[%s16623_s1 + $0x3f28] sm:$0x3] %vm155_vm2, %v10473_v59  ;;  %4267 = vst.msk [vmem:[%s16623_s1 + $0x3f68] sm:$0x3] %vm155_vm2, %v10473_v59 }
 0x2a1   :  { %4315 = vst.msk [vmem:[%s16623_s1 + $0x40a8] sm:$0x3] %vm155_vm2, %v10473_v59  ;;  %4363 = vst.msk [vmem:[%s16623_s1 + $0x40e8] sm:$0x3] %vm155_vm2, %v10473_v59 }
 0x2a2   :  { %4411 = vst.msk [vmem:[%s16623_s1 + $0x4228] sm:$0x3] %vm155_vm2, %v10473_v59  ;;  %4459 = vst.msk [vmem:[%s16623_s1 + $0x4268] sm:$0x3] %vm155_vm2, %v10473_v59 }
 0x2a3   :  { %4507 = vst.msk [vmem:[%s16623_s1 + $0x43a8] sm:$0x3] %vm155_vm2, %v10473_v59  ;;  %4555 = vst.msk [vmem:[%s16623_s1 + $0x43e8] sm:$0x3] %vm155_vm2, %v10473_v59 }
 0x2a4   :  { %4603 = vst.msk [vmem:[%s16623_s1 + $0x4528] sm:$0x3] %vm155_vm2, %v10473_v59  ;;  %4651 = vst.msk [vmem:[%s16623_s1 + $0x4568] sm:$0x3] %vm155_vm2, %v10473_v59 }
 0x2a5   :  { %4699 = vst.msk [vmem:[%s16623_s1 + $0x46a8] sm:$0x3] %vm155_vm2, %v10473_v59  ;;  %4747 = vst.msk [vmem:[%s16623_s1 + $0x46e8] sm:$0x3] %vm155_vm2, %v10473_v59 }
 0x2a6   :  { %181 = vst.msk [vmem:[%s16623_s1 + $0x2410] sm:$0xff] %vm153_vm1, %v11219_v3  ;;  %2536 = vst.msk [vmem:[%s16623_s1 + $0x2450] sm:$0xff] %vm153_vm1, %v11219_v3 }
 0x2a7   :  { %2584 = vst.msk [vmem:[%s16623_s1 + $0x2590] sm:$0xff] %vm153_vm1, %v11219_v3  ;;  %2632 = vst.msk [vmem:[%s16623_s1 + $0x25d0] sm:$0xff] %vm153_vm1, %v11219_v3 }
 0x2a8   :  { %2680 = vst.msk [vmem:[%s16623_s1 + $0x2710] sm:$0xff] %vm153_vm1, %v11219_v3  ;;  %2728 = vst.msk [vmem:[%s16623_s1 + $0x2750] sm:$0xff] %vm153_vm1, %v11219_v3 }
 0x2a9   :  { %2776 = vst.msk [vmem:[%s16623_s1 + $0x2890] sm:$0xff] %vm153_vm1, %v11219_v3  ;;  %2824 = vst.msk [vmem:[%s16623_s1 + $0x28d0] sm:$0xff] %vm153_vm1, %v11219_v3 }
 0x2aa   :  { %2872 = vst.msk [vmem:[%s16623_s1 + $0x2a10] sm:$0xff] %vm153_vm1, %v11219_v3  ;;  %2920 = vst.msk [vmem:[%s16623_s1 + $0x2a50] sm:$0xff] %vm153_vm1, %v11219_v3 }
 0x2ab   :  { %2968 = vst.msk [vmem:[%s16623_s1 + $0x2b90] sm:$0xff] %vm153_vm1, %v11219_v3  ;;  %3016 = vst.msk [vmem:[%s16623_s1 + $0x2bd0] sm:$0xff] %vm153_vm1, %v11219_v3 }
 0x2ac   :  { %3064 = vst.msk [vmem:[%s16623_s1 + $0x2d10] sm:$0xff] %vm153_vm1, %v11219_v3  ;;  %3112 = vst.msk [vmem:[%s16623_s1 + $0x2d50] sm:$0xff] %vm153_vm1, %v11219_v3 }
 0x2ad   :  { %3160 = vst.msk [vmem:[%s16623_s1 + $0x2e90] sm:$0xff] %vm153_vm1, %v11219_v3  ;;  %3208 = vst.msk [vmem:[%s16623_s1 + $0x2ed0] sm:$0xff] %vm153_vm1, %v11219_v3 }
 0x2ae   :  { %3256 = vst.msk [vmem:[%s16623_s1 + $0x3010] sm:$0xff] %vm153_vm1, %v11219_v3  ;;  %3304 = vst.msk [vmem:[%s16623_s1 + $0x3050] sm:$0xff] %vm153_vm1, %v11219_v3 }
 0x2af   :  { %3352 = vst.msk [vmem:[%s16623_s1 + $0x3190] sm:$0xff] %vm153_vm1, %v11219_v3  ;;  %3400 = vst.msk [vmem:[%s16623_s1 + $0x31d0] sm:$0xff] %vm153_vm1, %v11219_v3 }
 0x2b0   :  { %3448 = vst.msk [vmem:[%s16623_s1 + $0x3310] sm:$0xff] %vm153_vm1, %v11219_v3  ;;  %3496 = vst.msk [vmem:[%s16623_s1 + $0x3350] sm:$0xff] %vm153_vm1, %v11219_v3 }
 0x2b1   :  { %3544 = vst.msk [vmem:[%s16623_s1 + $0x3490] sm:$0xff] %vm153_vm1, %v11219_v3  ;;  %3592 = vst.msk [vmem:[%s16623_s1 + $0x34d0] sm:$0xff] %vm153_vm1, %v11219_v3 }
 0x2b2   :  { %3640 = vst.msk [vmem:[%s16623_s1 + $0x3610] sm:$0xff] %vm153_vm1, %v11219_v3  ;;  %3688 = vst.msk [vmem:[%s16623_s1 + $0x3650] sm:$0xff] %vm153_vm1, %v11219_v3 }
 0x2b3   :  { %3736 = vst.msk [vmem:[%s16623_s1 + $0x3790] sm:$0xff] %vm153_vm1, %v11219_v3  ;;  %3784 = vst.msk [vmem:[%s16623_s1 + $0x37d0] sm:$0xff] %vm153_vm1, %v11219_v3 }
 0x2b4   :  { %3832 = vst.msk [vmem:[%s16623_s1 + $0x3910] sm:$0xff] %vm153_vm1, %v11219_v3  ;;  %3880 = vst.msk [vmem:[%s16623_s1 + $0x3950] sm:$0xff] %vm153_vm1, %v11219_v3 }
 0x2b5   :  { %3928 = vst.msk [vmem:[%s16623_s1 + $0x3a90] sm:$0xff] %vm153_vm1, %v11219_v3  ;;  %3976 = vst.msk [vmem:[%s16623_s1 + $0x3ad0] sm:$0xff] %vm153_vm1, %v11219_v3 }
 0x2b6   :  { %4024 = vst.msk [vmem:[%s16623_s1 + $0x3c10] sm:$0xff] %vm153_vm1, %v11219_v3  ;;  %4072 = vst.msk [vmem:[%s16623_s1 + $0x3c50] sm:$0xff] %vm153_vm1, %v11219_v3 }
 0x2b7   :  { %4120 = vst.msk [vmem:[%s16623_s1 + $0x3d90] sm:$0xff] %vm153_vm1, %v11219_v3  ;;  %4168 = vst.msk [vmem:[%s16623_s1 + $0x3dd0] sm:$0xff] %vm153_vm1, %v11219_v3 }
 0x2b8   :  { %4216 = vst.msk [vmem:[%s16623_s1 + $0x3f10] sm:$0xff] %vm153_vm1, %v11219_v3  ;;  %4264 = vst.msk [vmem:[%s16623_s1 + $0x3f50] sm:$0xff] %vm153_vm1, %v11219_v3 }
 0x2b9   :  { %4312 = vst.msk [vmem:[%s16623_s1 + $0x4090] sm:$0xff] %vm153_vm1, %v11219_v3  ;;  %4360 = vst.msk [vmem:[%s16623_s1 + $0x40d0] sm:$0xff] %vm153_vm1, %v11219_v3 }
 0x2ba   :  { %4408 = vst.msk [vmem:[%s16623_s1 + $0x4210] sm:$0xff] %vm153_vm1, %v11219_v3  ;;  %4456 = vst.msk [vmem:[%s16623_s1 + $0x4250] sm:$0xff] %vm153_vm1, %v11219_v3 }
 0x2bb   :  { %4504 = vst.msk [vmem:[%s16623_s1 + $0x4390] sm:$0xff] %vm153_vm1, %v11219_v3  ;;  %4552 = vst.msk [vmem:[%s16623_s1 + $0x43d0] sm:$0xff] %vm153_vm1, %v11219_v3 }
 0x2bc   :  { %4600 = vst.msk [vmem:[%s16623_s1 + $0x4510] sm:$0xff] %vm153_vm1, %v11219_v3  ;;  %4648 = vst.msk [vmem:[%s16623_s1 + $0x4550] sm:$0xff] %vm153_vm1, %v11219_v3 }
 0x2bd   :  { %4696 = vst.msk [vmem:[%s16623_s1 + $0x4690] sm:$0xff] %vm153_vm1, %v11219_v3  ;;  %4744 = vst.msk [vmem:[%s16623_s1 + $0x46d0] sm:$0xff] %vm153_vm1, %v11219_v3 }
 0x2be   :  { %183 = vst.msk [vmem:[%s16623_s1 + $0x2420] sm:$0xff] %vm153_vm1, %v11465_v4  ;;  %2538 = vst.msk [vmem:[%s16623_s1 + $0x2460] sm:$0xff] %vm153_vm1, %v11465_v4 }
 0x2bf   :  { %2586 = vst.msk [vmem:[%s16623_s1 + $0x25a0] sm:$0xff] %vm153_vm1, %v11465_v4  ;;  %2634 = vst.msk [vmem:[%s16623_s1 + $0x25e0] sm:$0xff] %vm153_vm1, %v11465_v4 }
 0x2c0   :  { %2682 = vst.msk [vmem:[%s16623_s1 + $0x2720] sm:$0xff] %vm153_vm1, %v11465_v4  ;;  %2730 = vst.msk [vmem:[%s16623_s1 + $0x2760] sm:$0xff] %vm153_vm1, %v11465_v4 }
 0x2c1   :  { %2778 = vst.msk [vmem:[%s16623_s1 + $0x28a0] sm:$0xff] %vm153_vm1, %v11465_v4  ;;  %2826 = vst.msk [vmem:[%s16623_s1 + $0x28e0] sm:$0xff] %vm153_vm1, %v11465_v4 }
 0x2c2   :  { %2874 = vst.msk [vmem:[%s16623_s1 + $0x2a20] sm:$0xff] %vm153_vm1, %v11465_v4  ;;  %2922 = vst.msk [vmem:[%s16623_s1 + $0x2a60] sm:$0xff] %vm153_vm1, %v11465_v4 }
 0x2c3   :  { %2970 = vst.msk [vmem:[%s16623_s1 + $0x2ba0] sm:$0xff] %vm153_vm1, %v11465_v4  ;;  %3018 = vst.msk [vmem:[%s16623_s1 + $0x2be0] sm:$0xff] %vm153_vm1, %v11465_v4 }
 0x2c4   :  { %3066 = vst.msk [vmem:[%s16623_s1 + $0x2d20] sm:$0xff] %vm153_vm1, %v11465_v4  ;;  %3114 = vst.msk [vmem:[%s16623_s1 + $0x2d60] sm:$0xff] %vm153_vm1, %v11465_v4 }
 0x2c5   :  { %3162 = vst.msk [vmem:[%s16623_s1 + $0x2ea0] sm:$0xff] %vm153_vm1, %v11465_v4  ;;  %3210 = vst.msk [vmem:[%s16623_s1 + $0x2ee0] sm:$0xff] %vm153_vm1, %v11465_v4 }
 0x2c6   :  { %3258 = vst.msk [vmem:[%s16623_s1 + $0x3020] sm:$0xff] %vm153_vm1, %v11465_v4  ;;  %3306 = vst.msk [vmem:[%s16623_s1 + $0x3060] sm:$0xff] %vm153_vm1, %v11465_v4 }
 0x2c7   :  { %3354 = vst.msk [vmem:[%s16623_s1 + $0x31a0] sm:$0xff] %vm153_vm1, %v11465_v4  ;;  %3402 = vst.msk [vmem:[%s16623_s1 + $0x31e0] sm:$0xff] %vm153_vm1, %v11465_v4 }
 0x2c8   :  { %3450 = vst.msk [vmem:[%s16623_s1 + $0x3320] sm:$0xff] %vm153_vm1, %v11465_v4  ;;  %3498 = vst.msk [vmem:[%s16623_s1 + $0x3360] sm:$0xff] %vm153_vm1, %v11465_v4 }
 0x2c9   :  { %3546 = vst.msk [vmem:[%s16623_s1 + $0x34a0] sm:$0xff] %vm153_vm1, %v11465_v4  ;;  %3594 = vst.msk [vmem:[%s16623_s1 + $0x34e0] sm:$0xff] %vm153_vm1, %v11465_v4 }
 0x2ca   :  { %3642 = vst.msk [vmem:[%s16623_s1 + $0x3620] sm:$0xff] %vm153_vm1, %v11465_v4  ;;  %3690 = vst.msk [vmem:[%s16623_s1 + $0x3660] sm:$0xff] %vm153_vm1, %v11465_v4 }
 0x2cb   :  { %3738 = vst.msk [vmem:[%s16623_s1 + $0x37a0] sm:$0xff] %vm153_vm1, %v11465_v4  ;;  %3786 = vst.msk [vmem:[%s16623_s1 + $0x37e0] sm:$0xff] %vm153_vm1, %v11465_v4 }
 0x2cc   :  { %3834 = vst.msk [vmem:[%s16623_s1 + $0x3920] sm:$0xff] %vm153_vm1, %v11465_v4  ;;  %3882 = vst.msk [vmem:[%s16623_s1 + $0x3960] sm:$0xff] %vm153_vm1, %v11465_v4 }
 0x2cd   :  { %3930 = vst.msk [vmem:[%s16623_s1 + $0x3aa0] sm:$0xff] %vm153_vm1, %v11465_v4  ;;  %3978 = vst.msk [vmem:[%s16623_s1 + $0x3ae0] sm:$0xff] %vm153_vm1, %v11465_v4 }
 0x2ce   :  { %4026 = vst.msk [vmem:[%s16623_s1 + $0x3c20] sm:$0xff] %vm153_vm1, %v11465_v4  ;;  %4074 = vst.msk [vmem:[%s16623_s1 + $0x3c60] sm:$0xff] %vm153_vm1, %v11465_v4 }
 0x2cf   :  { %4122 = vst.msk [vmem:[%s16623_s1 + $0x3da0] sm:$0xff] %vm153_vm1, %v11465_v4  ;;  %4170 = vst.msk [vmem:[%s16623_s1 + $0x3de0] sm:$0xff] %vm153_vm1, %v11465_v4 }
 0x2d0   :  { %4218 = vst.msk [vmem:[%s16623_s1 + $0x3f20] sm:$0xff] %vm153_vm1, %v11465_v4  ;;  %4266 = vst.msk [vmem:[%s16623_s1 + $0x3f60] sm:$0xff] %vm153_vm1, %v11465_v4 }
 0x2d1   :  { %4314 = vst.msk [vmem:[%s16623_s1 + $0x40a0] sm:$0xff] %vm153_vm1, %v11465_v4  ;;  %4362 = vst.msk [vmem:[%s16623_s1 + $0x40e0] sm:$0xff] %vm153_vm1, %v11465_v4 }
 0x2d2   :  { %4410 = vst.msk [vmem:[%s16623_s1 + $0x4220] sm:$0xff] %vm153_vm1, %v11465_v4  ;;  %4458 = vst.msk [vmem:[%s16623_s1 + $0x4260] sm:$0xff] %vm153_vm1, %v11465_v4 }
 0x2d3   :  { %4506 = vst.msk [vmem:[%s16623_s1 + $0x43a0] sm:$0xff] %vm153_vm1, %v11465_v4  ;;  %4554 = vst.msk [vmem:[%s16623_s1 + $0x43e0] sm:$0xff] %vm153_vm1, %v11465_v4 }
 0x2d4   :  { %4602 = vst.msk [vmem:[%s16623_s1 + $0x4520] sm:$0xff] %vm153_vm1, %v11465_v4  ;;  %4650 = vst.msk [vmem:[%s16623_s1 + $0x4560] sm:$0xff] %vm153_vm1, %v11465_v4 }
 0x2d5   :  { %4698 = vst.msk [vmem:[%s16623_s1 + $0x46a0] sm:$0xff] %vm153_vm1, %v11465_v4  ;;  %4746 = vst.msk [vmem:[%s16623_s1 + $0x46e0] sm:$0xff] %vm153_vm1, %v11465_v4 }
 0x2d6   :  { %186 = vst.msk [vmem:[%s16623_s1 + $0x2438] sm:$0x3] %vm155_vm2, %v11709_v5  ;;  %2541 = vst.msk [vmem:[%s16623_s1 + $0x2478] sm:$0x3] %vm155_vm2, %v11709_v5 }
 0x2d7   :  { %2589 = vst.msk [vmem:[%s16623_s1 + $0x25b8] sm:$0x3] %vm155_vm2, %v11709_v5  ;;  %2637 = vst.msk [vmem:[%s16623_s1 + $0x25f8] sm:$0x3] %vm155_vm2, %v11709_v5 }
 0x2d8   :  { %2685 = vst.msk [vmem:[%s16623_s1 + $0x2738] sm:$0x3] %vm155_vm2, %v11709_v5  ;;  %2733 = vst.msk [vmem:[%s16623_s1 + $0x2778] sm:$0x3] %vm155_vm2, %v11709_v5 }
 0x2d9   :  { %2781 = vst.msk [vmem:[%s16623_s1 + $0x28b8] sm:$0x3] %vm155_vm2, %v11709_v5  ;;  %2829 = vst.msk [vmem:[%s16623_s1 + $0x28f8] sm:$0x3] %vm155_vm2, %v11709_v5 }
 0x2da   :  { %2877 = vst.msk [vmem:[%s16623_s1 + $0x2a38] sm:$0x3] %vm155_vm2, %v11709_v5  ;;  %2925 = vst.msk [vmem:[%s16623_s1 + $0x2a78] sm:$0x3] %vm155_vm2, %v11709_v5 }
 0x2db   :  { %2973 = vst.msk [vmem:[%s16623_s1 + $0x2bb8] sm:$0x3] %vm155_vm2, %v11709_v5  ;;  %3021 = vst.msk [vmem:[%s16623_s1 + $0x2bf8] sm:$0x3] %vm155_vm2, %v11709_v5 }
 0x2dc   :  { %3069 = vst.msk [vmem:[%s16623_s1 + $0x2d38] sm:$0x3] %vm155_vm2, %v11709_v5  ;;  %3117 = vst.msk [vmem:[%s16623_s1 + $0x2d78] sm:$0x3] %vm155_vm2, %v11709_v5 }
 0x2dd   :  { %3165 = vst.msk [vmem:[%s16623_s1 + $0x2eb8] sm:$0x3] %vm155_vm2, %v11709_v5  ;;  %3213 = vst.msk [vmem:[%s16623_s1 + $0x2ef8] sm:$0x3] %vm155_vm2, %v11709_v5 }
 0x2de   :  { %3261 = vst.msk [vmem:[%s16623_s1 + $0x3038] sm:$0x3] %vm155_vm2, %v11709_v5  ;;  %3309 = vst.msk [vmem:[%s16623_s1 + $0x3078] sm:$0x3] %vm155_vm2, %v11709_v5 }
 0x2df   :  { %3357 = vst.msk [vmem:[%s16623_s1 + $0x31b8] sm:$0x3] %vm155_vm2, %v11709_v5  ;;  %3405 = vst.msk [vmem:[%s16623_s1 + $0x31f8] sm:$0x3] %vm155_vm2, %v11709_v5 }
 0x2e0   :  { %3453 = vst.msk [vmem:[%s16623_s1 + $0x3338] sm:$0x3] %vm155_vm2, %v11709_v5  ;;  %3501 = vst.msk [vmem:[%s16623_s1 + $0x3378] sm:$0x3] %vm155_vm2, %v11709_v5 }
 0x2e1   :  { %3549 = vst.msk [vmem:[%s16623_s1 + $0x34b8] sm:$0x3] %vm155_vm2, %v11709_v5  ;;  %3597 = vst.msk [vmem:[%s16623_s1 + $0x34f8] sm:$0x3] %vm155_vm2, %v11709_v5 }
 0x2e2   :  { %3645 = vst.msk [vmem:[%s16623_s1 + $0x3638] sm:$0x3] %vm155_vm2, %v11709_v5  ;;  %3693 = vst.msk [vmem:[%s16623_s1 + $0x3678] sm:$0x3] %vm155_vm2, %v11709_v5 }
 0x2e3   :  { %3741 = vst.msk [vmem:[%s16623_s1 + $0x37b8] sm:$0x3] %vm155_vm2, %v11709_v5  ;;  %3789 = vst.msk [vmem:[%s16623_s1 + $0x37f8] sm:$0x3] %vm155_vm2, %v11709_v5 }
 0x2e4   :  { %3837 = vst.msk [vmem:[%s16623_s1 + $0x3938] sm:$0x3] %vm155_vm2, %v11709_v5  ;;  %3885 = vst.msk [vmem:[%s16623_s1 + $0x3978] sm:$0x3] %vm155_vm2, %v11709_v5 }
 0x2e5   :  { %3933 = vst.msk [vmem:[%s16623_s1 + $0x3ab8] sm:$0x3] %vm155_vm2, %v11709_v5  ;;  %3981 = vst.msk [vmem:[%s16623_s1 + $0x3af8] sm:$0x3] %vm155_vm2, %v11709_v5 }
 0x2e6   :  { %4029 = vst.msk [vmem:[%s16623_s1 + $0x3c38] sm:$0x3] %vm155_vm2, %v11709_v5  ;;  %4077 = vst.msk [vmem:[%s16623_s1 + $0x3c78] sm:$0x3] %vm155_vm2, %v11709_v5 }
 0x2e7   :  { %4125 = vst.msk [vmem:[%s16623_s1 + $0x3db8] sm:$0x3] %vm155_vm2, %v11709_v5  ;;  %4173 = vst.msk [vmem:[%s16623_s1 + $0x3df8] sm:$0x3] %vm155_vm2, %v11709_v5 }
 0x2e8   :  { %4221 = vst.msk [vmem:[%s16623_s1 + $0x3f38] sm:$0x3] %vm155_vm2, %v11709_v5  ;;  %4269 = vst.msk [vmem:[%s16623_s1 + $0x3f78] sm:$0x3] %vm155_vm2, %v11709_v5 }
 0x2e9   :  { %4317 = vst.msk [vmem:[%s16623_s1 + $0x40b8] sm:$0x3] %vm155_vm2, %v11709_v5  ;;  %4365 = vst.msk [vmem:[%s16623_s1 + $0x40f8] sm:$0x3] %vm155_vm2, %v11709_v5 }
 0x2ea   :  { %4413 = vst.msk [vmem:[%s16623_s1 + $0x4238] sm:$0x3] %vm155_vm2, %v11709_v5  ;;  %4461 = vst.msk [vmem:[%s16623_s1 + $0x4278] sm:$0x3] %vm155_vm2, %v11709_v5 }
 0x2eb   :  { %4509 = vst.msk [vmem:[%s16623_s1 + $0x43b8] sm:$0x3] %vm155_vm2, %v11709_v5  ;;  %4557 = vst.msk [vmem:[%s16623_s1 + $0x43f8] sm:$0x3] %vm155_vm2, %v11709_v5 }
 0x2ec   :  { %4605 = vst.msk [vmem:[%s16623_s1 + $0x4538] sm:$0x3] %vm155_vm2, %v11709_v5  ;;  %4653 = vst.msk [vmem:[%s16623_s1 + $0x4578] sm:$0x3] %vm155_vm2, %v11709_v5 }
 0x2ed   :  { %4701 = vst.msk [vmem:[%s16623_s1 + $0x46b8] sm:$0x3] %vm155_vm2, %v11709_v5  ;;  %4749 = vst.msk [vmem:[%s16623_s1 + $0x46f8] sm:$0x3] %vm155_vm2, %v11709_v5 }
 0x2ee   :  { %185 = vst.msk [vmem:[%s16623_s1 + $0x2430] sm:$0xff] %vm153_vm1, %v12224_v14  ;;  %2540 = vst.msk [vmem:[%s16623_s1 + $0x2470] sm:$0xff] %vm153_vm1, %v12224_v14 }
 0x2ef   :  { %2588 = vst.msk [vmem:[%s16623_s1 + $0x25b0] sm:$0xff] %vm153_vm1, %v12224_v14  ;;  %2636 = vst.msk [vmem:[%s16623_s1 + $0x25f0] sm:$0xff] %vm153_vm1, %v12224_v14 }
 0x2f0   :  { %2684 = vst.msk [vmem:[%s16623_s1 + $0x2730] sm:$0xff] %vm153_vm1, %v12224_v14  ;;  %2732 = vst.msk [vmem:[%s16623_s1 + $0x2770] sm:$0xff] %vm153_vm1, %v12224_v14 }
 0x2f1   :  { %2780 = vst.msk [vmem:[%s16623_s1 + $0x28b0] sm:$0xff] %vm153_vm1, %v12224_v14  ;;  %2828 = vst.msk [vmem:[%s16623_s1 + $0x28f0] sm:$0xff] %vm153_vm1, %v12224_v14 }
 0x2f2   :  { %2876 = vst.msk [vmem:[%s16623_s1 + $0x2a30] sm:$0xff] %vm153_vm1, %v12224_v14  ;;  %2924 = vst.msk [vmem:[%s16623_s1 + $0x2a70] sm:$0xff] %vm153_vm1, %v12224_v14 }
 0x2f3   :  { %2972 = vst.msk [vmem:[%s16623_s1 + $0x2bb0] sm:$0xff] %vm153_vm1, %v12224_v14  ;;  %3020 = vst.msk [vmem:[%s16623_s1 + $0x2bf0] sm:$0xff] %vm153_vm1, %v12224_v14 }
 0x2f4   :  { %3068 = vst.msk [vmem:[%s16623_s1 + $0x2d30] sm:$0xff] %vm153_vm1, %v12224_v14  ;;  %3116 = vst.msk [vmem:[%s16623_s1 + $0x2d70] sm:$0xff] %vm153_vm1, %v12224_v14 }
 0x2f5   :  { %3164 = vst.msk [vmem:[%s16623_s1 + $0x2eb0] sm:$0xff] %vm153_vm1, %v12224_v14  ;;  %3212 = vst.msk [vmem:[%s16623_s1 + $0x2ef0] sm:$0xff] %vm153_vm1, %v12224_v14 }
 0x2f6   :  { %3260 = vst.msk [vmem:[%s16623_s1 + $0x3030] sm:$0xff] %vm153_vm1, %v12224_v14  ;;  %3308 = vst.msk [vmem:[%s16623_s1 + $0x3070] sm:$0xff] %vm153_vm1, %v12224_v14 }
 0x2f7   :  { %3356 = vst.msk [vmem:[%s16623_s1 + $0x31b0] sm:$0xff] %vm153_vm1, %v12224_v14  ;;  %3404 = vst.msk [vmem:[%s16623_s1 + $0x31f0] sm:$0xff] %vm153_vm1, %v12224_v14 }
 0x2f8   :  { %3452 = vst.msk [vmem:[%s16623_s1 + $0x3330] sm:$0xff] %vm153_vm1, %v12224_v14  ;;  %3500 = vst.msk [vmem:[%s16623_s1 + $0x3370] sm:$0xff] %vm153_vm1, %v12224_v14 }
 0x2f9   :  { %3548 = vst.msk [vmem:[%s16623_s1 + $0x34b0] sm:$0xff] %vm153_vm1, %v12224_v14  ;;  %3596 = vst.msk [vmem:[%s16623_s1 + $0x34f0] sm:$0xff] %vm153_vm1, %v12224_v14 }
 0x2fa   :  { %3644 = vst.msk [vmem:[%s16623_s1 + $0x3630] sm:$0xff] %vm153_vm1, %v12224_v14  ;;  %3692 = vst.msk [vmem:[%s16623_s1 + $0x3670] sm:$0xff] %vm153_vm1, %v12224_v14 }
 0x2fb   :  { %3740 = vst.msk [vmem:[%s16623_s1 + $0x37b0] sm:$0xff] %vm153_vm1, %v12224_v14  ;;  %3788 = vst.msk [vmem:[%s16623_s1 + $0x37f0] sm:$0xff] %vm153_vm1, %v12224_v14 }
 0x2fc   :  { %3836 = vst.msk [vmem:[%s16623_s1 + $0x3930] sm:$0xff] %vm153_vm1, %v12224_v14  ;;  %3884 = vst.msk [vmem:[%s16623_s1 + $0x3970] sm:$0xff] %vm153_vm1, %v12224_v14 }
 0x2fd   :  { %3932 = vst.msk [vmem:[%s16623_s1 + $0x3ab0] sm:$0xff] %vm153_vm1, %v12224_v14  ;;  %3980 = vst.msk [vmem:[%s16623_s1 + $0x3af0] sm:$0xff] %vm153_vm1, %v12224_v14 }
 0x2fe   :  { %4028 = vst.msk [vmem:[%s16623_s1 + $0x3c30] sm:$0xff] %vm153_vm1, %v12224_v14  ;;  %4076 = vst.msk [vmem:[%s16623_s1 + $0x3c70] sm:$0xff] %vm153_vm1, %v12224_v14 }
 0x2ff   :  { %4124 = vst.msk [vmem:[%s16623_s1 + $0x3db0] sm:$0xff] %vm153_vm1, %v12224_v14  ;;  %4172 = vst.msk [vmem:[%s16623_s1 + $0x3df0] sm:$0xff] %vm153_vm1, %v12224_v14 }
 0x300   :  { %4220 = vst.msk [vmem:[%s16623_s1 + $0x3f30] sm:$0xff] %vm153_vm1, %v12224_v14  ;;  %4268 = vst.msk [vmem:[%s16623_s1 + $0x3f70] sm:$0xff] %vm153_vm1, %v12224_v14 }
 0x301   :  { %4316 = vst.msk [vmem:[%s16623_s1 + $0x40b0] sm:$0xff] %vm153_vm1, %v12224_v14  ;;  %4364 = vst.msk [vmem:[%s16623_s1 + $0x40f0] sm:$0xff] %vm153_vm1, %v12224_v14 }
 0x302   :  { %4412 = vst.msk [vmem:[%s16623_s1 + $0x4230] sm:$0xff] %vm153_vm1, %v12224_v14  ;;  %4460 = vst.msk [vmem:[%s16623_s1 + $0x4270] sm:$0xff] %vm153_vm1, %v12224_v14 }
 0x303   :  { %4508 = vst.msk [vmem:[%s16623_s1 + $0x43b0] sm:$0xff] %vm153_vm1, %v12224_v14  ;;  %4556 = vst.msk [vmem:[%s16623_s1 + $0x43f0] sm:$0xff] %vm153_vm1, %v12224_v14 }
 0x304   :  { %4604 = vst.msk [vmem:[%s16623_s1 + $0x4530] sm:$0xff] %vm153_vm1, %v12224_v14  ;;  %4652 = vst.msk [vmem:[%s16623_s1 + $0x4570] sm:$0xff] %vm153_vm1, %v12224_v14 }
 0x305   :  { %4700 = vst.msk [vmem:[%s16623_s1 + $0x46b0] sm:$0xff] %vm153_vm1, %v12224_v14  ;;  %4748 = vst.msk [vmem:[%s16623_s1 + $0x46f0] sm:$0xff] %vm153_vm1, %v12224_v14 }
 0x306   :  { %188 = vst.msk [vmem:[%s16623_s1 + $0x2488] sm:$0x3] %vm155_vm2, %v12204_v9  ;;  %2543 = vst.msk [vmem:[%s16623_s1 + $0x24c8] sm:$0x3] %vm155_vm2, %v12204_v9 }
 0x307   :  { %2591 = vst.msk [vmem:[%s16623_s1 + $0x2608] sm:$0x3] %vm155_vm2, %v12204_v9  ;;  %2639 = vst.msk [vmem:[%s16623_s1 + $0x2648] sm:$0x3] %vm155_vm2, %v12204_v9 }
 0x308   :  { %2687 = vst.msk [vmem:[%s16623_s1 + $0x2788] sm:$0x3] %vm155_vm2, %v12204_v9  ;;  %2735 = vst.msk [vmem:[%s16623_s1 + $0x27c8] sm:$0x3] %vm155_vm2, %v12204_v9 }
 0x309   :  { %2783 = vst.msk [vmem:[%s16623_s1 + $0x2908] sm:$0x3] %vm155_vm2, %v12204_v9  ;;  %2831 = vst.msk [vmem:[%s16623_s1 + $0x2948] sm:$0x3] %vm155_vm2, %v12204_v9 }
 0x30a   :  { %2879 = vst.msk [vmem:[%s16623_s1 + $0x2a88] sm:$0x3] %vm155_vm2, %v12204_v9  ;;  %2927 = vst.msk [vmem:[%s16623_s1 + $0x2ac8] sm:$0x3] %vm155_vm2, %v12204_v9 }
 0x30b   :  { %2975 = vst.msk [vmem:[%s16623_s1 + $0x2c08] sm:$0x3] %vm155_vm2, %v12204_v9  ;;  %3023 = vst.msk [vmem:[%s16623_s1 + $0x2c48] sm:$0x3] %vm155_vm2, %v12204_v9 }
 0x30c   :  { %3071 = vst.msk [vmem:[%s16623_s1 + $0x2d88] sm:$0x3] %vm155_vm2, %v12204_v9  ;;  %3119 = vst.msk [vmem:[%s16623_s1 + $0x2dc8] sm:$0x3] %vm155_vm2, %v12204_v9 }
 0x30d   :  { %3167 = vst.msk [vmem:[%s16623_s1 + $0x2f08] sm:$0x3] %vm155_vm2, %v12204_v9  ;;  %3215 = vst.msk [vmem:[%s16623_s1 + $0x2f48] sm:$0x3] %vm155_vm2, %v12204_v9 }
 0x30e   :  { %3263 = vst.msk [vmem:[%s16623_s1 + $0x3088] sm:$0x3] %vm155_vm2, %v12204_v9  ;;  %3311 = vst.msk [vmem:[%s16623_s1 + $0x30c8] sm:$0x3] %vm155_vm2, %v12204_v9 }
 0x30f   :  { %3359 = vst.msk [vmem:[%s16623_s1 + $0x3208] sm:$0x3] %vm155_vm2, %v12204_v9  ;;  %3407 = vst.msk [vmem:[%s16623_s1 + $0x3248] sm:$0x3] %vm155_vm2, %v12204_v9 }
 0x310   :  { %3455 = vst.msk [vmem:[%s16623_s1 + $0x3388] sm:$0x3] %vm155_vm2, %v12204_v9  ;;  %3503 = vst.msk [vmem:[%s16623_s1 + $0x33c8] sm:$0x3] %vm155_vm2, %v12204_v9 }
 0x311   :  { %3551 = vst.msk [vmem:[%s16623_s1 + $0x3508] sm:$0x3] %vm155_vm2, %v12204_v9  ;;  %3599 = vst.msk [vmem:[%s16623_s1 + $0x3548] sm:$0x3] %vm155_vm2, %v12204_v9 }
 0x312   :  { %3647 = vst.msk [vmem:[%s16623_s1 + $0x3688] sm:$0x3] %vm155_vm2, %v12204_v9  ;;  %3695 = vst.msk [vmem:[%s16623_s1 + $0x36c8] sm:$0x3] %vm155_vm2, %v12204_v9 }
 0x313   :  { %3743 = vst.msk [vmem:[%s16623_s1 + $0x3808] sm:$0x3] %vm155_vm2, %v12204_v9  ;;  %3791 = vst.msk [vmem:[%s16623_s1 + $0x3848] sm:$0x3] %vm155_vm2, %v12204_v9 }
 0x314   :  { %3839 = vst.msk [vmem:[%s16623_s1 + $0x3988] sm:$0x3] %vm155_vm2, %v12204_v9  ;;  %3887 = vst.msk [vmem:[%s16623_s1 + $0x39c8] sm:$0x3] %vm155_vm2, %v12204_v9 }
 0x315   :  { %3935 = vst.msk [vmem:[%s16623_s1 + $0x3b08] sm:$0x3] %vm155_vm2, %v12204_v9  ;;  %3983 = vst.msk [vmem:[%s16623_s1 + $0x3b48] sm:$0x3] %vm155_vm2, %v12204_v9 }
 0x316   :  { %4031 = vst.msk [vmem:[%s16623_s1 + $0x3c88] sm:$0x3] %vm155_vm2, %v12204_v9  ;;  %4079 = vst.msk [vmem:[%s16623_s1 + $0x3cc8] sm:$0x3] %vm155_vm2, %v12204_v9 }
 0x317   :  { %4127 = vst.msk [vmem:[%s16623_s1 + $0x3e08] sm:$0x3] %vm155_vm2, %v12204_v9  ;;  %4175 = vst.msk [vmem:[%s16623_s1 + $0x3e48] sm:$0x3] %vm155_vm2, %v12204_v9 }
 0x318   :  { %4223 = vst.msk [vmem:[%s16623_s1 + $0x3f88] sm:$0x3] %vm155_vm2, %v12204_v9  ;;  %4271 = vst.msk [vmem:[%s16623_s1 + $0x3fc8] sm:$0x3] %vm155_vm2, %v12204_v9 }
 0x319   :  { %4319 = vst.msk [vmem:[%s16623_s1 + $0x4108] sm:$0x3] %vm155_vm2, %v12204_v9  ;;  %4367 = vst.msk [vmem:[%s16623_s1 + $0x4148] sm:$0x3] %vm155_vm2, %v12204_v9 }
 0x31a   :  { %4415 = vst.msk [vmem:[%s16623_s1 + $0x4288] sm:$0x3] %vm155_vm2, %v12204_v9  ;;  %4463 = vst.msk [vmem:[%s16623_s1 + $0x42c8] sm:$0x3] %vm155_vm2, %v12204_v9 }
 0x31b   :  { %4511 = vst.msk [vmem:[%s16623_s1 + $0x4408] sm:$0x3] %vm155_vm2, %v12204_v9  ;;  %4559 = vst.msk [vmem:[%s16623_s1 + $0x4448] sm:$0x3] %vm155_vm2, %v12204_v9 }
 0x31c   :  { %4607 = vst.msk [vmem:[%s16623_s1 + $0x4588] sm:$0x3] %vm155_vm2, %v12204_v9  ;;  %4655 = vst.msk [vmem:[%s16623_s1 + $0x45c8] sm:$0x3] %vm155_vm2, %v12204_v9 }
 0x31d   :  { %4703 = vst.msk [vmem:[%s16623_s1 + $0x4708] sm:$0x3] %vm155_vm2, %v12204_v9  ;;  %4751 = vst.msk [vmem:[%s16623_s1 + $0x4748] sm:$0x3] %vm155_vm2, %v12204_v9 }
 0x31e   :  { %190 = vst.msk [vmem:[%s16623_s1 + $0x2498] sm:$0x3] %vm155_vm2, %v12208_v10  ;;  %2545 = vst.msk [vmem:[%s16623_s1 + $0x24d8] sm:$0x3] %vm155_vm2, %v12208_v10 }
 0x31f   :  { %2593 = vst.msk [vmem:[%s16623_s1 + $0x2618] sm:$0x3] %vm155_vm2, %v12208_v10  ;;  %2641 = vst.msk [vmem:[%s16623_s1 + $0x2658] sm:$0x3] %vm155_vm2, %v12208_v10 }
 0x320   :  { %2689 = vst.msk [vmem:[%s16623_s1 + $0x2798] sm:$0x3] %vm155_vm2, %v12208_v10  ;;  %2737 = vst.msk [vmem:[%s16623_s1 + $0x27d8] sm:$0x3] %vm155_vm2, %v12208_v10 }
 0x321   :  { %2785 = vst.msk [vmem:[%s16623_s1 + $0x2918] sm:$0x3] %vm155_vm2, %v12208_v10  ;;  %2833 = vst.msk [vmem:[%s16623_s1 + $0x2958] sm:$0x3] %vm155_vm2, %v12208_v10 }
 0x322   :  { %2881 = vst.msk [vmem:[%s16623_s1 + $0x2a98] sm:$0x3] %vm155_vm2, %v12208_v10  ;;  %2929 = vst.msk [vmem:[%s16623_s1 + $0x2ad8] sm:$0x3] %vm155_vm2, %v12208_v10 }
 0x323   :  { %2977 = vst.msk [vmem:[%s16623_s1 + $0x2c18] sm:$0x3] %vm155_vm2, %v12208_v10  ;;  %3025 = vst.msk [vmem:[%s16623_s1 + $0x2c58] sm:$0x3] %vm155_vm2, %v12208_v10 }
 0x324   :  { %3073 = vst.msk [vmem:[%s16623_s1 + $0x2d98] sm:$0x3] %vm155_vm2, %v12208_v10  ;;  %3121 = vst.msk [vmem:[%s16623_s1 + $0x2dd8] sm:$0x3] %vm155_vm2, %v12208_v10 }
 0x325   :  { %3169 = vst.msk [vmem:[%s16623_s1 + $0x2f18] sm:$0x3] %vm155_vm2, %v12208_v10  ;;  %3217 = vst.msk [vmem:[%s16623_s1 + $0x2f58] sm:$0x3] %vm155_vm2, %v12208_v10 }
 0x326   :  { %3265 = vst.msk [vmem:[%s16623_s1 + $0x3098] sm:$0x3] %vm155_vm2, %v12208_v10  ;;  %3313 = vst.msk [vmem:[%s16623_s1 + $0x30d8] sm:$0x3] %vm155_vm2, %v12208_v10 }
 0x327   :  { %3361 = vst.msk [vmem:[%s16623_s1 + $0x3218] sm:$0x3] %vm155_vm2, %v12208_v10  ;;  %3409 = vst.msk [vmem:[%s16623_s1 + $0x3258] sm:$0x3] %vm155_vm2, %v12208_v10 }
 0x328   :  { %3457 = vst.msk [vmem:[%s16623_s1 + $0x3398] sm:$0x3] %vm155_vm2, %v12208_v10  ;;  %3505 = vst.msk [vmem:[%s16623_s1 + $0x33d8] sm:$0x3] %vm155_vm2, %v12208_v10 }
 0x329   :  { %3553 = vst.msk [vmem:[%s16623_s1 + $0x3518] sm:$0x3] %vm155_vm2, %v12208_v10  ;;  %3601 = vst.msk [vmem:[%s16623_s1 + $0x3558] sm:$0x3] %vm155_vm2, %v12208_v10 }
 0x32a   :  { %3649 = vst.msk [vmem:[%s16623_s1 + $0x3698] sm:$0x3] %vm155_vm2, %v12208_v10  ;;  %3697 = vst.msk [vmem:[%s16623_s1 + $0x36d8] sm:$0x3] %vm155_vm2, %v12208_v10 }
 0x32b   :  { %3745 = vst.msk [vmem:[%s16623_s1 + $0x3818] sm:$0x3] %vm155_vm2, %v12208_v10  ;;  %3793 = vst.msk [vmem:[%s16623_s1 + $0x3858] sm:$0x3] %vm155_vm2, %v12208_v10 }
 0x32c   :  { %3841 = vst.msk [vmem:[%s16623_s1 + $0x3998] sm:$0x3] %vm155_vm2, %v12208_v10  ;;  %3889 = vst.msk [vmem:[%s16623_s1 + $0x39d8] sm:$0x3] %vm155_vm2, %v12208_v10 }
 0x32d   :  { %3937 = vst.msk [vmem:[%s16623_s1 + $0x3b18] sm:$0x3] %vm155_vm2, %v12208_v10  ;;  %3985 = vst.msk [vmem:[%s16623_s1 + $0x3b58] sm:$0x3] %vm155_vm2, %v12208_v10 }
 0x32e   :  { %4033 = vst.msk [vmem:[%s16623_s1 + $0x3c98] sm:$0x3] %vm155_vm2, %v12208_v10  ;;  %4081 = vst.msk [vmem:[%s16623_s1 + $0x3cd8] sm:$0x3] %vm155_vm2, %v12208_v10 }
 0x32f   :  { %4129 = vst.msk [vmem:[%s16623_s1 + $0x3e18] sm:$0x3] %vm155_vm2, %v12208_v10  ;;  %4177 = vst.msk [vmem:[%s16623_s1 + $0x3e58] sm:$0x3] %vm155_vm2, %v12208_v10 }
 0x330   :  { %4225 = vst.msk [vmem:[%s16623_s1 + $0x3f98] sm:$0x3] %vm155_vm2, %v12208_v10  ;;  %4273 = vst.msk [vmem:[%s16623_s1 + $0x3fd8] sm:$0x3] %vm155_vm2, %v12208_v10 }
 0x331   :  { %4321 = vst.msk [vmem:[%s16623_s1 + $0x4118] sm:$0x3] %vm155_vm2, %v12208_v10  ;;  %4369 = vst.msk [vmem:[%s16623_s1 + $0x4158] sm:$0x3] %vm155_vm2, %v12208_v10 }
 0x332   :  { %4417 = vst.msk [vmem:[%s16623_s1 + $0x4298] sm:$0x3] %vm155_vm2, %v12208_v10  ;;  %4465 = vst.msk [vmem:[%s16623_s1 + $0x42d8] sm:$0x3] %vm155_vm2, %v12208_v10 }
 0x333   :  { %4513 = vst.msk [vmem:[%s16623_s1 + $0x4418] sm:$0x3] %vm155_vm2, %v12208_v10  ;;  %4561 = vst.msk [vmem:[%s16623_s1 + $0x4458] sm:$0x3] %vm155_vm2, %v12208_v10 }
 0x334   :  { %4609 = vst.msk [vmem:[%s16623_s1 + $0x4598] sm:$0x3] %vm155_vm2, %v12208_v10  ;;  %4657 = vst.msk [vmem:[%s16623_s1 + $0x45d8] sm:$0x3] %vm155_vm2, %v12208_v10 }
 0x335   :  { %4705 = vst.msk [vmem:[%s16623_s1 + $0x4718] sm:$0x3] %vm155_vm2, %v12208_v10  ;;  %4753 = vst.msk [vmem:[%s16623_s1 + $0x4758] sm:$0x3] %vm155_vm2, %v12208_v10 }
 0x336   :  { %192 = vst.msk [vmem:[%s16623_s1 + $0x24a8] sm:$0x3] %vm155_vm2, %v12212_v11  ;;  %2547 = vst.msk [vmem:[%s16623_s1 + $0x24e8] sm:$0x3] %vm155_vm2, %v12212_v11 }
 0x337   :  { %2595 = vst.msk [vmem:[%s16623_s1 + $0x2628] sm:$0x3] %vm155_vm2, %v12212_v11  ;;  %2643 = vst.msk [vmem:[%s16623_s1 + $0x2668] sm:$0x3] %vm155_vm2, %v12212_v11 }
 0x338   :  { %2691 = vst.msk [vmem:[%s16623_s1 + $0x27a8] sm:$0x3] %vm155_vm2, %v12212_v11  ;;  %2739 = vst.msk [vmem:[%s16623_s1 + $0x27e8] sm:$0x3] %vm155_vm2, %v12212_v11 }
 0x339   :  { %2787 = vst.msk [vmem:[%s16623_s1 + $0x2928] sm:$0x3] %vm155_vm2, %v12212_v11  ;;  %2835 = vst.msk [vmem:[%s16623_s1 + $0x2968] sm:$0x3] %vm155_vm2, %v12212_v11 }
 0x33a   :  { %2883 = vst.msk [vmem:[%s16623_s1 + $0x2aa8] sm:$0x3] %vm155_vm2, %v12212_v11  ;;  %2931 = vst.msk [vmem:[%s16623_s1 + $0x2ae8] sm:$0x3] %vm155_vm2, %v12212_v11 }
 0x33b   :  { %2979 = vst.msk [vmem:[%s16623_s1 + $0x2c28] sm:$0x3] %vm155_vm2, %v12212_v11  ;;  %3027 = vst.msk [vmem:[%s16623_s1 + $0x2c68] sm:$0x3] %vm155_vm2, %v12212_v11 }
 0x33c   :  { %3075 = vst.msk [vmem:[%s16623_s1 + $0x2da8] sm:$0x3] %vm155_vm2, %v12212_v11  ;;  %3123 = vst.msk [vmem:[%s16623_s1 + $0x2de8] sm:$0x3] %vm155_vm2, %v12212_v11 }
 0x33d   :  { %3171 = vst.msk [vmem:[%s16623_s1 + $0x2f28] sm:$0x3] %vm155_vm2, %v12212_v11  ;;  %3219 = vst.msk [vmem:[%s16623_s1 + $0x2f68] sm:$0x3] %vm155_vm2, %v12212_v11 }
 0x33e   :  { %3267 = vst.msk [vmem:[%s16623_s1 + $0x30a8] sm:$0x3] %vm155_vm2, %v12212_v11  ;;  %3315 = vst.msk [vmem:[%s16623_s1 + $0x30e8] sm:$0x3] %vm155_vm2, %v12212_v11 }
 0x33f   :  { %3363 = vst.msk [vmem:[%s16623_s1 + $0x3228] sm:$0x3] %vm155_vm2, %v12212_v11  ;;  %3411 = vst.msk [vmem:[%s16623_s1 + $0x3268] sm:$0x3] %vm155_vm2, %v12212_v11 }
 0x340   :  { %3459 = vst.msk [vmem:[%s16623_s1 + $0x33a8] sm:$0x3] %vm155_vm2, %v12212_v11  ;;  %3507 = vst.msk [vmem:[%s16623_s1 + $0x33e8] sm:$0x3] %vm155_vm2, %v12212_v11 }
 0x341   :  { %3555 = vst.msk [vmem:[%s16623_s1 + $0x3528] sm:$0x3] %vm155_vm2, %v12212_v11  ;;  %3603 = vst.msk [vmem:[%s16623_s1 + $0x3568] sm:$0x3] %vm155_vm2, %v12212_v11 }
 0x342   :  { %3651 = vst.msk [vmem:[%s16623_s1 + $0x36a8] sm:$0x3] %vm155_vm2, %v12212_v11  ;;  %3699 = vst.msk [vmem:[%s16623_s1 + $0x36e8] sm:$0x3] %vm155_vm2, %v12212_v11 }
 0x343   :  { %3747 = vst.msk [vmem:[%s16623_s1 + $0x3828] sm:$0x3] %vm155_vm2, %v12212_v11  ;;  %3795 = vst.msk [vmem:[%s16623_s1 + $0x3868] sm:$0x3] %vm155_vm2, %v12212_v11 }
 0x344   :  { %3843 = vst.msk [vmem:[%s16623_s1 + $0x39a8] sm:$0x3] %vm155_vm2, %v12212_v11  ;;  %3891 = vst.msk [vmem:[%s16623_s1 + $0x39e8] sm:$0x3] %vm155_vm2, %v12212_v11 }
 0x345   :  { %3939 = vst.msk [vmem:[%s16623_s1 + $0x3b28] sm:$0x3] %vm155_vm2, %v12212_v11  ;;  %3987 = vst.msk [vmem:[%s16623_s1 + $0x3b68] sm:$0x3] %vm155_vm2, %v12212_v11 }
 0x346   :  { %4035 = vst.msk [vmem:[%s16623_s1 + $0x3ca8] sm:$0x3] %vm155_vm2, %v12212_v11  ;;  %4083 = vst.msk [vmem:[%s16623_s1 + $0x3ce8] sm:$0x3] %vm155_vm2, %v12212_v11 }
 0x347   :  { %4131 = vst.msk [vmem:[%s16623_s1 + $0x3e28] sm:$0x3] %vm155_vm2, %v12212_v11  ;;  %4179 = vst.msk [vmem:[%s16623_s1 + $0x3e68] sm:$0x3] %vm155_vm2, %v12212_v11 }
 0x348   :  { %4227 = vst.msk [vmem:[%s16623_s1 + $0x3fa8] sm:$0x3] %vm155_vm2, %v12212_v11  ;;  %4275 = vst.msk [vmem:[%s16623_s1 + $0x3fe8] sm:$0x3] %vm155_vm2, %v12212_v11 }
 0x349   :  { %4323 = vst.msk [vmem:[%s16623_s1 + $0x4128] sm:$0x3] %vm155_vm2, %v12212_v11  ;;  %4371 = vst.msk [vmem:[%s16623_s1 + $0x4168] sm:$0x3] %vm155_vm2, %v12212_v11 }
 0x34a   :  { %4419 = vst.msk [vmem:[%s16623_s1 + $0x42a8] sm:$0x3] %vm155_vm2, %v12212_v11  ;;  %4467 = vst.msk [vmem:[%s16623_s1 + $0x42e8] sm:$0x3] %vm155_vm2, %v12212_v11 }
 0x34b   :  { %4515 = vst.msk [vmem:[%s16623_s1 + $0x4428] sm:$0x3] %vm155_vm2, %v12212_v11  ;;  %4563 = vst.msk [vmem:[%s16623_s1 + $0x4468] sm:$0x3] %vm155_vm2, %v12212_v11 }
 0x34c   :  { %4611 = vst.msk [vmem:[%s16623_s1 + $0x45a8] sm:$0x3] %vm155_vm2, %v12212_v11  ;;  %4659 = vst.msk [vmem:[%s16623_s1 + $0x45e8] sm:$0x3] %vm155_vm2, %v12212_v11 }
 0x34d   :  { %4707 = vst.msk [vmem:[%s16623_s1 + $0x4728] sm:$0x3] %vm155_vm2, %v12212_v11  ;;  %4755 = vst.msk [vmem:[%s16623_s1 + $0x4768] sm:$0x3] %vm155_vm2, %v12212_v11 }
 0x34e   :  { %187 = vst.msk [vmem:[%s16623_s1 + $0x2480] sm:$0xff] %vm153_vm1, %v12721_v19  ;;  %2542 = vst.msk [vmem:[%s16623_s1 + $0x24c0] sm:$0xff] %vm153_vm1, %v12721_v19 }
 0x34f   :  { %2590 = vst.msk [vmem:[%s16623_s1 + $0x2600] sm:$0xff] %vm153_vm1, %v12721_v19  ;;  %2638 = vst.msk [vmem:[%s16623_s1 + $0x2640] sm:$0xff] %vm153_vm1, %v12721_v19 }
 0x350   :  { %2686 = vst.msk [vmem:[%s16623_s1 + $0x2780] sm:$0xff] %vm153_vm1, %v12721_v19  ;;  %2734 = vst.msk [vmem:[%s16623_s1 + $0x27c0] sm:$0xff] %vm153_vm1, %v12721_v19 }
 0x351   :  { %2782 = vst.msk [vmem:[%s16623_s1 + $0x2900] sm:$0xff] %vm153_vm1, %v12721_v19  ;;  %2830 = vst.msk [vmem:[%s16623_s1 + $0x2940] sm:$0xff] %vm153_vm1, %v12721_v19 }
 0x352   :  { %2878 = vst.msk [vmem:[%s16623_s1 + $0x2a80] sm:$0xff] %vm153_vm1, %v12721_v19  ;;  %2926 = vst.msk [vmem:[%s16623_s1 + $0x2ac0] sm:$0xff] %vm153_vm1, %v12721_v19 }
 0x353   :  { %2974 = vst.msk [vmem:[%s16623_s1 + $0x2c00] sm:$0xff] %vm153_vm1, %v12721_v19  ;;  %3022 = vst.msk [vmem:[%s16623_s1 + $0x2c40] sm:$0xff] %vm153_vm1, %v12721_v19 }
 0x354   :  { %3070 = vst.msk [vmem:[%s16623_s1 + $0x2d80] sm:$0xff] %vm153_vm1, %v12721_v19  ;;  %3118 = vst.msk [vmem:[%s16623_s1 + $0x2dc0] sm:$0xff] %vm153_vm1, %v12721_v19 }
 0x355   :  { %3166 = vst.msk [vmem:[%s16623_s1 + $0x2f00] sm:$0xff] %vm153_vm1, %v12721_v19  ;;  %3214 = vst.msk [vmem:[%s16623_s1 + $0x2f40] sm:$0xff] %vm153_vm1, %v12721_v19 }
 0x356   :  { %3262 = vst.msk [vmem:[%s16623_s1 + $0x3080] sm:$0xff] %vm153_vm1, %v12721_v19  ;;  %3310 = vst.msk [vmem:[%s16623_s1 + $0x30c0] sm:$0xff] %vm153_vm1, %v12721_v19 }
 0x357   :  { %3358 = vst.msk [vmem:[%s16623_s1 + $0x3200] sm:$0xff] %vm153_vm1, %v12721_v19  ;;  %3406 = vst.msk [vmem:[%s16623_s1 + $0x3240] sm:$0xff] %vm153_vm1, %v12721_v19 }
 0x358   :  { %3454 = vst.msk [vmem:[%s16623_s1 + $0x3380] sm:$0xff] %vm153_vm1, %v12721_v19  ;;  %3502 = vst.msk [vmem:[%s16623_s1 + $0x33c0] sm:$0xff] %vm153_vm1, %v12721_v19 }
 0x359   :  { %3550 = vst.msk [vmem:[%s16623_s1 + $0x3500] sm:$0xff] %vm153_vm1, %v12721_v19  ;;  %3598 = vst.msk [vmem:[%s16623_s1 + $0x3540] sm:$0xff] %vm153_vm1, %v12721_v19 }
 0x35a   :  { %3646 = vst.msk [vmem:[%s16623_s1 + $0x3680] sm:$0xff] %vm153_vm1, %v12721_v19  ;;  %3694 = vst.msk [vmem:[%s16623_s1 + $0x36c0] sm:$0xff] %vm153_vm1, %v12721_v19 }
 0x35b   :  { %3742 = vst.msk [vmem:[%s16623_s1 + $0x3800] sm:$0xff] %vm153_vm1, %v12721_v19  ;;  %3790 = vst.msk [vmem:[%s16623_s1 + $0x3840] sm:$0xff] %vm153_vm1, %v12721_v19 }
 0x35c   :  { %3838 = vst.msk [vmem:[%s16623_s1 + $0x3980] sm:$0xff] %vm153_vm1, %v12721_v19  ;;  %3886 = vst.msk [vmem:[%s16623_s1 + $0x39c0] sm:$0xff] %vm153_vm1, %v12721_v19 }
 0x35d   :  { %3934 = vst.msk [vmem:[%s16623_s1 + $0x3b00] sm:$0xff] %vm153_vm1, %v12721_v19  ;;  %3982 = vst.msk [vmem:[%s16623_s1 + $0x3b40] sm:$0xff] %vm153_vm1, %v12721_v19 }
 0x35e   :  { %4030 = vst.msk [vmem:[%s16623_s1 + $0x3c80] sm:$0xff] %vm153_vm1, %v12721_v19  ;;  %4078 = vst.msk [vmem:[%s16623_s1 + $0x3cc0] sm:$0xff] %vm153_vm1, %v12721_v19 }
 0x35f   :  { %4126 = vst.msk [vmem:[%s16623_s1 + $0x3e00] sm:$0xff] %vm153_vm1, %v12721_v19  ;;  %4174 = vst.msk [vmem:[%s16623_s1 + $0x3e40] sm:$0xff] %vm153_vm1, %v12721_v19 }
 0x360   :  { %4222 = vst.msk [vmem:[%s16623_s1 + $0x3f80] sm:$0xff] %vm153_vm1, %v12721_v19  ;;  %4270 = vst.msk [vmem:[%s16623_s1 + $0x3fc0] sm:$0xff] %vm153_vm1, %v12721_v19 }
 0x361   :  { %4318 = vst.msk [vmem:[%s16623_s1 + $0x4100] sm:$0xff] %vm153_vm1, %v12721_v19  ;;  %4366 = vst.msk [vmem:[%s16623_s1 + $0x4140] sm:$0xff] %vm153_vm1, %v12721_v19 }
 0x362   :  { %4414 = vst.msk [vmem:[%s16623_s1 + $0x4280] sm:$0xff] %vm153_vm1, %v12721_v19  ;;  %4462 = vst.msk [vmem:[%s16623_s1 + $0x42c0] sm:$0xff] %vm153_vm1, %v12721_v19 }
 0x363   :  { %4510 = vst.msk [vmem:[%s16623_s1 + $0x4400] sm:$0xff] %vm153_vm1, %v12721_v19  ;;  %4558 = vst.msk [vmem:[%s16623_s1 + $0x4440] sm:$0xff] %vm153_vm1, %v12721_v19 }
 0x364   :  { %4606 = vst.msk [vmem:[%s16623_s1 + $0x4580] sm:$0xff] %vm153_vm1, %v12721_v19  ;;  %4654 = vst.msk [vmem:[%s16623_s1 + $0x45c0] sm:$0xff] %vm153_vm1, %v12721_v19 }
 0x365   :  { %4702 = vst.msk [vmem:[%s16623_s1 + $0x4700] sm:$0xff] %vm153_vm1, %v12721_v19  ;;  %4750 = vst.msk [vmem:[%s16623_s1 + $0x4740] sm:$0xff] %vm153_vm1, %v12721_v19 }
 0x366   :  { %189 = vst.msk [vmem:[%s16623_s1 + $0x2490] sm:$0xff] %vm153_vm1, %v12967_v20  ;;  %2544 = vst.msk [vmem:[%s16623_s1 + $0x24d0] sm:$0xff] %vm153_vm1, %v12967_v20 }
 0x367   :  { %2592 = vst.msk [vmem:[%s16623_s1 + $0x2610] sm:$0xff] %vm153_vm1, %v12967_v20  ;;  %2640 = vst.msk [vmem:[%s16623_s1 + $0x2650] sm:$0xff] %vm153_vm1, %v12967_v20 }
 0x368   :  { %2688 = vst.msk [vmem:[%s16623_s1 + $0x2790] sm:$0xff] %vm153_vm1, %v12967_v20  ;;  %2736 = vst.msk [vmem:[%s16623_s1 + $0x27d0] sm:$0xff] %vm153_vm1, %v12967_v20 }
 0x369   :  { %2784 = vst.msk [vmem:[%s16623_s1 + $0x2910] sm:$0xff] %vm153_vm1, %v12967_v20  ;;  %2832 = vst.msk [vmem:[%s16623_s1 + $0x2950] sm:$0xff] %vm153_vm1, %v12967_v20 }
 0x36a   :  { %2880 = vst.msk [vmem:[%s16623_s1 + $0x2a90] sm:$0xff] %vm153_vm1, %v12967_v20  ;;  %2928 = vst.msk [vmem:[%s16623_s1 + $0x2ad0] sm:$0xff] %vm153_vm1, %v12967_v20 }
 0x36b   :  { %2976 = vst.msk [vmem:[%s16623_s1 + $0x2c10] sm:$0xff] %vm153_vm1, %v12967_v20  ;;  %3024 = vst.msk [vmem:[%s16623_s1 + $0x2c50] sm:$0xff] %vm153_vm1, %v12967_v20 }
 0x36c   :  { %3072 = vst.msk [vmem:[%s16623_s1 + $0x2d90] sm:$0xff] %vm153_vm1, %v12967_v20  ;;  %3120 = vst.msk [vmem:[%s16623_s1 + $0x2dd0] sm:$0xff] %vm153_vm1, %v12967_v20 }
 0x36d   :  { %3168 = vst.msk [vmem:[%s16623_s1 + $0x2f10] sm:$0xff] %vm153_vm1, %v12967_v20  ;;  %3216 = vst.msk [vmem:[%s16623_s1 + $0x2f50] sm:$0xff] %vm153_vm1, %v12967_v20 }
 0x36e   :  { %3264 = vst.msk [vmem:[%s16623_s1 + $0x3090] sm:$0xff] %vm153_vm1, %v12967_v20  ;;  %3312 = vst.msk [vmem:[%s16623_s1 + $0x30d0] sm:$0xff] %vm153_vm1, %v12967_v20 }
 0x36f   :  { %3360 = vst.msk [vmem:[%s16623_s1 + $0x3210] sm:$0xff] %vm153_vm1, %v12967_v20  ;;  %3408 = vst.msk [vmem:[%s16623_s1 + $0x3250] sm:$0xff] %vm153_vm1, %v12967_v20 }
 0x370   :  { %3456 = vst.msk [vmem:[%s16623_s1 + $0x3390] sm:$0xff] %vm153_vm1, %v12967_v20  ;;  %3504 = vst.msk [vmem:[%s16623_s1 + $0x33d0] sm:$0xff] %vm153_vm1, %v12967_v20 }
 0x371   :  { %3552 = vst.msk [vmem:[%s16623_s1 + $0x3510] sm:$0xff] %vm153_vm1, %v12967_v20  ;;  %3600 = vst.msk [vmem:[%s16623_s1 + $0x3550] sm:$0xff] %vm153_vm1, %v12967_v20 }
 0x372   :  { %3648 = vst.msk [vmem:[%s16623_s1 + $0x3690] sm:$0xff] %vm153_vm1, %v12967_v20  ;;  %3696 = vst.msk [vmem:[%s16623_s1 + $0x36d0] sm:$0xff] %vm153_vm1, %v12967_v20 }
 0x373   :  { %3744 = vst.msk [vmem:[%s16623_s1 + $0x3810] sm:$0xff] %vm153_vm1, %v12967_v20  ;;  %3792 = vst.msk [vmem:[%s16623_s1 + $0x3850] sm:$0xff] %vm153_vm1, %v12967_v20 }
 0x374   :  { %3840 = vst.msk [vmem:[%s16623_s1 + $0x3990] sm:$0xff] %vm153_vm1, %v12967_v20  ;;  %3888 = vst.msk [vmem:[%s16623_s1 + $0x39d0] sm:$0xff] %vm153_vm1, %v12967_v20 }
 0x375   :  { %3936 = vst.msk [vmem:[%s16623_s1 + $0x3b10] sm:$0xff] %vm153_vm1, %v12967_v20  ;;  %3984 = vst.msk [vmem:[%s16623_s1 + $0x3b50] sm:$0xff] %vm153_vm1, %v12967_v20 }
 0x376   :  { %4032 = vst.msk [vmem:[%s16623_s1 + $0x3c90] sm:$0xff] %vm153_vm1, %v12967_v20  ;;  %4080 = vst.msk [vmem:[%s16623_s1 + $0x3cd0] sm:$0xff] %vm153_vm1, %v12967_v20 }
 0x377   :  { %4128 = vst.msk [vmem:[%s16623_s1 + $0x3e10] sm:$0xff] %vm153_vm1, %v12967_v20  ;;  %4176 = vst.msk [vmem:[%s16623_s1 + $0x3e50] sm:$0xff] %vm153_vm1, %v12967_v20 }
 0x378   :  { %4224 = vst.msk [vmem:[%s16623_s1 + $0x3f90] sm:$0xff] %vm153_vm1, %v12967_v20  ;;  %4272 = vst.msk [vmem:[%s16623_s1 + $0x3fd0] sm:$0xff] %vm153_vm1, %v12967_v20 }
 0x379   :  { %4320 = vst.msk [vmem:[%s16623_s1 + $0x4110] sm:$0xff] %vm153_vm1, %v12967_v20  ;;  %4368 = vst.msk [vmem:[%s16623_s1 + $0x4150] sm:$0xff] %vm153_vm1, %v12967_v20 }
 0x37a   :  { %4416 = vst.msk [vmem:[%s16623_s1 + $0x4290] sm:$0xff] %vm153_vm1, %v12967_v20  ;;  %4464 = vst.msk [vmem:[%s16623_s1 + $0x42d0] sm:$0xff] %vm153_vm1, %v12967_v20 }
 0x37b   :  { %4512 = vst.msk [vmem:[%s16623_s1 + $0x4410] sm:$0xff] %vm153_vm1, %v12967_v20  ;;  %4560 = vst.msk [vmem:[%s16623_s1 + $0x4450] sm:$0xff] %vm153_vm1, %v12967_v20 }
 0x37c   :  { %4608 = vst.msk [vmem:[%s16623_s1 + $0x4590] sm:$0xff] %vm153_vm1, %v12967_v20  ;;  %4656 = vst.msk [vmem:[%s16623_s1 + $0x45d0] sm:$0xff] %vm153_vm1, %v12967_v20 }
 0x37d   :  { %4704 = vst.msk [vmem:[%s16623_s1 + $0x4710] sm:$0xff] %vm153_vm1, %v12967_v20  ;;  %4752 = vst.msk [vmem:[%s16623_s1 + $0x4750] sm:$0xff] %vm153_vm1, %v12967_v20 }
 0x37e   :  { %191 = vst.msk [vmem:[%s16623_s1 + $0x24a0] sm:$0xff] %vm153_vm1, %v13213_v21  ;;  %2546 = vst.msk [vmem:[%s16623_s1 + $0x24e0] sm:$0xff] %vm153_vm1, %v13213_v21 }
 0x37f   :  { %2594 = vst.msk [vmem:[%s16623_s1 + $0x2620] sm:$0xff] %vm153_vm1, %v13213_v21  ;;  %2642 = vst.msk [vmem:[%s16623_s1 + $0x2660] sm:$0xff] %vm153_vm1, %v13213_v21 }
 0x380   :  { %2690 = vst.msk [vmem:[%s16623_s1 + $0x27a0] sm:$0xff] %vm153_vm1, %v13213_v21  ;;  %2738 = vst.msk [vmem:[%s16623_s1 + $0x27e0] sm:$0xff] %vm153_vm1, %v13213_v21 }
 0x381   :  { %2786 = vst.msk [vmem:[%s16623_s1 + $0x2920] sm:$0xff] %vm153_vm1, %v13213_v21  ;;  %2834 = vst.msk [vmem:[%s16623_s1 + $0x2960] sm:$0xff] %vm153_vm1, %v13213_v21 }
 0x382   :  { %2882 = vst.msk [vmem:[%s16623_s1 + $0x2aa0] sm:$0xff] %vm153_vm1, %v13213_v21  ;;  %2930 = vst.msk [vmem:[%s16623_s1 + $0x2ae0] sm:$0xff] %vm153_vm1, %v13213_v21 }
 0x383   :  { %2978 = vst.msk [vmem:[%s16623_s1 + $0x2c20] sm:$0xff] %vm153_vm1, %v13213_v21  ;;  %3026 = vst.msk [vmem:[%s16623_s1 + $0x2c60] sm:$0xff] %vm153_vm1, %v13213_v21 }
 0x384   :  { %3074 = vst.msk [vmem:[%s16623_s1 + $0x2da0] sm:$0xff] %vm153_vm1, %v13213_v21  ;;  %3122 = vst.msk [vmem:[%s16623_s1 + $0x2de0] sm:$0xff] %vm153_vm1, %v13213_v21 }
 0x385   :  { %3170 = vst.msk [vmem:[%s16623_s1 + $0x2f20] sm:$0xff] %vm153_vm1, %v13213_v21  ;;  %3218 = vst.msk [vmem:[%s16623_s1 + $0x2f60] sm:$0xff] %vm153_vm1, %v13213_v21 }
 0x386   :  { %3266 = vst.msk [vmem:[%s16623_s1 + $0x30a0] sm:$0xff] %vm153_vm1, %v13213_v21  ;;  %3314 = vst.msk [vmem:[%s16623_s1 + $0x30e0] sm:$0xff] %vm153_vm1, %v13213_v21 }
 0x387   :  { %3362 = vst.msk [vmem:[%s16623_s1 + $0x3220] sm:$0xff] %vm153_vm1, %v13213_v21  ;;  %3410 = vst.msk [vmem:[%s16623_s1 + $0x3260] sm:$0xff] %vm153_vm1, %v13213_v21 }
 0x388   :  { %3458 = vst.msk [vmem:[%s16623_s1 + $0x33a0] sm:$0xff] %vm153_vm1, %v13213_v21  ;;  %3506 = vst.msk [vmem:[%s16623_s1 + $0x33e0] sm:$0xff] %vm153_vm1, %v13213_v21 }
 0x389   :  { %3554 = vst.msk [vmem:[%s16623_s1 + $0x3520] sm:$0xff] %vm153_vm1, %v13213_v21  ;;  %3602 = vst.msk [vmem:[%s16623_s1 + $0x3560] sm:$0xff] %vm153_vm1, %v13213_v21 }
 0x38a   :  { %3650 = vst.msk [vmem:[%s16623_s1 + $0x36a0] sm:$0xff] %vm153_vm1, %v13213_v21  ;;  %3698 = vst.msk [vmem:[%s16623_s1 + $0x36e0] sm:$0xff] %vm153_vm1, %v13213_v21 }
 0x38b   :  { %3746 = vst.msk [vmem:[%s16623_s1 + $0x3820] sm:$0xff] %vm153_vm1, %v13213_v21  ;;  %3794 = vst.msk [vmem:[%s16623_s1 + $0x3860] sm:$0xff] %vm153_vm1, %v13213_v21 }
 0x38c   :  { %3842 = vst.msk [vmem:[%s16623_s1 + $0x39a0] sm:$0xff] %vm153_vm1, %v13213_v21  ;;  %3890 = vst.msk [vmem:[%s16623_s1 + $0x39e0] sm:$0xff] %vm153_vm1, %v13213_v21 }
 0x38d   :  { %3938 = vst.msk [vmem:[%s16623_s1 + $0x3b20] sm:$0xff] %vm153_vm1, %v13213_v21  ;;  %3986 = vst.msk [vmem:[%s16623_s1 + $0x3b60] sm:$0xff] %vm153_vm1, %v13213_v21 }
 0x38e   :  { %4034 = vst.msk [vmem:[%s16623_s1 + $0x3ca0] sm:$0xff] %vm153_vm1, %v13213_v21  ;;  %4082 = vst.msk [vmem:[%s16623_s1 + $0x3ce0] sm:$0xff] %vm153_vm1, %v13213_v21 }
 0x38f   :  { %4130 = vst.msk [vmem:[%s16623_s1 + $0x3e20] sm:$0xff] %vm153_vm1, %v13213_v21  ;;  %4178 = vst.msk [vmem:[%s16623_s1 + $0x3e60] sm:$0xff] %vm153_vm1, %v13213_v21 }
 0x390   :  { %4226 = vst.msk [vmem:[%s16623_s1 + $0x3fa0] sm:$0xff] %vm153_vm1, %v13213_v21  ;;  %4274 = vst.msk [vmem:[%s16623_s1 + $0x3fe0] sm:$0xff] %vm153_vm1, %v13213_v21 }
 0x391   :  { %4322 = vst.msk [vmem:[%s16623_s1 + $0x4120] sm:$0xff] %vm153_vm1, %v13213_v21  ;;  %4370 = vst.msk [vmem:[%s16623_s1 + $0x4160] sm:$0xff] %vm153_vm1, %v13213_v21 }
 0x392   :  { %4418 = vst.msk [vmem:[%s16623_s1 + $0x42a0] sm:$0xff] %vm153_vm1, %v13213_v21  ;;  %4466 = vst.msk [vmem:[%s16623_s1 + $0x42e0] sm:$0xff] %vm153_vm1, %v13213_v21 }
 0x393   :  { %4514 = vst.msk [vmem:[%s16623_s1 + $0x4420] sm:$0xff] %vm153_vm1, %v13213_v21  ;;  %4562 = vst.msk [vmem:[%s16623_s1 + $0x4460] sm:$0xff] %vm153_vm1, %v13213_v21 }
 0x394   :  { %4610 = vst.msk [vmem:[%s16623_s1 + $0x45a0] sm:$0xff] %vm153_vm1, %v13213_v21  ;;  %4658 = vst.msk [vmem:[%s16623_s1 + $0x45e0] sm:$0xff] %vm153_vm1, %v13213_v21 }
 0x395   :  { %4706 = vst.msk [vmem:[%s16623_s1 + $0x4720] sm:$0xff] %vm153_vm1, %v13213_v21  ;;  %4754 = vst.msk [vmem:[%s16623_s1 + $0x4760] sm:$0xff] %vm153_vm1, %v13213_v21 }
 0x396   :  { %194 = vst.msk [vmem:[%s16623_s1 + $0x24b8] sm:$0x3] %vm155_vm2, %v12468_v15  ;;  %2549 = vst.msk [vmem:[%s16623_s1 + $0x24f8] sm:$0x3] %vm155_vm2, %v12468_v15 }
 0x397   :  { %2597 = vst.msk [vmem:[%s16623_s1 + $0x2638] sm:$0x3] %vm155_vm2, %v12468_v15  ;;  %2645 = vst.msk [vmem:[%s16623_s1 + $0x2678] sm:$0x3] %vm155_vm2, %v12468_v15 }
 0x398   :  { %2693 = vst.msk [vmem:[%s16623_s1 + $0x27b8] sm:$0x3] %vm155_vm2, %v12468_v15  ;;  %2741 = vst.msk [vmem:[%s16623_s1 + $0x27f8] sm:$0x3] %vm155_vm2, %v12468_v15 }
 0x399   :  { %2789 = vst.msk [vmem:[%s16623_s1 + $0x2938] sm:$0x3] %vm155_vm2, %v12468_v15  ;;  %2837 = vst.msk [vmem:[%s16623_s1 + $0x2978] sm:$0x3] %vm155_vm2, %v12468_v15 }
 0x39a   :  { %2885 = vst.msk [vmem:[%s16623_s1 + $0x2ab8] sm:$0x3] %vm155_vm2, %v12468_v15  ;;  %2933 = vst.msk [vmem:[%s16623_s1 + $0x2af8] sm:$0x3] %vm155_vm2, %v12468_v15 }
 0x39b   :  { %2981 = vst.msk [vmem:[%s16623_s1 + $0x2c38] sm:$0x3] %vm155_vm2, %v12468_v15  ;;  %3029 = vst.msk [vmem:[%s16623_s1 + $0x2c78] sm:$0x3] %vm155_vm2, %v12468_v15 }
 0x39c   :  { %3077 = vst.msk [vmem:[%s16623_s1 + $0x2db8] sm:$0x3] %vm155_vm2, %v12468_v15  ;;  %3125 = vst.msk [vmem:[%s16623_s1 + $0x2df8] sm:$0x3] %vm155_vm2, %v12468_v15 }
 0x39d   :  { %3173 = vst.msk [vmem:[%s16623_s1 + $0x2f38] sm:$0x3] %vm155_vm2, %v12468_v15  ;;  %3221 = vst.msk [vmem:[%s16623_s1 + $0x2f78] sm:$0x3] %vm155_vm2, %v12468_v15 }
 0x39e   :  { %3269 = vst.msk [vmem:[%s16623_s1 + $0x30b8] sm:$0x3] %vm155_vm2, %v12468_v15  ;;  %3317 = vst.msk [vmem:[%s16623_s1 + $0x30f8] sm:$0x3] %vm155_vm2, %v12468_v15 }
 0x39f   :  { %3365 = vst.msk [vmem:[%s16623_s1 + $0x3238] sm:$0x3] %vm155_vm2, %v12468_v15  ;;  %3413 = vst.msk [vmem:[%s16623_s1 + $0x3278] sm:$0x3] %vm155_vm2, %v12468_v15 }
 0x3a0   :  { %3461 = vst.msk [vmem:[%s16623_s1 + $0x33b8] sm:$0x3] %vm155_vm2, %v12468_v15  ;;  %3509 = vst.msk [vmem:[%s16623_s1 + $0x33f8] sm:$0x3] %vm155_vm2, %v12468_v15 }
 0x3a1   :  { %3557 = vst.msk [vmem:[%s16623_s1 + $0x3538] sm:$0x3] %vm155_vm2, %v12468_v15  ;;  %3605 = vst.msk [vmem:[%s16623_s1 + $0x3578] sm:$0x3] %vm155_vm2, %v12468_v15 }
 0x3a2   :  { %3653 = vst.msk [vmem:[%s16623_s1 + $0x36b8] sm:$0x3] %vm155_vm2, %v12468_v15  ;;  %3701 = vst.msk [vmem:[%s16623_s1 + $0x36f8] sm:$0x3] %vm155_vm2, %v12468_v15 }
 0x3a3   :  { %3749 = vst.msk [vmem:[%s16623_s1 + $0x3838] sm:$0x3] %vm155_vm2, %v12468_v15  ;;  %3797 = vst.msk [vmem:[%s16623_s1 + $0x3878] sm:$0x3] %vm155_vm2, %v12468_v15 }
 0x3a4   :  { %3845 = vst.msk [vmem:[%s16623_s1 + $0x39b8] sm:$0x3] %vm155_vm2, %v12468_v15  ;;  %3893 = vst.msk [vmem:[%s16623_s1 + $0x39f8] sm:$0x3] %vm155_vm2, %v12468_v15 }
 0x3a5   :  { %3941 = vst.msk [vmem:[%s16623_s1 + $0x3b38] sm:$0x3] %vm155_vm2, %v12468_v15  ;;  %3989 = vst.msk [vmem:[%s16623_s1 + $0x3b78] sm:$0x3] %vm155_vm2, %v12468_v15 }
 0x3a6   :  { %4037 = vst.msk [vmem:[%s16623_s1 + $0x3cb8] sm:$0x3] %vm155_vm2, %v12468_v15  ;;  %4085 = vst.msk [vmem:[%s16623_s1 + $0x3cf8] sm:$0x3] %vm155_vm2, %v12468_v15 }
 0x3a7   :  { %4133 = vst.msk [vmem:[%s16623_s1 + $0x3e38] sm:$0x3] %vm155_vm2, %v12468_v15  ;;  %4181 = vst.msk [vmem:[%s16623_s1 + $0x3e78] sm:$0x3] %vm155_vm2, %v12468_v15 }
 0x3a8   :  { %4229 = vst.msk [vmem:[%s16623_s1 + $0x3fb8] sm:$0x3] %vm155_vm2, %v12468_v15  ;;  %4277 = vst.msk [vmem:[%s16623_s1 + $0x3ff8] sm:$0x3] %vm155_vm2, %v12468_v15 }
 0x3a9   :  { %4325 = vst.msk [vmem:[%s16623_s1 + $0x4138] sm:$0x3] %vm155_vm2, %v12468_v15  ;;  %4373 = vst.msk [vmem:[%s16623_s1 + $0x4178] sm:$0x3] %vm155_vm2, %v12468_v15 }
 0x3aa   :  { %4421 = vst.msk [vmem:[%s16623_s1 + $0x42b8] sm:$0x3] %vm155_vm2, %v12468_v15  ;;  %4469 = vst.msk [vmem:[%s16623_s1 + $0x42f8] sm:$0x3] %vm155_vm2, %v12468_v15 }
 0x3ab   :  { %4517 = vst.msk [vmem:[%s16623_s1 + $0x4438] sm:$0x3] %vm155_vm2, %v12468_v15  ;;  %4565 = vst.msk [vmem:[%s16623_s1 + $0x4478] sm:$0x3] %vm155_vm2, %v12468_v15 }
 0x3ac   :  { %4613 = vst.msk [vmem:[%s16623_s1 + $0x45b8] sm:$0x3] %vm155_vm2, %v12468_v15  ;;  %4661 = vst.msk [vmem:[%s16623_s1 + $0x45f8] sm:$0x3] %vm155_vm2, %v12468_v15 }
 0x3ad   :  { %4709 = vst.msk [vmem:[%s16623_s1 + $0x4738] sm:$0x3] %vm155_vm2, %v12468_v15  ;;  %4757 = vst.msk [vmem:[%s16623_s1 + $0x4778] sm:$0x3] %vm155_vm2, %v12468_v15 }
 0x3ae   :  { %193 = vst.msk [vmem:[%s16623_s1 + $0x24b0] sm:$0xff] %vm153_vm1, %v14183_v23  ;;  %2548 = vst.msk [vmem:[%s16623_s1 + $0x24f0] sm:$0xff] %vm153_vm1, %v14183_v23 }
 0x3af   :  { %2596 = vst.msk [vmem:[%s16623_s1 + $0x2630] sm:$0xff] %vm153_vm1, %v14183_v23  ;;  %2644 = vst.msk [vmem:[%s16623_s1 + $0x2670] sm:$0xff] %vm153_vm1, %v14183_v23 }
 0x3b0   :  { %2692 = vst.msk [vmem:[%s16623_s1 + $0x27b0] sm:$0xff] %vm153_vm1, %v14183_v23  ;;  %2740 = vst.msk [vmem:[%s16623_s1 + $0x27f0] sm:$0xff] %vm153_vm1, %v14183_v23 }
 0x3b1   :  { %2788 = vst.msk [vmem:[%s16623_s1 + $0x2930] sm:$0xff] %vm153_vm1, %v14183_v23  ;;  %2836 = vst.msk [vmem:[%s16623_s1 + $0x2970] sm:$0xff] %vm153_vm1, %v14183_v23 }
 0x3b2   :  { %2884 = vst.msk [vmem:[%s16623_s1 + $0x2ab0] sm:$0xff] %vm153_vm1, %v14183_v23  ;;  %2932 = vst.msk [vmem:[%s16623_s1 + $0x2af0] sm:$0xff] %vm153_vm1, %v14183_v23 }
 0x3b3   :  { %2980 = vst.msk [vmem:[%s16623_s1 + $0x2c30] sm:$0xff] %vm153_vm1, %v14183_v23  ;;  %3028 = vst.msk [vmem:[%s16623_s1 + $0x2c70] sm:$0xff] %vm153_vm1, %v14183_v23 }
 0x3b4   :  { %3076 = vst.msk [vmem:[%s16623_s1 + $0x2db0] sm:$0xff] %vm153_vm1, %v14183_v23  ;;  %3124 = vst.msk [vmem:[%s16623_s1 + $0x2df0] sm:$0xff] %vm153_vm1, %v14183_v23 }
 0x3b5   :  { %3172 = vst.msk [vmem:[%s16623_s1 + $0x2f30] sm:$0xff] %vm153_vm1, %v14183_v23  ;;  %3220 = vst.msk [vmem:[%s16623_s1 + $0x2f70] sm:$0xff] %vm153_vm1, %v14183_v23 }
 0x3b6   :  { %3268 = vst.msk [vmem:[%s16623_s1 + $0x30b0] sm:$0xff] %vm153_vm1, %v14183_v23  ;;  %3316 = vst.msk [vmem:[%s16623_s1 + $0x30f0] sm:$0xff] %vm153_vm1, %v14183_v23 }
 0x3b7   :  { %3364 = vst.msk [vmem:[%s16623_s1 + $0x3230] sm:$0xff] %vm153_vm1, %v14183_v23  ;;  %3412 = vst.msk [vmem:[%s16623_s1 + $0x3270] sm:$0xff] %vm153_vm1, %v14183_v23 }
 0x3b8   :  { %3460 = vst.msk [vmem:[%s16623_s1 + $0x33b0] sm:$0xff] %vm153_vm1, %v14183_v23  ;;  %3508 = vst.msk [vmem:[%s16623_s1 + $0x33f0] sm:$0xff] %vm153_vm1, %v14183_v23 }
 0x3b9   :  { %3556 = vst.msk [vmem:[%s16623_s1 + $0x3530] sm:$0xff] %vm153_vm1, %v14183_v23  ;;  %3604 = vst.msk [vmem:[%s16623_s1 + $0x3570] sm:$0xff] %vm153_vm1, %v14183_v23 }
 0x3ba   :  { %3652 = vst.msk [vmem:[%s16623_s1 + $0x36b0] sm:$0xff] %vm153_vm1, %v14183_v23  ;;  %3700 = vst.msk [vmem:[%s16623_s1 + $0x36f0] sm:$0xff] %vm153_vm1, %v14183_v23 }
 0x3bb   :  { %3748 = vst.msk [vmem:[%s16623_s1 + $0x3830] sm:$0xff] %vm153_vm1, %v14183_v23  ;;  %3796 = vst.msk [vmem:[%s16623_s1 + $0x3870] sm:$0xff] %vm153_vm1, %v14183_v23 }
 0x3bc   :  { %3844 = vst.msk [vmem:[%s16623_s1 + $0x39b0] sm:$0xff] %vm153_vm1, %v14183_v23  ;;  %3892 = vst.msk [vmem:[%s16623_s1 + $0x39f0] sm:$0xff] %vm153_vm1, %v14183_v23 }
 0x3bd   :  { %3940 = vst.msk [vmem:[%s16623_s1 + $0x3b30] sm:$0xff] %vm153_vm1, %v14183_v23  ;;  %3988 = vst.msk [vmem:[%s16623_s1 + $0x3b70] sm:$0xff] %vm153_vm1, %v14183_v23 }
 0x3be   :  { %4036 = vst.msk [vmem:[%s16623_s1 + $0x3cb0] sm:$0xff] %vm153_vm1, %v14183_v23  ;;  %4084 = vst.msk [vmem:[%s16623_s1 + $0x3cf0] sm:$0xff] %vm153_vm1, %v14183_v23 }
 0x3bf   :  { %4132 = vst.msk [vmem:[%s16623_s1 + $0x3e30] sm:$0xff] %vm153_vm1, %v14183_v23  ;;  %4180 = vst.msk [vmem:[%s16623_s1 + $0x3e70] sm:$0xff] %vm153_vm1, %v14183_v23 }
 0x3c0   :  { %4228 = vst.msk [vmem:[%s16623_s1 + $0x3fb0] sm:$0xff] %vm153_vm1, %v14183_v23  ;;  %4276 = vst.msk [vmem:[%s16623_s1 + $0x3ff0] sm:$0xff] %vm153_vm1, %v14183_v23 }
 0x3c1   :  { %4324 = vst.msk [vmem:[%s16623_s1 + $0x4130] sm:$0xff] %vm153_vm1, %v14183_v23  ;;  %4372 = vst.msk [vmem:[%s16623_s1 + $0x4170] sm:$0xff] %vm153_vm1, %v14183_v23 }
 0x3c2   :  { %4420 = vst.msk [vmem:[%s16623_s1 + $0x42b0] sm:$0xff] %vm153_vm1, %v14183_v23  ;;  %4468 = vst.msk [vmem:[%s16623_s1 + $0x42f0] sm:$0xff] %vm153_vm1, %v14183_v23 }
 0x3c3   :  { %4516 = vst.msk [vmem:[%s16623_s1 + $0x4430] sm:$0xff] %vm153_vm1, %v14183_v23  ;;  %4564 = vst.msk [vmem:[%s16623_s1 + $0x4470] sm:$0xff] %vm153_vm1, %v14183_v23 }
 0x3c4   :  { %4612 = vst.msk [vmem:[%s16623_s1 + $0x45b0] sm:$0xff] %vm153_vm1, %v14183_v23  ;;  %4660 = vst.msk [vmem:[%s16623_s1 + $0x45f0] sm:$0xff] %vm153_vm1, %v14183_v23 }
 0x3c5   :  { %4708 = vst.msk [vmem:[%s16623_s1 + $0x4730] sm:$0xff] %vm153_vm1, %v14183_v23  ;;  %4756 = vst.msk [vmem:[%s16623_s1 + $0x4770] sm:$0xff] %vm153_vm1, %v14183_v23 }
 0x3c6   :  { %196 = vst.msk [vmem:[%s16623_s1 + $0x2508] sm:$0x3] %vm155_vm2, %v13457_v22  ;;  %2551 = vst.msk [vmem:[%s16623_s1 + $0x2548] sm:$0x3] %vm155_vm2, %v13457_v22 }
 0x3c7   :  { %2599 = vst.msk [vmem:[%s16623_s1 + $0x2688] sm:$0x3] %vm155_vm2, %v13457_v22  ;;  %2647 = vst.msk [vmem:[%s16623_s1 + $0x26c8] sm:$0x3] %vm155_vm2, %v13457_v22 }
 0x3c8   :  { %2695 = vst.msk [vmem:[%s16623_s1 + $0x2808] sm:$0x3] %vm155_vm2, %v13457_v22  ;;  %2743 = vst.msk [vmem:[%s16623_s1 + $0x2848] sm:$0x3] %vm155_vm2, %v13457_v22 }
 0x3c9   :  { %2791 = vst.msk [vmem:[%s16623_s1 + $0x2988] sm:$0x3] %vm155_vm2, %v13457_v22  ;;  %2839 = vst.msk [vmem:[%s16623_s1 + $0x29c8] sm:$0x3] %vm155_vm2, %v13457_v22 }
 0x3ca   :  { %2887 = vst.msk [vmem:[%s16623_s1 + $0x2b08] sm:$0x3] %vm155_vm2, %v13457_v22  ;;  %2935 = vst.msk [vmem:[%s16623_s1 + $0x2b48] sm:$0x3] %vm155_vm2, %v13457_v22 }
 0x3cb   :  { %2983 = vst.msk [vmem:[%s16623_s1 + $0x2c88] sm:$0x3] %vm155_vm2, %v13457_v22  ;;  %3031 = vst.msk [vmem:[%s16623_s1 + $0x2cc8] sm:$0x3] %vm155_vm2, %v13457_v22 }
 0x3cc   :  { %3079 = vst.msk [vmem:[%s16623_s1 + $0x2e08] sm:$0x3] %vm155_vm2, %v13457_v22  ;;  %3127 = vst.msk [vmem:[%s16623_s1 + $0x2e48] sm:$0x3] %vm155_vm2, %v13457_v22 }
 0x3cd   :  { %3175 = vst.msk [vmem:[%s16623_s1 + $0x2f88] sm:$0x3] %vm155_vm2, %v13457_v22  ;;  %3223 = vst.msk [vmem:[%s16623_s1 + $0x2fc8] sm:$0x3] %vm155_vm2, %v13457_v22 }
 0x3ce   :  { %3271 = vst.msk [vmem:[%s16623_s1 + $0x3108] sm:$0x3] %vm155_vm2, %v13457_v22  ;;  %3319 = vst.msk [vmem:[%s16623_s1 + $0x3148] sm:$0x3] %vm155_vm2, %v13457_v22 }
 0x3cf   :  { %3367 = vst.msk [vmem:[%s16623_s1 + $0x3288] sm:$0x3] %vm155_vm2, %v13457_v22  ;;  %3415 = vst.msk [vmem:[%s16623_s1 + $0x32c8] sm:$0x3] %vm155_vm2, %v13457_v22 }
 0x3d0   :  { %3463 = vst.msk [vmem:[%s16623_s1 + $0x3408] sm:$0x3] %vm155_vm2, %v13457_v22  ;;  %3511 = vst.msk [vmem:[%s16623_s1 + $0x3448] sm:$0x3] %vm155_vm2, %v13457_v22 }
 0x3d1   :  { %3559 = vst.msk [vmem:[%s16623_s1 + $0x3588] sm:$0x3] %vm155_vm2, %v13457_v22  ;;  %3607 = vst.msk [vmem:[%s16623_s1 + $0x35c8] sm:$0x3] %vm155_vm2, %v13457_v22 }
 0x3d2   :  { %3655 = vst.msk [vmem:[%s16623_s1 + $0x3708] sm:$0x3] %vm155_vm2, %v13457_v22  ;;  %3703 = vst.msk [vmem:[%s16623_s1 + $0x3748] sm:$0x3] %vm155_vm2, %v13457_v22 }
 0x3d3   :  { %3751 = vst.msk [vmem:[%s16623_s1 + $0x3888] sm:$0x3] %vm155_vm2, %v13457_v22  ;;  %3799 = vst.msk [vmem:[%s16623_s1 + $0x38c8] sm:$0x3] %vm155_vm2, %v13457_v22 }
 0x3d4   :  { %3847 = vst.msk [vmem:[%s16623_s1 + $0x3a08] sm:$0x3] %vm155_vm2, %v13457_v22  ;;  %3895 = vst.msk [vmem:[%s16623_s1 + $0x3a48] sm:$0x3] %vm155_vm2, %v13457_v22 }
 0x3d5   :  { %3943 = vst.msk [vmem:[%s16623_s1 + $0x3b88] sm:$0x3] %vm155_vm2, %v13457_v22  ;;  %3991 = vst.msk [vmem:[%s16623_s1 + $0x3bc8] sm:$0x3] %vm155_vm2, %v13457_v22 }
 0x3d6   :  { %4039 = vst.msk [vmem:[%s16623_s1 + $0x3d08] sm:$0x3] %vm155_vm2, %v13457_v22  ;;  %4087 = vst.msk [vmem:[%s16623_s1 + $0x3d48] sm:$0x3] %vm155_vm2, %v13457_v22 }
 0x3d7   :  { %4135 = vst.msk [vmem:[%s16623_s1 + $0x3e88] sm:$0x3] %vm155_vm2, %v13457_v22  ;;  %4183 = vst.msk [vmem:[%s16623_s1 + $0x3ec8] sm:$0x3] %vm155_vm2, %v13457_v22 }
 0x3d8   :  { %4231 = vst.msk [vmem:[%s16623_s1 + $0x4008] sm:$0x3] %vm155_vm2, %v13457_v22  ;;  %4279 = vst.msk [vmem:[%s16623_s1 + $0x4048] sm:$0x3] %vm155_vm2, %v13457_v22 }
 0x3d9   :  { %4327 = vst.msk [vmem:[%s16623_s1 + $0x4188] sm:$0x3] %vm155_vm2, %v13457_v22  ;;  %4375 = vst.msk [vmem:[%s16623_s1 + $0x41c8] sm:$0x3] %vm155_vm2, %v13457_v22 }
 0x3da   :  { %4423 = vst.msk [vmem:[%s16623_s1 + $0x4308] sm:$0x3] %vm155_vm2, %v13457_v22  ;;  %4471 = vst.msk [vmem:[%s16623_s1 + $0x4348] sm:$0x3] %vm155_vm2, %v13457_v22 }
 0x3db   :  { %4519 = vst.msk [vmem:[%s16623_s1 + $0x4488] sm:$0x3] %vm155_vm2, %v13457_v22  ;;  %4567 = vst.msk [vmem:[%s16623_s1 + $0x44c8] sm:$0x3] %vm155_vm2, %v13457_v22 }
 0x3dc   :  { %4615 = vst.msk [vmem:[%s16623_s1 + $0x4608] sm:$0x3] %vm155_vm2, %v13457_v22  ;;  %4663 = vst.msk [vmem:[%s16623_s1 + $0x4648] sm:$0x3] %vm155_vm2, %v13457_v22 }
 0x3dd   :  { %4711 = vst.msk [vmem:[%s16623_s1 + $0x4788] sm:$0x3] %vm155_vm2, %v13457_v22  ;;  %4759 = vst.msk [vmem:[%s16623_s1 + $0x47c8] sm:$0x3] %vm155_vm2, %v13457_v22 }
 0x3de   :  { %195 = vst.msk [vmem:[%s16623_s1 + $0x2500] sm:$0xff] %vm153_vm1, %v14678_v27  ;;  %2550 = vst.msk [vmem:[%s16623_s1 + $0x2540] sm:$0xff] %vm153_vm1, %v14678_v27 }
 0x3df   :  { %2598 = vst.msk [vmem:[%s16623_s1 + $0x2680] sm:$0xff] %vm153_vm1, %v14678_v27  ;;  %2646 = vst.msk [vmem:[%s16623_s1 + $0x26c0] sm:$0xff] %vm153_vm1, %v14678_v27 }
 0x3e0   :  { %2694 = vst.msk [vmem:[%s16623_s1 + $0x2800] sm:$0xff] %vm153_vm1, %v14678_v27  ;;  %2742 = vst.msk [vmem:[%s16623_s1 + $0x2840] sm:$0xff] %vm153_vm1, %v14678_v27 }
 0x3e1   :  { %2790 = vst.msk [vmem:[%s16623_s1 + $0x2980] sm:$0xff] %vm153_vm1, %v14678_v27  ;;  %2838 = vst.msk [vmem:[%s16623_s1 + $0x29c0] sm:$0xff] %vm153_vm1, %v14678_v27 }
 0x3e2   :  { %2886 = vst.msk [vmem:[%s16623_s1 + $0x2b00] sm:$0xff] %vm153_vm1, %v14678_v27  ;;  %2934 = vst.msk [vmem:[%s16623_s1 + $0x2b40] sm:$0xff] %vm153_vm1, %v14678_v27 }
 0x3e3   :  { %2982 = vst.msk [vmem:[%s16623_s1 + $0x2c80] sm:$0xff] %vm153_vm1, %v14678_v27  ;;  %3030 = vst.msk [vmem:[%s16623_s1 + $0x2cc0] sm:$0xff] %vm153_vm1, %v14678_v27 }
 0x3e4   :  { %3078 = vst.msk [vmem:[%s16623_s1 + $0x2e00] sm:$0xff] %vm153_vm1, %v14678_v27  ;;  %3126 = vst.msk [vmem:[%s16623_s1 + $0x2e40] sm:$0xff] %vm153_vm1, %v14678_v27 }
 0x3e5   :  { %3174 = vst.msk [vmem:[%s16623_s1 + $0x2f80] sm:$0xff] %vm153_vm1, %v14678_v27  ;;  %3222 = vst.msk [vmem:[%s16623_s1 + $0x2fc0] sm:$0xff] %vm153_vm1, %v14678_v27 }
 0x3e6   :  { %3270 = vst.msk [vmem:[%s16623_s1 + $0x3100] sm:$0xff] %vm153_vm1, %v14678_v27  ;;  %3318 = vst.msk [vmem:[%s16623_s1 + $0x3140] sm:$0xff] %vm153_vm1, %v14678_v27 }
 0x3e7   :  { %3366 = vst.msk [vmem:[%s16623_s1 + $0x3280] sm:$0xff] %vm153_vm1, %v14678_v27  ;;  %3414 = vst.msk [vmem:[%s16623_s1 + $0x32c0] sm:$0xff] %vm153_vm1, %v14678_v27 }
 0x3e8   :  { %3462 = vst.msk [vmem:[%s16623_s1 + $0x3400] sm:$0xff] %vm153_vm1, %v14678_v27  ;;  %3510 = vst.msk [vmem:[%s16623_s1 + $0x3440] sm:$0xff] %vm153_vm1, %v14678_v27 }
 0x3e9   :  { %3558 = vst.msk [vmem:[%s16623_s1 + $0x3580] sm:$0xff] %vm153_vm1, %v14678_v27  ;;  %3606 = vst.msk [vmem:[%s16623_s1 + $0x35c0] sm:$0xff] %vm153_vm1, %v14678_v27 }
 0x3ea   :  { %3654 = vst.msk [vmem:[%s16623_s1 + $0x3700] sm:$0xff] %vm153_vm1, %v14678_v27  ;;  %3702 = vst.msk [vmem:[%s16623_s1 + $0x3740] sm:$0xff] %vm153_vm1, %v14678_v27 }
 0x3eb   :  { %3750 = vst.msk [vmem:[%s16623_s1 + $0x3880] sm:$0xff] %vm153_vm1, %v14678_v27  ;;  %3798 = vst.msk [vmem:[%s16623_s1 + $0x38c0] sm:$0xff] %vm153_vm1, %v14678_v27 }
 0x3ec   :  { %3846 = vst.msk [vmem:[%s16623_s1 + $0x3a00] sm:$0xff] %vm153_vm1, %v14678_v27  ;;  %3894 = vst.msk [vmem:[%s16623_s1 + $0x3a40] sm:$0xff] %vm153_vm1, %v14678_v27 }
 0x3ed   :  { %3942 = vst.msk [vmem:[%s16623_s1 + $0x3b80] sm:$0xff] %vm153_vm1, %v14678_v27  ;;  %3990 = vst.msk [vmem:[%s16623_s1 + $0x3bc0] sm:$0xff] %vm153_vm1, %v14678_v27 }
 0x3ee   :  { %4038 = vst.msk [vmem:[%s16623_s1 + $0x3d00] sm:$0xff] %vm153_vm1, %v14678_v27  ;;  %4086 = vst.msk [vmem:[%s16623_s1 + $0x3d40] sm:$0xff] %vm153_vm1, %v14678_v27 }
 0x3ef   :  { %4134 = vst.msk [vmem:[%s16623_s1 + $0x3e80] sm:$0xff] %vm153_vm1, %v14678_v27  ;;  %4182 = vst.msk [vmem:[%s16623_s1 + $0x3ec0] sm:$0xff] %vm153_vm1, %v14678_v27 }
 0x3f0   :  { %4230 = vst.msk [vmem:[%s16623_s1 + $0x4000] sm:$0xff] %vm153_vm1, %v14678_v27  ;;  %4278 = vst.msk [vmem:[%s16623_s1 + $0x4040] sm:$0xff] %vm153_vm1, %v14678_v27 }
 0x3f1   :  { %4326 = vst.msk [vmem:[%s16623_s1 + $0x4180] sm:$0xff] %vm153_vm1, %v14678_v27  ;;  %4374 = vst.msk [vmem:[%s16623_s1 + $0x41c0] sm:$0xff] %vm153_vm1, %v14678_v27 }
 0x3f2   :  { %4422 = vst.msk [vmem:[%s16623_s1 + $0x4300] sm:$0xff] %vm153_vm1, %v14678_v27  ;;  %4470 = vst.msk [vmem:[%s16623_s1 + $0x4340] sm:$0xff] %vm153_vm1, %v14678_v27 }
 0x3f3   :  { %4518 = vst.msk [vmem:[%s16623_s1 + $0x4480] sm:$0xff] %vm153_vm1, %v14678_v27  ;;  %4566 = vst.msk [vmem:[%s16623_s1 + $0x44c0] sm:$0xff] %vm153_vm1, %v14678_v27 }
 0x3f4   :  { %4614 = vst.msk [vmem:[%s16623_s1 + $0x4600] sm:$0xff] %vm153_vm1, %v14678_v27  ;;  %4662 = vst.msk [vmem:[%s16623_s1 + $0x4640] sm:$0xff] %vm153_vm1, %v14678_v27 }
 0x3f5   :  { %4710 = vst.msk [vmem:[%s16623_s1 + $0x4780] sm:$0xff] %vm153_vm1, %v14678_v27  ;;  %4758 = vst.msk [vmem:[%s16623_s1 + $0x47c0] sm:$0xff] %vm153_vm1, %v14678_v27 }
 0x3f6   :  { %198 = vst.msk [vmem:[%s16623_s1 + $0x2518] sm:$0x3] %vm155_vm2, %v14427_v24  ;;  %2553 = vst.msk [vmem:[%s16623_s1 + $0x2558] sm:$0x3] %vm155_vm2, %v14427_v24 }
 0x3f7   :  { %2601 = vst.msk [vmem:[%s16623_s1 + $0x2698] sm:$0x3] %vm155_vm2, %v14427_v24  ;;  %2649 = vst.msk [vmem:[%s16623_s1 + $0x26d8] sm:$0x3] %vm155_vm2, %v14427_v24 }
 0x3f8   :  { %2697 = vst.msk [vmem:[%s16623_s1 + $0x2818] sm:$0x3] %vm155_vm2, %v14427_v24  ;;  %2745 = vst.msk [vmem:[%s16623_s1 + $0x2858] sm:$0x3] %vm155_vm2, %v14427_v24 }
 0x3f9   :  { %2793 = vst.msk [vmem:[%s16623_s1 + $0x2998] sm:$0x3] %vm155_vm2, %v14427_v24  ;;  %2841 = vst.msk [vmem:[%s16623_s1 + $0x29d8] sm:$0x3] %vm155_vm2, %v14427_v24 }
 0x3fa   :  { %2889 = vst.msk [vmem:[%s16623_s1 + $0x2b18] sm:$0x3] %vm155_vm2, %v14427_v24  ;;  %2937 = vst.msk [vmem:[%s16623_s1 + $0x2b58] sm:$0x3] %vm155_vm2, %v14427_v24 }
 0x3fb   :  { %2985 = vst.msk [vmem:[%s16623_s1 + $0x2c98] sm:$0x3] %vm155_vm2, %v14427_v24  ;;  %3033 = vst.msk [vmem:[%s16623_s1 + $0x2cd8] sm:$0x3] %vm155_vm2, %v14427_v24 }
 0x3fc   :  { %3081 = vst.msk [vmem:[%s16623_s1 + $0x2e18] sm:$0x3] %vm155_vm2, %v14427_v24  ;;  %3129 = vst.msk [vmem:[%s16623_s1 + $0x2e58] sm:$0x3] %vm155_vm2, %v14427_v24 }
 0x3fd   :  { %3177 = vst.msk [vmem:[%s16623_s1 + $0x2f98] sm:$0x3] %vm155_vm2, %v14427_v24  ;;  %3225 = vst.msk [vmem:[%s16623_s1 + $0x2fd8] sm:$0x3] %vm155_vm2, %v14427_v24 }
 0x3fe   :  { %3273 = vst.msk [vmem:[%s16623_s1 + $0x3118] sm:$0x3] %vm155_vm2, %v14427_v24  ;;  %3321 = vst.msk [vmem:[%s16623_s1 + $0x3158] sm:$0x3] %vm155_vm2, %v14427_v24 }
 0x3ff   :  { %3369 = vst.msk [vmem:[%s16623_s1 + $0x3298] sm:$0x3] %vm155_vm2, %v14427_v24  ;;  %3417 = vst.msk [vmem:[%s16623_s1 + $0x32d8] sm:$0x3] %vm155_vm2, %v14427_v24 }
 0x400   :  { %3465 = vst.msk [vmem:[%s16623_s1 + $0x3418] sm:$0x3] %vm155_vm2, %v14427_v24  ;;  %3513 = vst.msk [vmem:[%s16623_s1 + $0x3458] sm:$0x3] %vm155_vm2, %v14427_v24 }
 0x401   :  { %3561 = vst.msk [vmem:[%s16623_s1 + $0x3598] sm:$0x3] %vm155_vm2, %v14427_v24  ;;  %3609 = vst.msk [vmem:[%s16623_s1 + $0x35d8] sm:$0x3] %vm155_vm2, %v14427_v24 }
 0x402   :  { %3657 = vst.msk [vmem:[%s16623_s1 + $0x3718] sm:$0x3] %vm155_vm2, %v14427_v24  ;;  %3705 = vst.msk [vmem:[%s16623_s1 + $0x3758] sm:$0x3] %vm155_vm2, %v14427_v24 }
 0x403   :  { %3753 = vst.msk [vmem:[%s16623_s1 + $0x3898] sm:$0x3] %vm155_vm2, %v14427_v24  ;;  %3801 = vst.msk [vmem:[%s16623_s1 + $0x38d8] sm:$0x3] %vm155_vm2, %v14427_v24 }
 0x404   :  { %3849 = vst.msk [vmem:[%s16623_s1 + $0x3a18] sm:$0x3] %vm155_vm2, %v14427_v24  ;;  %3897 = vst.msk [vmem:[%s16623_s1 + $0x3a58] sm:$0x3] %vm155_vm2, %v14427_v24 }
 0x405   :  { %3945 = vst.msk [vmem:[%s16623_s1 + $0x3b98] sm:$0x3] %vm155_vm2, %v14427_v24  ;;  %3993 = vst.msk [vmem:[%s16623_s1 + $0x3bd8] sm:$0x3] %vm155_vm2, %v14427_v24 }
 0x406   :  { %4041 = vst.msk [vmem:[%s16623_s1 + $0x3d18] sm:$0x3] %vm155_vm2, %v14427_v24  ;;  %4089 = vst.msk [vmem:[%s16623_s1 + $0x3d58] sm:$0x3] %vm155_vm2, %v14427_v24 }
 0x407   :  { %4137 = vst.msk [vmem:[%s16623_s1 + $0x3e98] sm:$0x3] %vm155_vm2, %v14427_v24  ;;  %4185 = vst.msk [vmem:[%s16623_s1 + $0x3ed8] sm:$0x3] %vm155_vm2, %v14427_v24 }
 0x408   :  { %4233 = vst.msk [vmem:[%s16623_s1 + $0x4018] sm:$0x3] %vm155_vm2, %v14427_v24  ;;  %4281 = vst.msk [vmem:[%s16623_s1 + $0x4058] sm:$0x3] %vm155_vm2, %v14427_v24 }
 0x409   :  { %4329 = vst.msk [vmem:[%s16623_s1 + $0x4198] sm:$0x3] %vm155_vm2, %v14427_v24  ;;  %4377 = vst.msk [vmem:[%s16623_s1 + $0x41d8] sm:$0x3] %vm155_vm2, %v14427_v24 }
 0x40a   :  { %4425 = vst.msk [vmem:[%s16623_s1 + $0x4318] sm:$0x3] %vm155_vm2, %v14427_v24  ;;  %4473 = vst.msk [vmem:[%s16623_s1 + $0x4358] sm:$0x3] %vm155_vm2, %v14427_v24 }
 0x40b   :  { %4521 = vst.msk [vmem:[%s16623_s1 + $0x4498] sm:$0x3] %vm155_vm2, %v14427_v24  ;;  %4569 = vst.msk [vmem:[%s16623_s1 + $0x44d8] sm:$0x3] %vm155_vm2, %v14427_v24 }
 0x40c   :  { %4617 = vst.msk [vmem:[%s16623_s1 + $0x4618] sm:$0x3] %vm155_vm2, %v14427_v24  ;;  %4665 = vst.msk [vmem:[%s16623_s1 + $0x4658] sm:$0x3] %vm155_vm2, %v14427_v24 }
 0x40d   :  { %4713 = vst.msk [vmem:[%s16623_s1 + $0x4798] sm:$0x3] %vm155_vm2, %v14427_v24  ;;  %4761 = vst.msk [vmem:[%s16623_s1 + $0x47d8] sm:$0x3] %vm155_vm2, %v14427_v24 }
 0x40e   :  { %200 = vst.msk [vmem:[%s16623_s1 + $0x2528] sm:$0x3] %vm155_vm2, %v14431_v25  ;;  %2555 = vst.msk [vmem:[%s16623_s1 + $0x2568] sm:$0x3] %vm155_vm2, %v14431_v25 }
 0x40f   :  { %2603 = vst.msk [vmem:[%s16623_s1 + $0x26a8] sm:$0x3] %vm155_vm2, %v14431_v25  ;;  %2651 = vst.msk [vmem:[%s16623_s1 + $0x26e8] sm:$0x3] %vm155_vm2, %v14431_v25 }
 0x410   :  { %2699 = vst.msk [vmem:[%s16623_s1 + $0x2828] sm:$0x3] %vm155_vm2, %v14431_v25  ;;  %2747 = vst.msk [vmem:[%s16623_s1 + $0x2868] sm:$0x3] %vm155_vm2, %v14431_v25 }
 0x411   :  { %2795 = vst.msk [vmem:[%s16623_s1 + $0x29a8] sm:$0x3] %vm155_vm2, %v14431_v25  ;;  %2843 = vst.msk [vmem:[%s16623_s1 + $0x29e8] sm:$0x3] %vm155_vm2, %v14431_v25 }
 0x412   :  { %2891 = vst.msk [vmem:[%s16623_s1 + $0x2b28] sm:$0x3] %vm155_vm2, %v14431_v25  ;;  %2939 = vst.msk [vmem:[%s16623_s1 + $0x2b68] sm:$0x3] %vm155_vm2, %v14431_v25 }
 0x413   :  { %2987 = vst.msk [vmem:[%s16623_s1 + $0x2ca8] sm:$0x3] %vm155_vm2, %v14431_v25  ;;  %3035 = vst.msk [vmem:[%s16623_s1 + $0x2ce8] sm:$0x3] %vm155_vm2, %v14431_v25 }
 0x414   :  { %3083 = vst.msk [vmem:[%s16623_s1 + $0x2e28] sm:$0x3] %vm155_vm2, %v14431_v25  ;;  %3131 = vst.msk [vmem:[%s16623_s1 + $0x2e68] sm:$0x3] %vm155_vm2, %v14431_v25 }
 0x415   :  { %3179 = vst.msk [vmem:[%s16623_s1 + $0x2fa8] sm:$0x3] %vm155_vm2, %v14431_v25  ;;  %3227 = vst.msk [vmem:[%s16623_s1 + $0x2fe8] sm:$0x3] %vm155_vm2, %v14431_v25 }
 0x416   :  { %3275 = vst.msk [vmem:[%s16623_s1 + $0x3128] sm:$0x3] %vm155_vm2, %v14431_v25  ;;  %3323 = vst.msk [vmem:[%s16623_s1 + $0x3168] sm:$0x3] %vm155_vm2, %v14431_v25 }
 0x417   :  { %3371 = vst.msk [vmem:[%s16623_s1 + $0x32a8] sm:$0x3] %vm155_vm2, %v14431_v25  ;;  %3419 = vst.msk [vmem:[%s16623_s1 + $0x32e8] sm:$0x3] %vm155_vm2, %v14431_v25 }
 0x418   :  { %3467 = vst.msk [vmem:[%s16623_s1 + $0x3428] sm:$0x3] %vm155_vm2, %v14431_v25  ;;  %3515 = vst.msk [vmem:[%s16623_s1 + $0x3468] sm:$0x3] %vm155_vm2, %v14431_v25 }
 0x419   :  { %3563 = vst.msk [vmem:[%s16623_s1 + $0x35a8] sm:$0x3] %vm155_vm2, %v14431_v25  ;;  %3611 = vst.msk [vmem:[%s16623_s1 + $0x35e8] sm:$0x3] %vm155_vm2, %v14431_v25 }
 0x41a   :  { %3659 = vst.msk [vmem:[%s16623_s1 + $0x3728] sm:$0x3] %vm155_vm2, %v14431_v25  ;;  %3707 = vst.msk [vmem:[%s16623_s1 + $0x3768] sm:$0x3] %vm155_vm2, %v14431_v25 }
 0x41b   :  { %3755 = vst.msk [vmem:[%s16623_s1 + $0x38a8] sm:$0x3] %vm155_vm2, %v14431_v25  ;;  %3803 = vst.msk [vmem:[%s16623_s1 + $0x38e8] sm:$0x3] %vm155_vm2, %v14431_v25 }
 0x41c   :  { %3851 = vst.msk [vmem:[%s16623_s1 + $0x3a28] sm:$0x3] %vm155_vm2, %v14431_v25  ;;  %3899 = vst.msk [vmem:[%s16623_s1 + $0x3a68] sm:$0x3] %vm155_vm2, %v14431_v25 }
 0x41d   :  { %3947 = vst.msk [vmem:[%s16623_s1 + $0x3ba8] sm:$0x3] %vm155_vm2, %v14431_v25  ;;  %3995 = vst.msk [vmem:[%s16623_s1 + $0x3be8] sm:$0x3] %vm155_vm2, %v14431_v25 }
 0x41e   :  { %4043 = vst.msk [vmem:[%s16623_s1 + $0x3d28] sm:$0x3] %vm155_vm2, %v14431_v25  ;;  %4091 = vst.msk [vmem:[%s16623_s1 + $0x3d68] sm:$0x3] %vm155_vm2, %v14431_v25 }
 0x41f   :  { %4139 = vst.msk [vmem:[%s16623_s1 + $0x3ea8] sm:$0x3] %vm155_vm2, %v14431_v25  ;;  %4187 = vst.msk [vmem:[%s16623_s1 + $0x3ee8] sm:$0x3] %vm155_vm2, %v14431_v25 }
 0x420   :  { %4235 = vst.msk [vmem:[%s16623_s1 + $0x4028] sm:$0x3] %vm155_vm2, %v14431_v25  ;;  %4283 = vst.msk [vmem:[%s16623_s1 + $0x4068] sm:$0x3] %vm155_vm2, %v14431_v25 }
 0x421   :  { %4331 = vst.msk [vmem:[%s16623_s1 + $0x41a8] sm:$0x3] %vm155_vm2, %v14431_v25  ;;  %4379 = vst.msk [vmem:[%s16623_s1 + $0x41e8] sm:$0x3] %vm155_vm2, %v14431_v25 }
 0x422   :  { %4427 = vst.msk [vmem:[%s16623_s1 + $0x4328] sm:$0x3] %vm155_vm2, %v14431_v25  ;;  %4475 = vst.msk [vmem:[%s16623_s1 + $0x4368] sm:$0x3] %vm155_vm2, %v14431_v25 }
 0x423   :  { %4523 = vst.msk [vmem:[%s16623_s1 + $0x44a8] sm:$0x3] %vm155_vm2, %v14431_v25  ;;  %4571 = vst.msk [vmem:[%s16623_s1 + $0x44e8] sm:$0x3] %vm155_vm2, %v14431_v25 }
 0x424   :  { %4619 = vst.msk [vmem:[%s16623_s1 + $0x4628] sm:$0x3] %vm155_vm2, %v14431_v25  ;;  %4667 = vst.msk [vmem:[%s16623_s1 + $0x4668] sm:$0x3] %vm155_vm2, %v14431_v25 }
 0x425   :  { %4715 = vst.msk [vmem:[%s16623_s1 + $0x47a8] sm:$0x3] %vm155_vm2, %v14431_v25  ;;  %4763 = vst.msk [vmem:[%s16623_s1 + $0x47e8] sm:$0x3] %vm155_vm2, %v14431_v25 }
 0x426   :  { %197 = vst.msk [vmem:[%s16623_s1 + $0x2510] sm:$0xff] %vm153_vm1, %v15164_v28  ;;  %2552 = vst.msk [vmem:[%s16623_s1 + $0x2550] sm:$0xff] %vm153_vm1, %v15164_v28 }
 0x427   :  { %2600 = vst.msk [vmem:[%s16623_s1 + $0x2690] sm:$0xff] %vm153_vm1, %v15164_v28  ;;  %2648 = vst.msk [vmem:[%s16623_s1 + $0x26d0] sm:$0xff] %vm153_vm1, %v15164_v28 }
 0x428   :  { %2696 = vst.msk [vmem:[%s16623_s1 + $0x2810] sm:$0xff] %vm153_vm1, %v15164_v28  ;;  %2744 = vst.msk [vmem:[%s16623_s1 + $0x2850] sm:$0xff] %vm153_vm1, %v15164_v28 }
 0x429   :  { %2792 = vst.msk [vmem:[%s16623_s1 + $0x2990] sm:$0xff] %vm153_vm1, %v15164_v28  ;;  %2840 = vst.msk [vmem:[%s16623_s1 + $0x29d0] sm:$0xff] %vm153_vm1, %v15164_v28 }
 0x42a   :  { %2888 = vst.msk [vmem:[%s16623_s1 + $0x2b10] sm:$0xff] %vm153_vm1, %v15164_v28  ;;  %2936 = vst.msk [vmem:[%s16623_s1 + $0x2b50] sm:$0xff] %vm153_vm1, %v15164_v28 }
 0x42b   :  { %2984 = vst.msk [vmem:[%s16623_s1 + $0x2c90] sm:$0xff] %vm153_vm1, %v15164_v28  ;;  %3032 = vst.msk [vmem:[%s16623_s1 + $0x2cd0] sm:$0xff] %vm153_vm1, %v15164_v28 }
 0x42c   :  { %3080 = vst.msk [vmem:[%s16623_s1 + $0x2e10] sm:$0xff] %vm153_vm1, %v15164_v28  ;;  %3128 = vst.msk [vmem:[%s16623_s1 + $0x2e50] sm:$0xff] %vm153_vm1, %v15164_v28 }
 0x42d   :  { %3176 = vst.msk [vmem:[%s16623_s1 + $0x2f90] sm:$0xff] %vm153_vm1, %v15164_v28  ;;  %3224 = vst.msk [vmem:[%s16623_s1 + $0x2fd0] sm:$0xff] %vm153_vm1, %v15164_v28 }
 0x42e   :  { %3272 = vst.msk [vmem:[%s16623_s1 + $0x3110] sm:$0xff] %vm153_vm1, %v15164_v28  ;;  %3320 = vst.msk [vmem:[%s16623_s1 + $0x3150] sm:$0xff] %vm153_vm1, %v15164_v28 }
 0x42f   :  { %3368 = vst.msk [vmem:[%s16623_s1 + $0x3290] sm:$0xff] %vm153_vm1, %v15164_v28  ;;  %3416 = vst.msk [vmem:[%s16623_s1 + $0x32d0] sm:$0xff] %vm153_vm1, %v15164_v28 }
 0x430   :  { %3464 = vst.msk [vmem:[%s16623_s1 + $0x3410] sm:$0xff] %vm153_vm1, %v15164_v28  ;;  %3512 = vst.msk [vmem:[%s16623_s1 + $0x3450] sm:$0xff] %vm153_vm1, %v15164_v28 }
 0x431   :  { %3560 = vst.msk [vmem:[%s16623_s1 + $0x3590] sm:$0xff] %vm153_vm1, %v15164_v28  ;;  %3608 = vst.msk [vmem:[%s16623_s1 + $0x35d0] sm:$0xff] %vm153_vm1, %v15164_v28 }
 0x432   :  { %3656 = vst.msk [vmem:[%s16623_s1 + $0x3710] sm:$0xff] %vm153_vm1, %v15164_v28  ;;  %3704 = vst.msk [vmem:[%s16623_s1 + $0x3750] sm:$0xff] %vm153_vm1, %v15164_v28 }
 0x433   :  { %3752 = vst.msk [vmem:[%s16623_s1 + $0x3890] sm:$0xff] %vm153_vm1, %v15164_v28  ;;  %3800 = vst.msk [vmem:[%s16623_s1 + $0x38d0] sm:$0xff] %vm153_vm1, %v15164_v28 }
 0x434   :  { %3848 = vst.msk [vmem:[%s16623_s1 + $0x3a10] sm:$0xff] %vm153_vm1, %v15164_v28  ;;  %3896 = vst.msk [vmem:[%s16623_s1 + $0x3a50] sm:$0xff] %vm153_vm1, %v15164_v28 }
 0x435   :  { %3944 = vst.msk [vmem:[%s16623_s1 + $0x3b90] sm:$0xff] %vm153_vm1, %v15164_v28  ;;  %3992 = vst.msk [vmem:[%s16623_s1 + $0x3bd0] sm:$0xff] %vm153_vm1, %v15164_v28 }
 0x436   :  { %4040 = vst.msk [vmem:[%s16623_s1 + $0x3d10] sm:$0xff] %vm153_vm1, %v15164_v28  ;;  %4088 = vst.msk [vmem:[%s16623_s1 + $0x3d50] sm:$0xff] %vm153_vm1, %v15164_v28 }
 0x437   :  { %4136 = vst.msk [vmem:[%s16623_s1 + $0x3e90] sm:$0xff] %vm153_vm1, %v15164_v28  ;;  %4184 = vst.msk [vmem:[%s16623_s1 + $0x3ed0] sm:$0xff] %vm153_vm1, %v15164_v28 }
 0x438   :  { %4232 = vst.msk [vmem:[%s16623_s1 + $0x4010] sm:$0xff] %vm153_vm1, %v15164_v28  ;;  %4280 = vst.msk [vmem:[%s16623_s1 + $0x4050] sm:$0xff] %vm153_vm1, %v15164_v28 }
 0x439   :  { %4328 = vst.msk [vmem:[%s16623_s1 + $0x4190] sm:$0xff] %vm153_vm1, %v15164_v28  ;;  %4376 = vst.msk [vmem:[%s16623_s1 + $0x41d0] sm:$0xff] %vm153_vm1, %v15164_v28 }
 0x43a   :  { %4424 = vst.msk [vmem:[%s16623_s1 + $0x4310] sm:$0xff] %vm153_vm1, %v15164_v28  ;;  %4472 = vst.msk [vmem:[%s16623_s1 + $0x4350] sm:$0xff] %vm153_vm1, %v15164_v28 }
 0x43b   :  { %4520 = vst.msk [vmem:[%s16623_s1 + $0x4490] sm:$0xff] %vm153_vm1, %v15164_v28  ;;  %4568 = vst.msk [vmem:[%s16623_s1 + $0x44d0] sm:$0xff] %vm153_vm1, %v15164_v28 }
 0x43c   :  { %4616 = vst.msk [vmem:[%s16623_s1 + $0x4610] sm:$0xff] %vm153_vm1, %v15164_v28  ;;  %4664 = vst.msk [vmem:[%s16623_s1 + $0x4650] sm:$0xff] %vm153_vm1, %v15164_v28 }
 0x43d   :  { %4712 = vst.msk [vmem:[%s16623_s1 + $0x4790] sm:$0xff] %vm153_vm1, %v15164_v28  ;;  %4760 = vst.msk [vmem:[%s16623_s1 + $0x47d0] sm:$0xff] %vm153_vm1, %v15164_v28 }
 0x43e   :  { %199 = vst.msk [vmem:[%s16623_s1 + $0x2520] sm:$0xff] %vm153_vm1, %v15410_v29  ;;  %2554 = vst.msk [vmem:[%s16623_s1 + $0x2560] sm:$0xff] %vm153_vm1, %v15410_v29 }
 0x43f   :  { %2602 = vst.msk [vmem:[%s16623_s1 + $0x26a0] sm:$0xff] %vm153_vm1, %v15410_v29  ;;  %2650 = vst.msk [vmem:[%s16623_s1 + $0x26e0] sm:$0xff] %vm153_vm1, %v15410_v29 }
 0x440   :  { %2698 = vst.msk [vmem:[%s16623_s1 + $0x2820] sm:$0xff] %vm153_vm1, %v15410_v29  ;;  %2746 = vst.msk [vmem:[%s16623_s1 + $0x2860] sm:$0xff] %vm153_vm1, %v15410_v29 }
 0x441   :  { %2794 = vst.msk [vmem:[%s16623_s1 + $0x29a0] sm:$0xff] %vm153_vm1, %v15410_v29  ;;  %2842 = vst.msk [vmem:[%s16623_s1 + $0x29e0] sm:$0xff] %vm153_vm1, %v15410_v29 }
 0x442   :  { %2890 = vst.msk [vmem:[%s16623_s1 + $0x2b20] sm:$0xff] %vm153_vm1, %v15410_v29  ;;  %2938 = vst.msk [vmem:[%s16623_s1 + $0x2b60] sm:$0xff] %vm153_vm1, %v15410_v29 }
 0x443   :  { %2986 = vst.msk [vmem:[%s16623_s1 + $0x2ca0] sm:$0xff] %vm153_vm1, %v15410_v29  ;;  %3034 = vst.msk [vmem:[%s16623_s1 + $0x2ce0] sm:$0xff] %vm153_vm1, %v15410_v29 }
 0x444   :  { %3082 = vst.msk [vmem:[%s16623_s1 + $0x2e20] sm:$0xff] %vm153_vm1, %v15410_v29  ;;  %3130 = vst.msk [vmem:[%s16623_s1 + $0x2e60] sm:$0xff] %vm153_vm1, %v15410_v29 }
 0x445   :  { %3178 = vst.msk [vmem:[%s16623_s1 + $0x2fa0] sm:$0xff] %vm153_vm1, %v15410_v29  ;;  %3226 = vst.msk [vmem:[%s16623_s1 + $0x2fe0] sm:$0xff] %vm153_vm1, %v15410_v29 }
 0x446   :  { %3274 = vst.msk [vmem:[%s16623_s1 + $0x3120] sm:$0xff] %vm153_vm1, %v15410_v29  ;;  %3322 = vst.msk [vmem:[%s16623_s1 + $0x3160] sm:$0xff] %vm153_vm1, %v15410_v29 }
 0x447   :  { %3370 = vst.msk [vmem:[%s16623_s1 + $0x32a0] sm:$0xff] %vm153_vm1, %v15410_v29  ;;  %3418 = vst.msk [vmem:[%s16623_s1 + $0x32e0] sm:$0xff] %vm153_vm1, %v15410_v29 }
 0x448   :  { %3466 = vst.msk [vmem:[%s16623_s1 + $0x3420] sm:$0xff] %vm153_vm1, %v15410_v29  ;;  %3514 = vst.msk [vmem:[%s16623_s1 + $0x3460] sm:$0xff] %vm153_vm1, %v15410_v29 }
 0x449   :  { %3562 = vst.msk [vmem:[%s16623_s1 + $0x35a0] sm:$0xff] %vm153_vm1, %v15410_v29  ;;  %3610 = vst.msk [vmem:[%s16623_s1 + $0x35e0] sm:$0xff] %vm153_vm1, %v15410_v29 }
 0x44a   :  { %3658 = vst.msk [vmem:[%s16623_s1 + $0x3720] sm:$0xff] %vm153_vm1, %v15410_v29  ;;  %3706 = vst.msk [vmem:[%s16623_s1 + $0x3760] sm:$0xff] %vm153_vm1, %v15410_v29 }
 0x44b   :  { %3754 = vst.msk [vmem:[%s16623_s1 + $0x38a0] sm:$0xff] %vm153_vm1, %v15410_v29  ;;  %3802 = vst.msk [vmem:[%s16623_s1 + $0x38e0] sm:$0xff] %vm153_vm1, %v15410_v29 }
 0x44c   :  { %3850 = vst.msk [vmem:[%s16623_s1 + $0x3a20] sm:$0xff] %vm153_vm1, %v15410_v29  ;;  %3898 = vst.msk [vmem:[%s16623_s1 + $0x3a60] sm:$0xff] %vm153_vm1, %v15410_v29 }
 0x44d   :  { %3946 = vst.msk [vmem:[%s16623_s1 + $0x3ba0] sm:$0xff] %vm153_vm1, %v15410_v29  ;;  %3994 = vst.msk [vmem:[%s16623_s1 + $0x3be0] sm:$0xff] %vm153_vm1, %v15410_v29 }
 0x44e   :  { %4042 = vst.msk [vmem:[%s16623_s1 + $0x3d20] sm:$0xff] %vm153_vm1, %v15410_v29  ;;  %4090 = vst.msk [vmem:[%s16623_s1 + $0x3d60] sm:$0xff] %vm153_vm1, %v15410_v29 }
 0x44f   :  { %4138 = vst.msk [vmem:[%s16623_s1 + $0x3ea0] sm:$0xff] %vm153_vm1, %v15410_v29  ;;  %4186 = vst.msk [vmem:[%s16623_s1 + $0x3ee0] sm:$0xff] %vm153_vm1, %v15410_v29 }
 0x450   :  { %4234 = vst.msk [vmem:[%s16623_s1 + $0x4020] sm:$0xff] %vm153_vm1, %v15410_v29  ;;  %4282 = vst.msk [vmem:[%s16623_s1 + $0x4060] sm:$0xff] %vm153_vm1, %v15410_v29 }
 0x451   :  { %4330 = vst.msk [vmem:[%s16623_s1 + $0x41a0] sm:$0xff] %vm153_vm1, %v15410_v29  ;;  %4378 = vst.msk [vmem:[%s16623_s1 + $0x41e0] sm:$0xff] %vm153_vm1, %v15410_v29 }
 0x452   :  { %4426 = vst.msk [vmem:[%s16623_s1 + $0x4320] sm:$0xff] %vm153_vm1, %v15410_v29  ;;  %4474 = vst.msk [vmem:[%s16623_s1 + $0x4360] sm:$0xff] %vm153_vm1, %v15410_v29 }
 0x453   :  { %4522 = vst.msk [vmem:[%s16623_s1 + $0x44a0] sm:$0xff] %vm153_vm1, %v15410_v29  ;;  %4570 = vst.msk [vmem:[%s16623_s1 + $0x44e0] sm:$0xff] %vm153_vm1, %v15410_v29 }
 0x454   :  { %4618 = vst.msk [vmem:[%s16623_s1 + $0x4620] sm:$0xff] %vm153_vm1, %v15410_v29  ;;  %4666 = vst.msk [vmem:[%s16623_s1 + $0x4660] sm:$0xff] %vm153_vm1, %v15410_v29 }
 0x455   :  { %4714 = vst.msk [vmem:[%s16623_s1 + $0x47a0] sm:$0xff] %vm153_vm1, %v15410_v29  ;;  %4762 = vst.msk [vmem:[%s16623_s1 + $0x47e0] sm:$0xff] %vm153_vm1, %v15410_v29 }
 0x456   :  { %202 = vst.msk [vmem:[%s16623_s1 + $0x2538] sm:$0x3] %vm155_vm2, %v15654_v30  ;;  %2557 = vst.msk [vmem:[%s16623_s1 + $0x2578] sm:$0x3] %vm155_vm2, %v15654_v30 }
 0x457   :  { %2605 = vst.msk [vmem:[%s16623_s1 + $0x26b8] sm:$0x3] %vm155_vm2, %v15654_v30  ;;  %2653 = vst.msk [vmem:[%s16623_s1 + $0x26f8] sm:$0x3] %vm155_vm2, %v15654_v30 }
 0x458   :  { %2701 = vst.msk [vmem:[%s16623_s1 + $0x2838] sm:$0x3] %vm155_vm2, %v15654_v30  ;;  %2749 = vst.msk [vmem:[%s16623_s1 + $0x2878] sm:$0x3] %vm155_vm2, %v15654_v30 }
 0x459   :  { %2797 = vst.msk [vmem:[%s16623_s1 + $0x29b8] sm:$0x3] %vm155_vm2, %v15654_v30  ;;  %2845 = vst.msk [vmem:[%s16623_s1 + $0x29f8] sm:$0x3] %vm155_vm2, %v15654_v30 }
 0x45a   :  { %2893 = vst.msk [vmem:[%s16623_s1 + $0x2b38] sm:$0x3] %vm155_vm2, %v15654_v30  ;;  %2941 = vst.msk [vmem:[%s16623_s1 + $0x2b78] sm:$0x3] %vm155_vm2, %v15654_v30 }
 0x45b   :  { %2989 = vst.msk [vmem:[%s16623_s1 + $0x2cb8] sm:$0x3] %vm155_vm2, %v15654_v30  ;;  %3037 = vst.msk [vmem:[%s16623_s1 + $0x2cf8] sm:$0x3] %vm155_vm2, %v15654_v30 }
 0x45c   :  { %3085 = vst.msk [vmem:[%s16623_s1 + $0x2e38] sm:$0x3] %vm155_vm2, %v15654_v30  ;;  %3133 = vst.msk [vmem:[%s16623_s1 + $0x2e78] sm:$0x3] %vm155_vm2, %v15654_v30 }
 0x45d   :  { %3181 = vst.msk [vmem:[%s16623_s1 + $0x2fb8] sm:$0x3] %vm155_vm2, %v15654_v30  ;;  %3229 = vst.msk [vmem:[%s16623_s1 + $0x2ff8] sm:$0x3] %vm155_vm2, %v15654_v30 }
 0x45e   :  { %3277 = vst.msk [vmem:[%s16623_s1 + $0x3138] sm:$0x3] %vm155_vm2, %v15654_v30  ;;  %3325 = vst.msk [vmem:[%s16623_s1 + $0x3178] sm:$0x3] %vm155_vm2, %v15654_v30 }
 0x45f   :  { %3373 = vst.msk [vmem:[%s16623_s1 + $0x32b8] sm:$0x3] %vm155_vm2, %v15654_v30  ;;  %3421 = vst.msk [vmem:[%s16623_s1 + $0x32f8] sm:$0x3] %vm155_vm2, %v15654_v30 }
 0x460   :  { %3469 = vst.msk [vmem:[%s16623_s1 + $0x3438] sm:$0x3] %vm155_vm2, %v15654_v30  ;;  %3517 = vst.msk [vmem:[%s16623_s1 + $0x3478] sm:$0x3] %vm155_vm2, %v15654_v30 }
 0x461   :  { %3565 = vst.msk [vmem:[%s16623_s1 + $0x35b8] sm:$0x3] %vm155_vm2, %v15654_v30  ;;  %3613 = vst.msk [vmem:[%s16623_s1 + $0x35f8] sm:$0x3] %vm155_vm2, %v15654_v30 }
 0x462   :  { %3661 = vst.msk [vmem:[%s16623_s1 + $0x3738] sm:$0x3] %vm155_vm2, %v15654_v30  ;;  %3709 = vst.msk [vmem:[%s16623_s1 + $0x3778] sm:$0x3] %vm155_vm2, %v15654_v30 }
 0x463   :  { %3757 = vst.msk [vmem:[%s16623_s1 + $0x38b8] sm:$0x3] %vm155_vm2, %v15654_v30  ;;  %3805 = vst.msk [vmem:[%s16623_s1 + $0x38f8] sm:$0x3] %vm155_vm2, %v15654_v30 }
 0x464   :  { %3853 = vst.msk [vmem:[%s16623_s1 + $0x3a38] sm:$0x3] %vm155_vm2, %v15654_v30  ;;  %3901 = vst.msk [vmem:[%s16623_s1 + $0x3a78] sm:$0x3] %vm155_vm2, %v15654_v30 }
 0x465   :  { %3949 = vst.msk [vmem:[%s16623_s1 + $0x3bb8] sm:$0x3] %vm155_vm2, %v15654_v30  ;;  %3997 = vst.msk [vmem:[%s16623_s1 + $0x3bf8] sm:$0x3] %vm155_vm2, %v15654_v30 }
 0x466   :  { %4045 = vst.msk [vmem:[%s16623_s1 + $0x3d38] sm:$0x3] %vm155_vm2, %v15654_v30  ;;  %4093 = vst.msk [vmem:[%s16623_s1 + $0x3d78] sm:$0x3] %vm155_vm2, %v15654_v30 }
 0x467   :  { %4141 = vst.msk [vmem:[%s16623_s1 + $0x3eb8] sm:$0x3] %vm155_vm2, %v15654_v30  ;;  %4189 = vst.msk [vmem:[%s16623_s1 + $0x3ef8] sm:$0x3] %vm155_vm2, %v15654_v30 }
 0x468   :  { %4237 = vst.msk [vmem:[%s16623_s1 + $0x4038] sm:$0x3] %vm155_vm2, %v15654_v30  ;;  %4285 = vst.msk [vmem:[%s16623_s1 + $0x4078] sm:$0x3] %vm155_vm2, %v15654_v30 }
 0x469   :  { %4333 = vst.msk [vmem:[%s16623_s1 + $0x41b8] sm:$0x3] %vm155_vm2, %v15654_v30  ;;  %4381 = vst.msk [vmem:[%s16623_s1 + $0x41f8] sm:$0x3] %vm155_vm2, %v15654_v30 }
 0x46a   :  { %4429 = vst.msk [vmem:[%s16623_s1 + $0x4338] sm:$0x3] %vm155_vm2, %v15654_v30  ;;  %4477 = vst.msk [vmem:[%s16623_s1 + $0x4378] sm:$0x3] %vm155_vm2, %v15654_v30 }
 0x46b   :  { %4525 = vst.msk [vmem:[%s16623_s1 + $0x44b8] sm:$0x3] %vm155_vm2, %v15654_v30  ;;  %4573 = vst.msk [vmem:[%s16623_s1 + $0x44f8] sm:$0x3] %vm155_vm2, %v15654_v30 }
 0x46c   :  { %4621 = vst.msk [vmem:[%s16623_s1 + $0x4638] sm:$0x3] %vm155_vm2, %v15654_v30  ;;  %4669 = vst.msk [vmem:[%s16623_s1 + $0x4678] sm:$0x3] %vm155_vm2, %v15654_v30 }
 0x46d   :  { %4717 = vst.msk [vmem:[%s16623_s1 + $0x47b8] sm:$0x3] %vm155_vm2, %v15654_v30  ;;  %4765 = vst.msk [vmem:[%s16623_s1 + $0x47f8] sm:$0x3] %vm155_vm2, %v15654_v30 }
 0x46e   :  { %201 = vst.msk [vmem:[%s16623_s1 + $0x2530] sm:$0xff] %vm153_vm1, %v16140_v31  ;;  %2556 = vst.msk [vmem:[%s16623_s1 + $0x2570] sm:$0xff] %vm153_vm1, %v16140_v31 }
 0x46f   :  { %2604 = vst.msk [vmem:[%s16623_s1 + $0x26b0] sm:$0xff] %vm153_vm1, %v16140_v31  ;;  %2652 = vst.msk [vmem:[%s16623_s1 + $0x26f0] sm:$0xff] %vm153_vm1, %v16140_v31 }
 0x470   :  { %2700 = vst.msk [vmem:[%s16623_s1 + $0x2830] sm:$0xff] %vm153_vm1, %v16140_v31  ;;  %2748 = vst.msk [vmem:[%s16623_s1 + $0x2870] sm:$0xff] %vm153_vm1, %v16140_v31 }
 0x471   :  { %2796 = vst.msk [vmem:[%s16623_s1 + $0x29b0] sm:$0xff] %vm153_vm1, %v16140_v31  ;;  %2844 = vst.msk [vmem:[%s16623_s1 + $0x29f0] sm:$0xff] %vm153_vm1, %v16140_v31 }
 0x472   :  { %2892 = vst.msk [vmem:[%s16623_s1 + $0x2b30] sm:$0xff] %vm153_vm1, %v16140_v31  ;;  %2940 = vst.msk [vmem:[%s16623_s1 + $0x2b70] sm:$0xff] %vm153_vm1, %v16140_v31 }
 0x473   :  { %2988 = vst.msk [vmem:[%s16623_s1 + $0x2cb0] sm:$0xff] %vm153_vm1, %v16140_v31  ;;  %3036 = vst.msk [vmem:[%s16623_s1 + $0x2cf0] sm:$0xff] %vm153_vm1, %v16140_v31 }
 0x474   :  { %3084 = vst.msk [vmem:[%s16623_s1 + $0x2e30] sm:$0xff] %vm153_vm1, %v16140_v31  ;;  %3132 = vst.msk [vmem:[%s16623_s1 + $0x2e70] sm:$0xff] %vm153_vm1, %v16140_v31 }
 0x475   :  { %3180 = vst.msk [vmem:[%s16623_s1 + $0x2fb0] sm:$0xff] %vm153_vm1, %v16140_v31  ;;  %3228 = vst.msk [vmem:[%s16623_s1 + $0x2ff0] sm:$0xff] %vm153_vm1, %v16140_v31 }
 0x476   :  { %3276 = vst.msk [vmem:[%s16623_s1 + $0x3130] sm:$0xff] %vm153_vm1, %v16140_v31  ;;  %3324 = vst.msk [vmem:[%s16623_s1 + $0x3170] sm:$0xff] %vm153_vm1, %v16140_v31 }
 0x477   :  { %3372 = vst.msk [vmem:[%s16623_s1 + $0x32b0] sm:$0xff] %vm153_vm1, %v16140_v31  ;;  %3420 = vst.msk [vmem:[%s16623_s1 + $0x32f0] sm:$0xff] %vm153_vm1, %v16140_v31 }
 0x478   :  { %3468 = vst.msk [vmem:[%s16623_s1 + $0x3430] sm:$0xff] %vm153_vm1, %v16140_v31  ;;  %3516 = vst.msk [vmem:[%s16623_s1 + $0x3470] sm:$0xff] %vm153_vm1, %v16140_v31 }
 0x479   :  { %3564 = vst.msk [vmem:[%s16623_s1 + $0x35b0] sm:$0xff] %vm153_vm1, %v16140_v31  ;;  %3612 = vst.msk [vmem:[%s16623_s1 + $0x35f0] sm:$0xff] %vm153_vm1, %v16140_v31 }
 0x47a   :  { %3660 = vst.msk [vmem:[%s16623_s1 + $0x3730] sm:$0xff] %vm153_vm1, %v16140_v31  ;;  %3708 = vst.msk [vmem:[%s16623_s1 + $0x3770] sm:$0xff] %vm153_vm1, %v16140_v31 }
 0x47b   :  { %3756 = vst.msk [vmem:[%s16623_s1 + $0x38b0] sm:$0xff] %vm153_vm1, %v16140_v31  ;;  %3804 = vst.msk [vmem:[%s16623_s1 + $0x38f0] sm:$0xff] %vm153_vm1, %v16140_v31 }
 0x47c   :  { %3852 = vst.msk [vmem:[%s16623_s1 + $0x3a30] sm:$0xff] %vm153_vm1, %v16140_v31  ;;  %3900 = vst.msk [vmem:[%s16623_s1 + $0x3a70] sm:$0xff] %vm153_vm1, %v16140_v31 }
 0x47d   :  { %3948 = vst.msk [vmem:[%s16623_s1 + $0x3bb0] sm:$0xff] %vm153_vm1, %v16140_v31  ;;  %3996 = vst.msk [vmem:[%s16623_s1 + $0x3bf0] sm:$0xff] %vm153_vm1, %v16140_v31 }
 0x47e   :  { %4044 = vst.msk [vmem:[%s16623_s1 + $0x3d30] sm:$0xff] %vm153_vm1, %v16140_v31  ;;  %4092 = vst.msk [vmem:[%s16623_s1 + $0x3d70] sm:$0xff] %vm153_vm1, %v16140_v31 }
 0x47f   :  { %4140 = vst.msk [vmem:[%s16623_s1 + $0x3eb0] sm:$0xff] %vm153_vm1, %v16140_v31  ;;  %4188 = vst.msk [vmem:[%s16623_s1 + $0x3ef0] sm:$0xff] %vm153_vm1, %v16140_v31 }
 0x480   :  { %4236 = vst.msk [vmem:[%s16623_s1 + $0x4030] sm:$0xff] %vm153_vm1, %v16140_v31  ;;  %4284 = vst.msk [vmem:[%s16623_s1 + $0x4070] sm:$0xff] %vm153_vm1, %v16140_v31 }
 0x481   :  { %4332 = vst.msk [vmem:[%s16623_s1 + $0x41b0] sm:$0xff] %vm153_vm1, %v16140_v31  ;;  %4380 = vst.msk [vmem:[%s16623_s1 + $0x41f0] sm:$0xff] %vm153_vm1, %v16140_v31 }
 0x482   :  { %4428 = vst.msk [vmem:[%s16623_s1 + $0x4330] sm:$0xff] %vm153_vm1, %v16140_v31  ;;  %4476 = vst.msk [vmem:[%s16623_s1 + $0x4370] sm:$0xff] %vm153_vm1, %v16140_v31 }
 0x483   :  { %4524 = vst.msk [vmem:[%s16623_s1 + $0x44b0] sm:$0xff] %vm153_vm1, %v16140_v31  ;;  %4572 = vst.msk [vmem:[%s16623_s1 + $0x44f0] sm:$0xff] %vm153_vm1, %v16140_v31 }
 0x484   :  { %4620 = vst.msk [vmem:[%s16623_s1 + $0x4630] sm:$0xff] %vm153_vm1, %v16140_v31  ;;  %4668 = vst.msk [vmem:[%s16623_s1 + $0x4670] sm:$0xff] %vm153_vm1, %v16140_v31 }
 0x485   :  { %4716 = vst.msk [vmem:[%s16623_s1 + $0x47b0] sm:$0xff] %vm153_vm1, %v16140_v31  ;;  %4764 = vst.msk [vmem:[%s16623_s1 + $0x47f0] sm:$0xff] %vm153_vm1, %v16140_v31 }

</bundles_post_ra>
